<compile_context>
chip_gen: v7x
topology: tpu7x:2x2x1
jax: 0.10.0
libtpu: 0.0.40
codegen_flags: <defaults>
</compile_context>

<pallas_src>
import functools
import math

import jax
import jax.numpy as jnp
import numpy as np
from jax.experimental import pallas as pl
from jax.experimental.pallas import tpu as pltpu


_VMEM = pl.BlockSpec(memory_space=pltpu.MemorySpace.VMEM)
_SMEM = pl.BlockSpec(memory_space=pltpu.MemorySpace.SMEM)


# ---------------------------------------------------------------------------
# Conv (im2col GEMM, lane-dense output, fused bias + activation)
# ---------------------------------------------------------------------------
def _conv_gemm_kernel(w_ref, p_ref, b_ref, o_ref, *, act):
    acc = jnp.dot(w_ref[...], p_ref[...], preferred_element_type=jnp.float32)
    acc = acc + b_ref[...]                       # (Cout, 1) broadcasts over lanes
    if act == "relu":
        acc = jnp.maximum(acc, 0.0)
    elif act == "tanh":
        acc = jnp.tanh(acc)
    o_ref[...] = acc.astype(o_ref.dtype)


def _pick_m_block(m):
    # Largest block that divides M and leaves >=2 blocks (megacore "parallel"
    # sharding on v7x; per-step overhead amortized on v5e/v6e).
    for cand in (2048, 1024, 512, 256):
        if m % cand == 0 and m // cand >= 2:
            return cand
    return m


def conv_gemm(w2, bias, patches, act, out_dtype):
    """(Cout, K) @ (K, M) + bias, lane-dense output (Cout, M)."""
    cout, k = w2.shape
    m = patches.shape[1]
    mb = _pick_m_block(m)
    grid = (m // mb,)
    return pl.pallas_call(
        functools.partial(_conv_gemm_kernel, act=act),
        out_shape=jax.ShapeDtypeStruct((cout, m), out_dtype),
        grid=grid,
        in_specs=[
            pl.BlockSpec((cout, k), lambda i: (0, 0)),
            pl.BlockSpec((k, mb), lambda i: (0, i)),
            pl.BlockSpec((cout, 1), lambda i: (0, 0)),
        ],
        out_specs=pl.BlockSpec((cout, mb), lambda i: (0, i)),
        compiler_params=pltpu.CompilerParams(
            dimension_semantics=("parallel",)),
    )(w2, patches, bias)


def conv2d_3x3(x_dec, w2, bias, B, H, W, stride=1, act="none",
               out_dtype=jnp.bfloat16):
    """3x3 conv, padding 1, on channel-major activations (Cin, B*H*W)."""
    cout, k9 = w2.shape
    cin = k9 // 9
    ho = (H + 2 - 3) // stride + 1
    wo = (W + 2 - 3) // stride + 1
    x4 = x_dec.reshape(cin, B, H, W)
    xp = jnp.pad(x4, ((0, 0), (0, 0), (1, 1), (1, 1)))
    taps = [xp[:, :, kh:kh + stride * ho:stride, kw:kw + stride * wo:stride]
            for kh in range(3) for kw in range(3)]
    patches = jnp.stack(taps, axis=1).reshape(cin * 9, B * ho * wo)
    # TODO(synk): at large resolutions move the im2col into the kernel
    # (9 shifted dots on a padded VMEM tile) to avoid the 9x patch matrix.
    out = conv_gemm(w2, bias, patches, act, out_dtype)
    return out, ho, wo


# ---------------------------------------------------------------------------
# Fused bilinear-x2 upsample (align_corners=True) + residual add + relu
# ---------------------------------------------------------------------------
def _up_add_relu_kernel(x_ref, m_ref, s_ref, o_ref):
    up = jnp.dot(x_ref[...], m_ref[...], preferred_element_type=jnp.float32)
    o_ref[...] = jnp.maximum(up + s_ref[...].astype(jnp.float32),
                             0.0).astype(o_ref.dtype)


@functools.lru_cache(maxsize=None)
def _upsample_matrix_np(h, w):
    """(h*w, 4*h*w) matrix: x_flat @ M == vec(bilinear x2, align_corners)."""
    def interp(n_in, n_out):
        if n_in == 1:
            return np.ones((n_out, 1), np.float32)
        src = np.arange(n_out, dtype=np.float64) * (n_in - 1) / (n_out - 1)
        i0 = np.clip(np.floor(src).astype(np.int64), 0, n_in - 2)
        frac = (src - i0).astype(np.float32)
        m = np.zeros((n_out, n_in), np.float32)
        rows = np.arange(n_out)
        m[rows, i0] += 1.0 - frac
        m[rows, i0 + 1] += frac
        return m
    ah = interp(h, 2 * h)
    aw = interp(w, 2 * w)
    return np.kron(ah, aw).T.copy()          # (h*w, 4*h*w)


def upsample2x_add_relu(x_dec, skip_dec, B, H, W):
    """relu(up2x(x) + skip); x_dec (C, B*H*W), skip (C, B*4*H*W)."""
    c = x_dec.shape[0]
    s_in, s_out = H * W, 4 * H * W
    m_up_t = jnp.asarray(_upsample_matrix_np(H, W), dtype=jnp.bfloat16)
    xin = x_dec.reshape(c * B, s_in)
    skip = skip_dec.reshape(c * B, s_out)
    out = pl.pallas_call(
        _up_add_relu_kernel,
        out_shape=jax.ShapeDtypeStruct((c * B, s_out), jnp.bfloat16),
        in_specs=[_VMEM, _VMEM, _VMEM],
        out_specs=_VMEM,
    )(xin, m_up_t, skip)
    return out.reshape(c, B * s_out)


# ---------------------------------------------------------------------------
# Fused MultiHeadSelfAttention (one pallas_call, single full-tile store)
# ---------------------------------------------------------------------------
def _mhsa_kernel(x_ref, wqkv_ref, bqkv_ref, wo_ref, bo_ref, o_ref, *,
                 B, S, E, nh):
    hd = E // nh
    scale = 1.0 / math.sqrt(hd)
    x = x_ref[...].astype(jnp.float32)                       # (B*S, E)
    qkv = jnp.dot(x, wqkv_ref[...],
                  preferred_element_type=jnp.float32) + bqkv_ref[...]
    wo = wo_ref[...]
    bo = bo_ref[...]
    outs = []
    for b in range(B):
        rows = qkv[b * S:(b + 1) * S, :]                     # (S, 3E)
        acc = jnp.zeros((S, E), jnp.float32)
        for h in range(nh):
            q = rows[:, h * hd:(h + 1) * hd]
            k = rows[:, E + h * hd:E + (h + 1) * hd]
            v = rows[:, 2 * E + h * hd:2 * E + (h + 1) * hd]
            s = jnp.einsum("id,jd->ij", q, k,
                           preferred_element_type=jnp.float32) * scale
            s = s - jnp.max(s, axis=-1, keepdims=True)
            e = jnp.exp(s)
            p = e / jnp.sum(e, axis=-1, keepdims=True)
            o = jnp.dot(p, v, preferred_element_type=jnp.float32)      # (S, hd)
            acc = acc + jnp.dot(o, wo[h * hd:(h + 1) * hd, :],
                                preferred_element_type=jnp.float32)
        outs.append(acc + bo)
    o_ref[...] = jnp.concatenate(outs, axis=0).astype(o_ref.dtype)


def mhsa_forward(p, y_dec, B, H, W, num_heads=4):
    """y_dec: (E, B*H*W) channel-major -> (E, B*H*W) channel-major."""
    E = y_dec.shape[0]
    S = H * W
    # Reproduce PyTorch's quirk: raw NCHW memory viewed as (B, H*W, E).
    xq = y_dec.reshape(E, B, S).transpose(1, 0, 2).reshape(B * S, E)
    out = pl.pallas_call(
        functools.partial(_mhsa_kernel, B=B, S=S, E=E, nh=num_heads),
        out_shape=jax.ShapeDtypeStruct((B * S, E), jnp.bfloat16),
        in_specs=[_VMEM] * 5,
        out_specs=_VMEM,
    )(xq, p["wqkv"], p["bqkv"], p["wo"], p["bo"])
    # output.reshape(B,H,W,E).permute(0,3,1,2) in channel-major form:
    return out.reshape(B, S, E).transpose(2, 0, 1).reshape(E, B * S)


# ---------------------------------------------------------------------------
# Fused CrossAttention + channel concat (one pallas_call; temperature in SMEM)
#   output rows [0:E)   = y (pass-through, == torch.cat's first half)
#   output rows [E:E+C) = project_out(attention(cbcr, y))
# ---------------------------------------------------------------------------
def _cross_concat_kernel(t_ref, x_ref, y_ref, wq_ref, wkv_ref, wp_ref, o_ref, *,
                         B, S, C, nh):
    hc = C // nh
    x = x_ref[...].astype(jnp.float32)                        # (C,  B*S)
    y = y_ref[...].astype(jnp.float32)                        # (Cy, B*S)
    q = jnp.dot(wq_ref[...], x, preferred_element_type=jnp.float32)    # (C, B*S)
    kv = jnp.dot(wkv_ref[...], y, preferred_element_type=jnp.float32)  # (2C, B*S)
    k = kv[:C, :]
    v = kv[C:, :]
    wp = wp_ref[...]

    def l2norm(a):  # F.normalize(a, dim=-1), eps = 1e-12
        n = jnp.sqrt(jnp.sum(a * a, axis=-1, keepdims=True))
        return a / jnp.maximum(n, 1e-12)

    outs = []
    for b in range(B):
        cols = slice(b * S, (b + 1) * S)
        acc = jnp.zeros((C, S), jnp.float32)
        for h in range(nh):
            rows = slice(h * hc, (h + 1) * hc)
            qn = l2norm(q[rows, cols])
            kn = l2norm(k[rows, cols])
            a = jnp.einsum("cs,ds->cd", qn, kn,
                           preferred_element_type=jnp.float32) * t_ref[h]
            a = a - jnp.max(a, axis=-1, keepdims=True)
            e = jnp.exp(a)
            pr = e / jnp.sum(e, axis=-1, keepdims=True)
            ob = jnp.dot(pr, v[rows, cols],
                         preferred_element_type=jnp.float32)           # (hc, S)
            acc = acc + jnp.dot(wp[:, rows], ob,
                                preferred_element_type=jnp.float32)
        outs.append(acc)
    cross = jnp.concatenate(outs, axis=1)                     # (C, B*S)
    o_ref[...] = jnp.concatenate([y, cross], axis=0).astype(o_ref.dtype)


def cross_attn_concat_forward(p, x_dec, y_dec, B, S, num_heads=4):
    """x_dec (C, B*S) cbcr, y_dec (Cy, B*S) -> concat([y, attn(x, y)]) (Cy+C, B*S)."""
    C = x_dec.shape[0]
    E = y_dec.shape[0]
    out = pl.pallas_call(
        functools.partial(_cross_concat_kernel, B=B, S=S, C=C, nh=num_heads),
        out_shape=jax.ShapeDtypeStruct((E + C, B * S), jnp.bfloat16),
        in_specs=[_SMEM, _VMEM, _VMEM, _VMEM, _VMEM, _VMEM],
        out_specs=_VMEM,
    )(p["temperature"], x_dec, y_dec, p["wq"], p["wkv"], p["wproj"])
    return out


# ---------------------------------------------------------------------------
# Parameters (deterministic synthetic init — shapes match the PyTorch module)
# ---------------------------------------------------------------------------
def init_params(key, num_filters=24):
    assert num_filters % 3 == 0 and (num_filters // 3) % 4 == 0
    f = num_filters
    e = f // 3
    dim = 2 * e

    def nxt():
        nonlocal key
        key, sub = jax.random.split(key)
        return sub

    def conv_p(cin, cout):
        w = jax.random.normal(nxt(), (cout, cin, 3, 3), jnp.float32) / math.sqrt(cin * 9)
        return (w.reshape(cout, cin * 9).astype(jnp.bfloat16),
                jnp.zeros((cout, 1), jnp.float32))

    def lin(din, dout):
        return jax.random.normal(nxt(), (din, dout), jnp.float32) / math.sqrt(din)

    wq, wk, wv = lin(e, e), lin(e, e), lin(e, e)
    params = {
        "conv1": conv_p(3, f),
        "conv2": conv_p(f, f),
        "conv3": conv_p(f, f),
        "conv4": conv_p(f, f),
        "refine4": conv_p(f, f),
        "refine3": conv_p(f, f),
        "refine2": conv_p(f, f),
        "res_layer": conv_p(f, f),
        "output_layer": conv_p(f, f),
        "attn_y": {
            "wqkv": jnp.concatenate([wq, wk, wv], axis=1),    # (e, 3e), x @ W
            "bqkv": jnp.zeros((1, 3 * e), jnp.float32),
            "wo": lin(e, e),
            "bo": jnp.zeros((1, e), jnp.float32),
        },
        "attn_cbcr": {                                        # (Cout, Cin) 1x1 convs
            "temperature": jnp.ones((4,), jnp.float32),
            "wq": jax.random.normal(nxt(), (dim, dim), jnp.float32) / math.sqrt(dim),
            "wkv": jax.random.normal(nxt(), (2 * dim, e), jnp.float32) / math.sqrt(e),
            "wproj": jax.random.normal(nxt(), (dim, dim), jnp.float32) / math.sqrt(dim),
        },
    }
    return params


# ---------------------------------------------------------------------------
# Denoiser.forward  (activations kept channel-major (C, B*H*W) throughout)
# ---------------------------------------------------------------------------
def denoiser_forward(params, x):
    B, cin, H, W = x.shape
    f = params["conv1"][0].shape[0]
    c3 = f // 3

    xd = x.transpose(1, 0, 2, 3).reshape(cin, B * H * W).astype(jnp.bfloat16)

    x1, h1, w1 = conv2d_3x3(xd, *params["conv1"], B, H, W, stride=1, act="relu")
    x2, h2, w2 = conv2d_3x3(x1, *params["conv2"], B, h1, w1, stride=2, act="relu")
    x3, h3, w3 = conv2d_3x3(x2, *params["conv3"], B, h2, w2, stride=2, act="relu")
    x4, h4, w4 = conv2d_3x3(x3, *params["conv4"], B, h3, w3, stride=2, act="relu")

    s4 = h4 * w4
    y = x4[:c3]                       # (e, B*s4)      == torch's y channels
    cbcr = x4[c3:]                    # (2e, B*s4)     == cat([cb, cr], dim=1)

    y = mhsa_forward(params["attn_y"], y, B, h4, w4, num_heads=4)
    # One kernel: cross-attention(cbcr, y) + torch.cat([y, cbcr], dim=1).
    xc = cross_attn_concat_forward(params["attn_cbcr"], cbcr, y, B, s4,
                                   num_heads=4)               # (f, B*s4)

    xc = upsample2x_add_relu(xc, x3, B, h4, w4)
    xc, _, _ = conv2d_3x3(xc, *params["refine4"], B, h3, w3, stride=1, act="none")
    xc = upsample2x_add_relu(xc, x2, B, h3, w3)
    xc, _, _ = conv2d_3x3(xc, *params["refine3"], B, h2, w2, stride=1, act="none")
    xc = upsample2x_add_relu(xc, x1, B, h2, w2)
    xc, _, _ = conv2d_3x3(xc, *params["refine2"], B, h1, w1, stride=1, act="none")

    xc, _, _ = conv2d_3x3(xc, *params["res_layer"], B, h1, w1, stride=1, act="none")
    out, _, _ = conv2d_3x3(xc, *params["output_layer"], B, h1, w1, stride=1,
                           act="tanh", out_dtype=jnp.float32)
    return out.reshape(f, B, h1, w1).transpose(1, 0, 2, 3)   # back to NCHW


if __name__ == "__main__":
    key = jax.random.PRNGKey(0)
    kp, kx = jax.random.split(key)
    num_filters = 24
    params = init_params(kp, num_filters=num_filters)
    x = jax.random.normal(kx, (2, 3, 16, 16), jnp.float32)   # NCHW, like PyTorch

    out = jax.jit(denoiser_forward)(params, x)
    out = jax.block_until_ready(out)
    assert out.shape == (2, num_filters, 16, 16), out.shape
    assert bool(jnp.all(jnp.isfinite(out)))
    print("KERNEL_OK")
</pallas_src>

<mosaic_0001>
module attributes {stable_mosaic.version = 11 : i64} {
  func.func @_conv_gemm_kernel(%arg0: i32, %arg1: memref<24x27xbf16, #tpu.memory_space<vmem>>, %arg2: memref<27x256xbf16, #tpu.memory_space<vmem>>, %arg3: memref<24x1xf32, #tpu.memory_space<vmem>>, %arg4: memref<24x256xbf16, #tpu.memory_space<vmem>>) attributes {dimension_semantics = [#tpu.dimension_semantics<parallel>], iteration_bounds = array<i64: 2>, scalar_prefetch = 0 : i64, scratch_operands = 0 : i64, tpu.core_type = #tpu.core_type<tc>, window_params = [{pipeline_mode = #tpu.pipeline_mode<synchronous>, transform_indices = @transform_0, window_bounds = array<i64: 24, 27>}, {transform_indices = @transform_1, window_bounds = array<i64: 27, 256>}, {pipeline_mode = #tpu.pipeline_mode<synchronous>, transform_indices = @transform_2, window_bounds = array<i64: 24, 1>}, {transform_indices = @transform_3, window_bounds = array<i64: 24, 256>}]} {
    %c0 = arith.constant 0 : index
    %c0_0 = arith.constant 0 : index
    %0 = vector.load %arg1[%c0, %c0_0] : memref<24x27xbf16, #tpu.memory_space<vmem>>, vector<24x27xbf16>
    %c0_1 = arith.constant 0 : index
    %c0_2 = arith.constant 0 : index
    %1 = vector.load %arg2[%c0_1, %c0_2] : memref<27x256xbf16, #tpu.memory_space<vmem>>, vector<27x256xbf16>
    %cst = arith.constant dense<0.000000e+00> : vector<24x256xf32>
    %2 = tpu.matmul %0, %1, %cst {dimension_numbers = #tpu.dot_dimension_numbers<[1], [0], [0], [1], [0, 0, 1, 1], [], []>} : vector<24x27xbf16>, vector<27x256xbf16>, vector<24x256xf32> -> vector<24x256xf32>
    %c0_3 = arith.constant 0 : index
    %c0_4 = arith.constant 0 : index
    %3 = vector.load %arg3[%c0_3, %c0_4] : memref<24x1xf32, #tpu.memory_space<vmem>>, vector<24x1xf32>
    %4 = vector.broadcast %3 : vector<24x1xf32> to vector<24x256xf32>
    %5 = arith.addf %2, %4 : vector<24x256xf32>
    %cst_5 = arith.constant 0.000000e+00 : f32
    %6 = vector.broadcast %cst_5 : f32 to vector<24x256xf32>
    %7 = arith.maximumf %5, %6 : vector<24x256xf32>
    %8 = arith.truncf %7 : vector<24x256xf32> to vector<24x256xbf16>
    %c0_6 = arith.constant 0 : index
    %c0_7 = arith.constant 0 : index
    %9 = vector.load %arg4[%c0_6, %c0_7] : memref<24x256xbf16, #tpu.memory_space<vmem>>, vector<24x256xbf16>
    tpu.vector_store %arg4[%c0_6, %c0_7], %8 {strides = array<i32>} : memref<24x256xbf16, #tpu.memory_space<vmem>>, vector<24x256xbf16>,
    return
  }
  func.func @transform_0(%arg0: i32) -> (i32, i32) {
    %c0_i32 = arith.constant 0 : i32
    %c0_i32_0 = arith.constant 0 : i32
    %c0_i32_1 = arith.constant 0 : i32
    return %c0_i32, %c0_i32_0 : i32, i32
  }
  func.func @transform_1(%arg0: i32) -> (i32, i32) {
    %c0_i32 = arith.constant 0 : i32
    %c0_i32_0 = arith.constant 0 : i32
    return %c0_i32, %arg0 : i32, i32
  }
  func.func @transform_2(%arg0: i32) -> (i32, i32) {
    %c0_i32 = arith.constant 0 : i32
    %c0_i32_0 = arith.constant 0 : i32
    %c0_i32_1 = arith.constant 0 : i32
    return %c0_i32, %c0_i32_0 : i32, i32
  }
  func.func @transform_3(%arg0: i32) -> (i32, i32) {
    %c0_i32 = arith.constant 0 : i32
    %c0_i32_0 = arith.constant 0 : i32
    return %c0_i32, %arg0 : i32, i32
  }
}

module attributes {stable_mosaic.version = 11 : i64} {
  func.func @_conv_gemm_kernel(%arg0: i32, %arg1: memref<24x216xbf16, #tpu.memory_space<vmem>>, %arg2: memref<216x128xbf16, #tpu.memory_space<vmem>>, %arg3: memref<24x1xf32, #tpu.memory_space<vmem>>, %arg4: memref<24x128xbf16, #tpu.memory_space<vmem>>) attributes {dimension_semantics = [#tpu.dimension_semantics<parallel>], iteration_bounds = array<i64: 1>, scalar_prefetch = 0 : i64, scratch_operands = 0 : i64, tpu.core_type = #tpu.core_type<tc>, window_params = [{pipeline_mode = #tpu.pipeline_mode<synchronous>, transform_indices = @transform_0, window_bounds = array<i64: 24, 216>}, {transform_indices = @transform_1, window_bounds = array<i64: 216, 128>}, {pipeline_mode = #tpu.pipeline_mode<synchronous>, transform_indices = @transform_2, window_bounds = array<i64: 24, 1>}, {transform_indices = @transform_3, window_bounds = array<i64: 24, 128>}]} {
    %c0 = arith.constant 0 : index
    %c0_0 = arith.constant 0 : index
    %0 = vector.load %arg1[%c0, %c0_0] : memref<24x216xbf16, #tpu.memory_space<vmem>>, vector<24x216xbf16>
    %c0_1 = arith.constant 0 : index
    %c0_2 = arith.constant 0 : index
    %1 = vector.load %arg2[%c0_1, %c0_2] : memref<216x128xbf16, #tpu.memory_space<vmem>>, vector<216x128xbf16>
    %cst = arith.constant dense<0.000000e+00> : vector<24x128xf32>
    %2 = tpu.matmul %0, %1, %cst {dimension_numbers = #tpu.dot_dimension_numbers<[1], [0], [0], [1], [0, 0, 1, 1], [], []>} : vector<24x216xbf16>, vector<216x128xbf16>, vector<24x128xf32> -> vector<24x128xf32>
    %c0_3 = arith.constant 0 : index
    %c0_4 = arith.constant 0 : index
    %3 = vector.load %arg3[%c0_3, %c0_4] : memref<24x1xf32, #tpu.memory_space<vmem>>, vector<24x1xf32>
    %4 = vector.broadcast %3 : vector<24x1xf32> to vector<24x128xf32>
    %5 = arith.addf %2, %4 : vector<24x128xf32>
    %cst_5 = arith.constant 0.000000e+00 : f32
    %6 = vector.broadcast %cst_5 : f32 to vector<24x128xf32>
    %7 = arith.maximumf %5, %6 : vector<24x128xf32>
    %8 = arith.truncf %7 : vector<24x128xf32> to vector<24x128xbf16>
    %c0_6 = arith.constant 0 : index
    %c0_7 = arith.constant 0 : index
    %9 = vector.load %arg4[%c0_6, %c0_7] : memref<24x128xbf16, #tpu.memory_space<vmem>>, vector<24x128xbf16>
    tpu.vector_store %arg4[%c0_6, %c0_7], %8 {strides = array<i32>} : memref<24x128xbf16, #tpu.memory_space<vmem>>, vector<24x128xbf16>,
    return
  }
  func.func @transform_0(%arg0: i32) -> (i32, i32) {
    %c0_i32 = arith.constant 0 : i32
    %c0_i32_0 = arith.constant 0 : i32
    %c0_i32_1 = arith.constant 0 : i32
    return %c0_i32, %c0_i32_0 : i32, i32
  }
  func.func @transform_1(%arg0: i32) -> (i32, i32) {
    %c0_i32 = arith.constant 0 : i32
    %c0_i32_0 = arith.constant 0 : i32
    return %c0_i32, %arg0 : i32, i32
  }
  func.func @transform_2(%arg0: i32) -> (i32, i32) {
    %c0_i32 = arith.constant 0 : i32
    %c0_i32_0 = arith.constant 0 : i32
    %c0_i32_1 = arith.constant 0 : i32
    return %c0_i32, %c0_i32_0 : i32, i32
  }
  func.func @transform_3(%arg0: i32) -> (i32, i32) {
    %c0_i32 = arith.constant 0 : i32
    %c0_i32_0 = arith.constant 0 : i32
    return %c0_i32, %arg0 : i32, i32
  }
}

module attributes {stable_mosaic.version = 11 : i64} {
  func.func @_conv_gemm_kernel(%arg0: i32, %arg1: memref<24x216xbf16, #tpu.memory_space<vmem>>, %arg2: memref<216x32xbf16, #tpu.memory_space<vmem>>, %arg3: memref<24x1xf32, #tpu.memory_space<vmem>>, %arg4: memref<24x32xbf16, #tpu.memory_space<vmem>>) attributes {dimension_semantics = [#tpu.dimension_semantics<parallel>], iteration_bounds = array<i64: 1>, scalar_prefetch = 0 : i64, scratch_operands = 0 : i64, tpu.core_type = #tpu.core_type<tc>, window_params = [{pipeline_mode = #tpu.pipeline_mode<synchronous>, transform_indices = @transform_0, window_bounds = array<i64: 24, 216>}, {transform_indices = @transform_1, window_bounds = array<i64: 216, 32>}, {pipeline_mode = #tpu.pipeline_mode<synchronous>, transform_indices = @transform_2, window_bounds = array<i64: 24, 1>}, {transform_indices = @transform_3, window_bounds = array<i64: 24, 32>}]} {
    %c0 = arith.constant 0 : index
    %c0_0 = arith.constant 0 : index
    %0 = vector.load %arg1[%c0, %c0_0] : memref<24x216xbf16, #tpu.memory_space<vmem>>, vector<24x216xbf16>
    %c0_1 = arith.constant 0 : index
    %c0_2 = arith.constant 0 : index
    %1 = vector.load %arg2[%c0_1, %c0_2] : memref<216x32xbf16, #tpu.memory_space<vmem>>, vector<216x32xbf16>
    %cst = arith.constant dense<0.000000e+00> : vector<24x32xf32>
    %2 = tpu.matmul %0, %1, %cst {dimension_numbers = #tpu.dot_dimension_numbers<[1], [0], [0], [1], [0, 0, 1, 1], [], []>} : vector<24x216xbf16>, vector<216x32xbf16>, vector<24x32xf32> -> vector<24x32xf32>
    %c0_3 = arith.constant 0 : index
    %c0_4 = arith.constant 0 : index
    %3 = vector.load %arg3[%c0_3, %c0_4] : memref<24x1xf32, #tpu.memory_space<vmem>>, vector<24x1xf32>
    %4 = vector.broadcast %3 : vector<24x1xf32> to vector<24x32xf32>
    %5 = arith.addf %2, %4 : vector<24x32xf32>
    %cst_5 = arith.constant 0.000000e+00 : f32
    %6 = vector.broadcast %cst_5 : f32 to vector<24x32xf32>
    %7 = arith.maximumf %5, %6 : vector<24x32xf32>
    %8 = arith.truncf %7 : vector<24x32xf32> to vector<24x32xbf16>
    %c0_6 = arith.constant 0 : index
    %c0_7 = arith.constant 0 : index
    %9 = vector.load %arg4[%c0_6, %c0_7] : memref<24x32xbf16, #tpu.memory_space<vmem>>, vector<24x32xbf16>
    tpu.vector_store %arg4[%c0_6, %c0_7], %8 {strides = array<i32>} : memref<24x32xbf16, #tpu.memory_space<vmem>>, vector<24x32xbf16>,
    return
  }
  func.func @transform_0(%arg0: i32) -> (i32, i32) {
    %c0_i32 = arith.constant 0 : i32
    %c0_i32_0 = arith.constant 0 : i32
    %c0_i32_1 = arith.constant 0 : i32
    return %c0_i32, %c0_i32_0 : i32, i32
  }
  func.func @transform_1(%arg0: i32) -> (i32, i32) {
    %c0_i32 = arith.constant 0 : i32
    %c0_i32_0 = arith.constant 0 : i32
    return %c0_i32, %arg0 : i32, i32
  }
  func.func @transform_2(%arg0: i32) -> (i32, i32) {
    %c0_i32 = arith.constant 0 : i32
    %c0_i32_0 = arith.constant 0 : i32
    %c0_i32_1 = arith.constant 0 : i32
    return %c0_i32, %c0_i32_0 : i32, i32
  }
  func.func @transform_3(%arg0: i32) -> (i32, i32) {
    %c0_i32 = arith.constant 0 : i32
    %c0_i32_0 = arith.constant 0 : i32
    return %c0_i32, %arg0 : i32, i32
  }
}

module attributes {stable_mosaic.version = 11 : i64} {
  func.func @_conv_gemm_kernel(%arg0: i32, %arg1: memref<24x216xbf16, #tpu.memory_space<vmem>>, %arg2: memref<216x8xbf16, #tpu.memory_space<vmem>>, %arg3: memref<24x1xf32, #tpu.memory_space<vmem>>, %arg4: memref<24x8xbf16, #tpu.memory_space<vmem>>) attributes {dimension_semantics = [#tpu.dimension_semantics<parallel>], iteration_bounds = array<i64: 1>, scalar_prefetch = 0 : i64, scratch_operands = 0 : i64, tpu.core_type = #tpu.core_type<tc>, window_params = [{pipeline_mode = #tpu.pipeline_mode<synchronous>, transform_indices = @transform_0, window_bounds = array<i64: 24, 216>}, {transform_indices = @transform_1, window_bounds = array<i64: 216, 8>}, {pipeline_mode = #tpu.pipeline_mode<synchronous>, transform_indices = @transform_2, window_bounds = array<i64: 24, 1>}, {transform_indices = @transform_3, window_bounds = array<i64: 24, 8>}]} {
    %c0 = arith.constant 0 : index
    %c0_0 = arith.constant 0 : index
    %0 = vector.load %arg1[%c0, %c0_0] : memref<24x216xbf16, #tpu.memory_space<vmem>>, vector<24x216xbf16>
    %c0_1 = arith.constant 0 : index
    %c0_2 = arith.constant 0 : index
    %1 = vector.load %arg2[%c0_1, %c0_2] : memref<216x8xbf16, #tpu.memory_space<vmem>>, vector<216x8xbf16>
    %cst = arith.constant dense<0.000000e+00> : vector<24x8xf32>
    %2 = tpu.matmul %0, %1, %cst {dimension_numbers = #tpu.dot_dimension_numbers<[1], [0], [0], [1], [0, 0, 1, 1], [], []>} : vector<24x216xbf16>, vector<216x8xbf16>, vector<24x8xf32> -> vector<24x8xf32>
    %c0_3 = arith.constant 0 : index
    %c0_4 = arith.constant 0 : index
    %3 = vector.load %arg3[%c0_3, %c0_4] : memref<24x1xf32, #tpu.memory_space<vmem>>, vector<24x1xf32>
    %4 = vector.broadcast %3 : vector<24x1xf32> to vector<24x8xf32>
    %5 = arith.addf %2, %4 : vector<24x8xf32>
    %cst_5 = arith.constant 0.000000e+00 : f32
    %6 = vector.broadcast %cst_5 : f32 to vector<24x8xf32>
    %7 = arith.maximumf %5, %6 : vector<24x8xf32>
    %8 = arith.truncf %7 : vector<24x8xf32> to vector<24x8xbf16>
    %c0_6 = arith.constant 0 : index
    %c0_7 = arith.constant 0 : index
    %9 = vector.load %arg4[%c0_6, %c0_7] : memref<24x8xbf16, #tpu.memory_space<vmem>>, vector<24x8xbf16>
    tpu.vector_store %arg4[%c0_6, %c0_7], %8 {strides = array<i32>} : memref<24x8xbf16, #tpu.memory_space<vmem>>, vector<24x8xbf16>,
    return
  }
  func.func @transform_0(%arg0: i32) -> (i32, i32) {
    %c0_i32 = arith.constant 0 : i32
    %c0_i32_0 = arith.constant 0 : i32
    %c0_i32_1 = arith.constant 0 : i32
    return %c0_i32, %c0_i32_0 : i32, i32
  }
  func.func @transform_1(%arg0: i32) -> (i32, i32) {
    %c0_i32 = arith.constant 0 : i32
    %c0_i32_0 = arith.constant 0 : i32
    return %c0_i32, %arg0 : i32, i32
  }
  func.func @transform_2(%arg0: i32) -> (i32, i32) {
    %c0_i32 = arith.constant 0 : i32
    %c0_i32_0 = arith.constant 0 : i32
    %c0_i32_1 = arith.constant 0 : i32
    return %c0_i32, %c0_i32_0 : i32, i32
  }
  func.func @transform_3(%arg0: i32) -> (i32, i32) {
    %c0_i32 = arith.constant 0 : i32
    %c0_i32_0 = arith.constant 0 : i32
    return %c0_i32, %arg0 : i32, i32
  }
}

module attributes {stable_mosaic.version = 11 : i64} {
  func.func @_mhsa_kernel(%arg0: memref<8x8xbf16, #tpu.memory_space<vmem>>, %arg1: memref<8x24xf32, #tpu.memory_space<vmem>>, %arg2: memref<1x24xf32, #tpu.memory_space<vmem>>, %arg3: memref<8x8xf32, #tpu.memory_space<vmem>>, %arg4: memref<1x8xf32, #tpu.memory_space<vmem>>, %arg5: memref<8x8xbf16, #tpu.memory_space<vmem>>) attributes {dimension_semantics = [], scalar_prefetch = 0 : i64, scratch_operands = 0 : i64, tpu.core_type = #tpu.core_type<tc>} {
    %c0 = arith.constant 0 : index
    %c0_0 = arith.constant 0 : index
    %0 = vector.load %arg0[%c0, %c0_0] : memref<8x8xbf16, #tpu.memory_space<vmem>>, vector<8x8xbf16>
    %1 = arith.extf %0 : vector<8x8xbf16> to vector<8x8xf32>
    %c0_1 = arith.constant 0 : index
    %c0_2 = arith.constant 0 : index
    %2 = vector.load %arg1[%c0_1, %c0_2] : memref<8x24xf32, #tpu.memory_space<vmem>>, vector<8x24xf32>
    %cst = arith.constant dense<0.000000e+00> : vector<8x24xf32>
    %3 = tpu.matmul %1, %2, %cst {dimension_numbers = #tpu.dot_dimension_numbers<[1], [0], [0], [1], [0, 0, 1, 1], [], []>} : vector<8x8xf32>, vector<8x24xf32>, vector<8x24xf32> -> vector<8x24xf32>
    %c0_3 = arith.constant 0 : index
    %c0_4 = arith.constant 0 : index
    %4 = vector.load %arg2[%c0_3, %c0_4] : memref<1x24xf32, #tpu.memory_space<vmem>>, vector<1x24xf32>
    %5 = vector.broadcast %4 : vector<1x24xf32> to vector<8x24xf32>
    %6 = arith.addf %3, %5 : vector<8x24xf32>
    %c0_5 = arith.constant 0 : index
    %c0_6 = arith.constant 0 : index
    %7 = vector.load %arg3[%c0_5, %c0_6] : memref<8x8xf32, #tpu.memory_space<vmem>>, vector<8x8xf32>
    %c0_7 = arith.constant 0 : index
    %c0_8 = arith.constant 0 : index
    %8 = vector.load %arg4[%c0_7, %c0_8] : memref<1x8xf32, #tpu.memory_space<vmem>>, vector<1x8xf32>
    %9 = vector.extract_strided_slice %6 {offsets = [0, 0], sizes = [4, 24], strides = [1, 1]} : vector<8x24xf32> to vector<4x24xf32>
    %cst_9 = arith.constant 0.000000e+00 : f32
    %10 = vector.broadcast %cst_9 : f32 to vector<4x8xf32>
    %11 = vector.extract_strided_slice %9 {offsets = [0, 0], sizes = [4, 2], strides = [1, 1]} : vector<4x24xf32> to vector<4x2xf32>
    %12 = vector.extract_strided_slice %9 {offsets = [0, 8], sizes = [4, 2], strides = [1, 1]} : vector<4x24xf32> to vector<4x2xf32>
    %13 = vector.extract_strided_slice %9 {offsets = [0, 16], sizes = [4, 2], strides = [1, 1]} : vector<4x24xf32> to vector<4x2xf32>
    "tpu.trace_start"() <{level = 10 : i32, message = "id,jd->ij"}> : () -> ()
    %cst_10 = arith.constant dense<0.000000e+00> : vector<4x4xf32>
    %14 = tpu.matmul %11, %12, %cst_10 {dimension_numbers = #tpu.dot_dimension_numbers<[1], [1], [0], [0], [0, 0, 1, 0], [], []>} : vector<4x2xf32>, vector<4x2xf32>, vector<4x4xf32> -> vector<4x4xf32>
    "tpu.trace_stop"() : () -> ()
    %cst_11 = arith.constant 0.707106769 : f32
    %15 = vector.broadcast %cst_11 : f32 to vector<4x4xf32>
    %16 = arith.mulf %14, %15 : vector<4x4xf32>
    %cst_12 = arith.constant dense<0xFF800000> : vector<4xf32>
    %17 = vector.multi_reduction <maximumf>, %16, %cst_12 [1] : vector<4x4xf32> to vector<4xf32>
    %18 = vector.shape_cast %17 : vector<4xf32> to vector<4x1xf32>
    %19 = vector.broadcast %18 : vector<4x1xf32> to vector<4x4xf32>
    %20 = arith.subf %16, %19 : vector<4x4xf32>
    %21 = math.exp %20 : vector<4x4xf32>
    %cst_13 = arith.constant dense<0.000000e+00> : vector<4xf32>
    %22 = vector.multi_reduction <add>, %21, %cst_13 [1] : vector<4x4xf32> to vector<4xf32>
    %23 = vector.shape_cast %22 : vector<4xf32> to vector<4x1xf32>
    %24 = vector.broadcast %23 : vector<4x1xf32> to vector<4x4xf32>
    %25 = arith.divf %21, %24 : vector<4x4xf32>
    %cst_14 = arith.constant dense<0.000000e+00> : vector<4x2xf32>
    %26 = tpu.matmul %25, %13, %cst_14 {dimension_numbers = #tpu.dot_dimension_numbers<[1], [0], [0], [1], [0, 0, 1, 1], [], []>} : vector<4x4xf32>, vector<4x2xf32>, vector<4x2xf32> -> vector<4x2xf32>
    %27 = vector.extract_strided_slice %7 {offsets = [0, 0], sizes = [2, 8], strides = [1, 1]} : vector<8x8xf32> to vector<2x8xf32>
    %cst_15 = arith.constant dense<0.000000e+00> : vector<4x8xf32>
    %28 = tpu.matmul %26, %27, %cst_15 {dimension_numbers = #tpu.dot_dimension_numbers<[1], [0], [0], [1], [0, 0, 1, 1], [], []>} : vector<4x2xf32>, vector<2x8xf32>, vector<4x8xf32> -> vector<4x8xf32>
    %29 = arith.addf %10, %28 : vector<4x8xf32>
    %30 = vector.extract_strided_slice %9 {offsets = [0, 2], sizes = [4, 2], strides = [1, 1]} : vector<4x24xf32> to vector<4x2xf32>
    %31 = vector.extract_strided_slice %9 {offsets = [0, 10], sizes = [4, 2], strides = [1, 1]} : vector<4x24xf32> to vector<4x2xf32>
    %32 = vector.extract_strided_slice %9 {offsets = [0, 18], sizes = [4, 2], strides = [1, 1]} : vector<4x24xf32> to vector<4x2xf32>
    "tpu.trace_start"() <{level = 10 : i32, message = "id,jd->ij"}> : () -> ()
    %cst_16 = arith.constant dense<0.000000e+00> : vector<4x4xf32>
    %33 = tpu.matmul %30, %31, %cst_16 {dimension_numbers = #tpu.dot_dimension_numbers<[1], [1], [0], [0], [0, 0, 1, 0], [], []>} : vector<4x2xf32>, vector<4x2xf32>, vector<4x4xf32> -> vector<4x4xf32>
    "tpu.trace_stop"() : () -> ()
    %cst_17 = arith.constant 0.707106769 : f32
    %34 = vector.broadcast %cst_17 : f32 to vector<4x4xf32>
    %35 = arith.mulf %33, %34 : vector<4x4xf32>
    %cst_18 = arith.constant dense<0xFF800000> : vector<4xf32>
    %36 = vector.multi_reduction <maximumf>, %35, %cst_18 [1] : vector<4x4xf32> to vector<4xf32>
    %37 = vector.shape_cast %36 : vector<4xf32> to vector<4x1xf32>
    %38 = vector.broadcast %37 : vector<4x1xf32> to vector<4x4xf32>
    %39 = arith.subf %35, %38 : vector<4x4xf32>
    %40 = math.exp %39 : vector<4x4xf32>
    %cst_19 = arith.constant dense<0.000000e+00> : vector<4xf32>
    %41 = vector.multi_reduction <add>, %40, %cst_19 [1] : vector<4x4xf32> to vector<4xf32>
    %42 = vector.shape_cast %41 : vector<4xf32> to vector<4x1xf32>
    %43 = vector.broadcast %42 : vector<4x1xf32> to vector<4x4xf32>
    %44 = arith.divf %40, %43 : vector<4x4xf32>
    %cst_20 = arith.constant dense<0.000000e+00> : vector<4x2xf32>
    %45 = tpu.matmul %44, %32, %cst_20 {dimension_numbers = #tpu.dot_dimension_numbers<[1], [0], [0], [1], [0, 0, 1, 1], [], []>} : vector<4x4xf32>, vector<4x2xf32>, vector<4x2xf32> -> vector<4x2xf32>
    %46 = vector.extract_strided_slice %7 {offsets = [2, 0], sizes = [2, 8], strides = [1, 1]} : vector<8x8xf32> to vector<2x8xf32>
    %cst_21 = arith.constant dense<0.000000e+00> : vector<4x8xf32>
    %47 = tpu.matmul %45, %46, %cst_21 {dimension_numbers = #tpu.dot_dimension_numbers<[1], [0], [0], [1], [0, 0, 1, 1], [], []>} : vector<4x2xf32>, vector<2x8xf32>, vector<4x8xf32> -> vector<4x8xf32>
    %48 = arith.addf %29, %47 : vector<4x8xf32>
    %49 = vector.extract_strided_slice %9 {offsets = [0, 4], sizes = [4, 2], strides = [1, 1]} : vector<4x24xf32> to vector<4x2xf32>
    %50 = vector.extract_strided_slice %9 {offsets = [0, 12], sizes = [4, 2], strides = [1, 1]} : vector<4x24xf32> to vector<4x2xf32>
    %51 = vector.extract_strided_slice %9 {offsets = [0, 20], sizes = [4, 2], strides = [1, 1]} : vector<4x24xf32> to vector<4x2xf32>
    "tpu.trace_start"() <{level = 10 : i32, message = "id,jd->ij"}> : () -> ()
    %cst_22 = arith.constant dense<0.000000e+00> : vector<4x4xf32>
    %52 = tpu.matmul %49, %50, %cst_22 {dimension_numbers = #tpu.dot_dimension_numbers<[1], [1], [0], [0], [0, 0, 1, 0], [], []>} : vector<4x2xf32>, vector<4x2xf32>, vector<4x4xf32> -> vector<4x4xf32>
    "tpu.trace_stop"() : () -> ()
    %cst_23 = arith.constant 0.707106769 : f32
    %53 = vector.broadcast %cst_23 : f32 to vector<4x4xf32>
    %54 = arith.mulf %52, %53 : vector<4x4xf32>
    %cst_24 = arith.constant dense<0xFF800000> : vector<4xf32>
    %55 = vector.multi_reduction <maximumf>, %54, %cst_24 [1] : vector<4x4xf32> to vector<4xf32>
    %56 = vector.shape_cast %55 : vector<4xf32> to vector<4x1xf32>
    %57 = vector.broadcast %56 : vector<4x1xf32> to vector<4x4xf32>
    %58 = arith.subf %54, %57 : vector<4x4xf32>
    %59 = math.exp %58 : vector<4x4xf32>
    %cst_25 = arith.constant dense<0.000000e+00> : vector<4xf32>
    %60 = vector.multi_reduction <add>, %59, %cst_25 [1] : vector<4x4xf32> to vector<4xf32>
    %61 = vector.shape_cast %60 : vector<4xf32> to vector<4x1xf32>
    %62 = vector.broadcast %61 : vector<4x1xf32> to vector<4x4xf32>
    %63 = arith.divf %59, %62 : vector<4x4xf32>
    %cst_26 = arith.constant dense<0.000000e+00> : vector<4x2xf32>
    %64 = tpu.matmul %63, %51, %cst_26 {dimension_numbers = #tpu.dot_dimension_numbers<[1], [0], [0], [1], [0, 0, 1, 1], [], []>} : vector<4x4xf32>, vector<4x2xf32>, vector<4x2xf32> -> vector<4x2xf32>
    %65 = vector.extract_strided_slice %7 {offsets = [4, 0], sizes = [2, 8], strides = [1, 1]} : vector<8x8xf32> to vector<2x8xf32>
    %cst_27 = arith.constant dense<0.000000e+00> : vector<4x8xf32>
    %66 = tpu.matmul %64, %65, %cst_27 {dimension_numbers = #tpu.dot_dimension_numbers<[1], [0], [0], [1], [0, 0, 1, 1], [], []>} : vector<4x2xf32>, vector<2x8xf32>, vector<4x8xf32> -> vector<4x8xf32>
    %67 = arith.addf %48, %66 : vector<4x8xf32>
    %68 = vector.extract_strided_slice %9 {offsets = [0, 6], sizes = [4, 2], strides = [1, 1]} : vector<4x24xf32> to vector<4x2xf32>
    %69 = vector.extract_strided_slice %9 {offsets = [0, 14], sizes = [4, 2], strides = [1, 1]} : vector<4x24xf32> to vector<4x2xf32>
    %70 = vector.extract_strided_slice %9 {offsets = [0, 22], sizes = [4, 2], strides = [1, 1]} : vector<4x24xf32> to vector<4x2xf32>
    "tpu.trace_start"() <{level = 10 : i32, message = "id,jd->ij"}> : () -> ()
    %cst_28 = arith.constant dense<0.000000e+00> : vector<4x4xf32>
    %71 = tpu.matmul %68, %69, %cst_28 {dimension_numbers = #tpu.dot_dimension_numbers<[1], [1], [0], [0], [0, 0, 1, 0], [], []>} : vector<4x2xf32>, vector<4x2xf32>, vector<4x4xf32> -> vector<4x4xf32>
    "tpu.trace_stop"() : () -> ()
    %cst_29 = arith.constant 0.707106769 : f32
    %72 = vector.broadcast %cst_29 : f32 to vector<4x4xf32>
    %73 = arith.mulf %71, %72 : vector<4x4xf32>
    %cst_30 = arith.constant dense<0xFF800000> : vector<4xf32>
    %74 = vector.multi_reduction <maximumf>, %73, %cst_30 [1] : vector<4x4xf32> to vector<4xf32>
    %75 = vector.shape_cast %74 : vector<4xf32> to vector<4x1xf32>
    %76 = vector.broadcast %75 : vector<4x1xf32> to vector<4x4xf32>
    %77 = arith.subf %73, %76 : vector<4x4xf32>
    %78 = math.exp %77 : vector<4x4xf32>
    %cst_31 = arith.constant dense<0.000000e+00> : vector<4xf32>
    %79 = vector.multi_reduction <add>, %78, %cst_31 [1] : vector<4x4xf32> to vector<4xf32>
    %80 = vector.shape_cast %79 : vector<4xf32> to vector<4x1xf32>
    %81 = vector.broadcast %80 : vector<4x1xf32> to vector<4x4xf32>
    %82 = arith.divf %78, %81 : vector<4x4xf32>
    %cst_32 = arith.constant dense<0.000000e+00> : vector<4x2xf32>
    %83 = tpu.matmul %82, %70, %cst_32 {dimension_numbers = #tpu.dot_dimension_numbers<[1], [0], [0], [1], [0, 0, 1, 1], [], []>} : vector<4x4xf32>, vector<4x2xf32>, vector<4x2xf32> -> vector<4x2xf32>
    %84 = vector.extract_strided_slice %7 {offsets = [6, 0], sizes = [2, 8], strides = [1, 1]} : vector<8x8xf32> to vector<2x8xf32>
    %cst_33 = arith.constant dense<0.000000e+00> : vector<4x8xf32>
    %85 = tpu.matmul %83, %84, %cst_33 {dimension_numbers = #tpu.dot_dimension_numbers<[1], [0], [0], [1], [0, 0, 1, 1], [], []>} : vector<4x2xf32>, vector<2x8xf32>, vector<4x8xf32> -> vector<4x8xf32>
    %86 = arith.addf %67, %85 : vector<4x8xf32>
    %87 = vector.broadcast %8 : vector<1x8xf32> to vector<4x8xf32>
    %88 = arith.addf %86, %87 : vector<4x8xf32>
    %89 = vector.extract_strided_slice %6 {offsets = [4, 0], sizes = [4, 24], strides = [1, 1]} : vector<8x24xf32> to vector<4x24xf32>
    %cst_34 = arith.constant 0.000000e+00 : f32
    %90 = vector.broadcast %cst_34 : f32 to vector<4x8xf32>
    %91 = vector.extract_strided_slice %89 {offsets = [0, 0], sizes = [4, 2], strides = [1, 1]} : vector<4x24xf32> to vector<4x2xf32>
    %92 = vector.extract_strided_slice %89 {offsets = [0, 8], sizes = [4, 2], strides = [1, 1]} : vector<4x24xf32> to vector<4x2xf32>
    %93 = vector.extract_strided_slice %89 {offsets = [0, 16], sizes = [4, 2], strides = [1, 1]} : vector<4x24xf32> to vector<4x2xf32>
    "tpu.trace_start"() <{level = 10 : i32, message = "id,jd->ij"}> : () -> ()
    %cst_35 = arith.constant dense<0.000000e+00> : vector<4x4xf32>
    %94 = tpu.matmul %91, %92, %cst_35 {dimension_numbers = #tpu.dot_dimension_numbers<[1], [1], [0], [0], [0, 0, 1, 0], [], []>} : vector<4x2xf32>, vector<4x2xf32>, vector<4x4xf32> -> vector<4x4xf32>
    "tpu.trace_stop"() : () -> ()
    %cst_36 = arith.constant 0.707106769 : f32
    %95 = vector.broadcast %cst_36 : f32 to vector<4x4xf32>
    %96 = arith.mulf %94, %95 : vector<4x4xf32>
    %cst_37 = arith.constant dense<0xFF800000> : vector<4xf32>
    %97 = vector.multi_reduction <maximumf>, %96, %cst_37 [1] : vector<4x4xf32> to vector<4xf32>
    %98 = vector.shape_cast %97 : vector<4xf32> to vector<4x1xf32>
    %99 = vector.broadcast %98 : vector<4x1xf32> to vector<4x4xf32>
    %100 = arith.subf %96, %99 : vector<4x4xf32>
    %101 = math.exp %100 : vector<4x4xf32>
    %cst_38 = arith.constant dense<0.000000e+00> : vector<4xf32>
    %102 = vector.multi_reduction <add>, %101, %cst_38 [1] : vector<4x4xf32> to vector<4xf32>
    %103 = vector.shape_cast %102 : vector<4xf32> to vector<4x1xf32>
    %104 = vector.broadcast %103 : vector<4x1xf32> to vector<4x4xf32>
    %105 = arith.divf %101, %104 : vector<4x4xf32>
    %cst_39 = arith.constant dense<0.000000e+00> : vector<4x2xf32>
    %106 = tpu.matmul %105, %93, %cst_39 {dimension_numbers = #tpu.dot_dimension_numbers<[1], [0], [0], [1], [0, 0, 1, 1], [], []>} : vector<4x4xf32>, vector<4x2xf32>, vector<4x2xf32> -> vector<4x2xf32>
    %107 = vector.extract_strided_slice %7 {offsets = [0, 0], sizes = [2, 8], strides = [1, 1]} : vector<8x8xf32> to vector<2x8xf32>
    %cst_40 = arith.constant dense<0.000000e+00> : vector<4x8xf32>
    %108 = tpu.matmul %106, %107, %cst_40 {dimension_numbers = #tpu.dot_dimension_numbers<[1], [0], [0], [1], [0, 0, 1, 1], [], []>} : vector<4x2xf32>, vector<2x8xf32>, vector<4x8xf32> -> vector<4x8xf32>
    %109 = arith.addf %90, %108 : vector<4x8xf32>
    %110 = vector.extract_strided_slice %89 {offsets = [0, 2], sizes = [4, 2], strides = [1, 1]} : vector<4x24xf32> to vector<4x2xf32>
    %111 = vector.extract_strided_slice %89 {offsets = [0, 10], sizes = [4, 2], strides = [1, 1]} : vector<4x24xf32> to vector<4x2xf32>
    %112 = vector.extract_strided_slice %89 {offsets = [0, 18], sizes = [4, 2], strides = [1, 1]} : vector<4x24xf32> to vector<4x2xf32>
    "tpu.trace_start"() <{level = 10 : i32, message = "id,jd->ij"}> : () -> ()
    %cst_41 = arith.constant dense<0.000000e+00> : vector<4x4xf32>
    %113 = tpu.matmul %110, %111, %cst_41 {dimension_numbers = #tpu.dot_dimension_numbers<[1], [1], [0], [0], [0, 0, 1, 0], [], []>} : vector<4x2xf32>, vector<4x2xf32>, vector<4x4xf32> -> vector<4x4xf32>
    "tpu.trace_stop"() : () -> ()
    %cst_42 = arith.constant 0.707106769 : f32
    %114 = vector.broadcast %cst_42 : f32 to vector<4x4xf32>
    %115 = arith.mulf %113, %114 : vector<4x4xf32>
    %cst_43 = arith.constant dense<0xFF800000> : vector<4xf32>
    %116 = vector.multi_reduction <maximumf>, %115, %cst_43 [1] : vector<4x4xf32> to vector<4xf32>
    %117 = vector.shape_cast %116 : vector<4xf32> to vector<4x1xf32>
    %118 = vector.broadcast %117 : vector<4x1xf32> to vector<4x4xf32>
    %119 = arith.subf %115, %118 : vector<4x4xf32>
    %120 = math.exp %119 : vector<4x4xf32>
    %cst_44 = arith.constant dense<0.000000e+00> : vector<4xf32>
    %121 = vector.multi_reduction <add>, %120, %cst_44 [1] : vector<4x4xf32> to vector<4xf32>
    %122 = vector.shape_cast %121 : vector<4xf32> to vector<4x1xf32>
    %123 = vector.broadcast %122 : vector<4x1xf32> to vector<4x4xf32>
    %124 = arith.divf %120, %123 : vector<4x4xf32>
    %cst_45 = arith.constant dense<0.000000e+00> : vector<4x2xf32>
    %125 = tpu.matmul %124, %112, %cst_45 {dimension_numbers = #tpu.dot_dimension_numbers<[1], [0], [0], [1], [0, 0, 1, 1], [], []>} : vector<4x4xf32>, vector<4x2xf32>, vector<4x2xf32> -> vector<4x2xf32>
    %126 = vector.extract_strided_slice %7 {offsets = [2, 0], sizes = [2, 8], strides = [1, 1]} : vector<8x8xf32> to vector<2x8xf32>
    %cst_46 = arith.constant dense<0.000000e+00> : vector<4x8xf32>
    %127 = tpu.matmul %125, %126, %cst_46 {dimension_numbers = #tpu.dot_dimension_numbers<[1], [0], [0], [1], [0, 0, 1, 1], [], []>} : vector<4x2xf32>, vector<2x8xf32>, vector<4x8xf32> -> vector<4x8xf32>
    %128 = arith.addf %109, %127 : vector<4x8xf32>
    %129 = vector.extract_strided_slice %89 {offsets = [0, 4], sizes = [4, 2], strides = [1, 1]} : vector<4x24xf32> to vector<4x2xf32>
    %130 = vector.extract_strided_slice %89 {offsets = [0, 12], sizes = [4, 2], strides = [1, 1]} : vector<4x24xf32> to vector<4x2xf32>
    %131 = vector.extract_strided_slice %89 {offsets = [0, 20], sizes = [4, 2], strides = [1, 1]} : vector<4x24xf32> to vector<4x2xf32>
    "tpu.trace_start"() <{level = 10 : i32, message = "id,jd->ij"}> : () -> ()
    %cst_47 = arith.constant dense<0.000000e+00> : vector<4x4xf32>
    %132 = tpu.matmul %129, %130, %cst_47 {dimension_numbers = #tpu.dot_dimension_numbers<[1], [1], [0], [0], [0, 0, 1, 0], [], []>} : vector<4x2xf32>, vector<4x2xf32>, vector<4x4xf32> -> vector<4x4xf32>
    "tpu.trace_stop"() : () -> ()
    %cst_48 = arith.constant 0.707106769 : f32
    %133 = vector.broadcast %cst_48 : f32 to vector<4x4xf32>
    %134 = arith.mulf %132, %133 : vector<4x4xf32>
    %cst_49 = arith.constant dense<0xFF800000> : vector<4xf32>
    %135 = vector.multi_reduction <maximumf>, %134, %cst_49 [1] : vector<4x4xf32> to vector<4xf32>
    %136 = vector.shape_cast %135 : vector<4xf32> to vector<4x1xf32>
    %137 = vector.broadcast %136 : vector<4x1xf32> to vector<4x4xf32>
    %138 = arith.subf %134, %137 : vector<4x4xf32>
    %139 = math.exp %138 : vector<4x4xf32>
    %cst_50 = arith.constant dense<0.000000e+00> : vector<4xf32>
    %140 = vector.multi_reduction <add>, %139, %cst_50 [1] : vector<4x4xf32> to vector<4xf32>
    %141 = vector.shape_cast %140 : vector<4xf32> to vector<4x1xf32>
    %142 = vector.broadcast %141 : vector<4x1xf32> to vector<4x4xf32>
    %143 = arith.divf %139, %142 : vector<4x4xf32>
    %cst_51 = arith.constant dense<0.000000e+00> : vector<4x2xf32>
    %144 = tpu.matmul %143, %131, %cst_51 {dimension_numbers = #tpu.dot_dimension_numbers<[1], [0], [0], [1], [0, 0, 1, 1], [], []>} : vector<4x4xf32>, vector<4x2xf32>, vector<4x2xf32> -> vector<4x2xf32>
    %145 = vector.extract_strided_slice %7 {offsets = [4, 0], sizes = [2, 8], strides = [1, 1]} : vector<8x8xf32> to vector<2x8xf32>
    %cst_52 = arith.constant dense<0.000000e+00> : vector<4x8xf32>
    %146 = tpu.matmul %144, %145, %cst_52 {dimension_numbers = #tpu.dot_dimension_numbers<[1], [0], [0], [1], [0, 0, 1, 1], [], []>} : vector<4x2xf32>, vector<2x8xf32>, vector<4x8xf32> -> vector<4x8xf32>
    %147 = arith.addf %128, %146 : vector<4x8xf32>
    %148 = vector.extract_strided_slice %89 {offsets = [0, 6], sizes = [4, 2], strides = [1, 1]} : vector<4x24xf32> to vector<4x2xf32>
    %149 = vector.extract_strided_slice %89 {offsets = [0, 14], sizes = [4, 2], strides = [1, 1]} : vector<4x24xf32> to vector<4x2xf32>
    %150 = vector.extract_strided_slice %89 {offsets = [0, 22], sizes = [4, 2], strides = [1, 1]} : vector<4x24xf32> to vector<4x2xf32>
    "tpu.trace_start"() <{level = 10 : i32, message = "id,jd->ij"}> : () -> ()
    %cst_53 = arith.constant dense<0.000000e+00> : vector<4x4xf32>
    %151 = tpu.matmul %148, %149, %cst_53 {dimension_numbers = #tpu.dot_dimension_numbers<[1], [1], [0], [0], [0, 0, 1, 0], [], []>} : vector<4x2xf32>, vector<4x2xf32>, vector<4x4xf32> -> vector<4x4xf32>
    "tpu.trace_stop"() : () -> ()
    %cst_54 = arith.constant 0.707106769 : f32
    %152 = vector.broadcast %cst_54 : f32 to vector<4x4xf32>
    %153 = arith.mulf %151, %152 : vector<4x4xf32>
    %cst_55 = arith.constant dense<0xFF800000> : vector<4xf32>
    %154 = vector.multi_reduction <maximumf>, %153, %cst_55 [1] : vector<4x4xf32> to vector<4xf32>
    %155 = vector.shape_cast %154 : vector<4xf32> to vector<4x1xf32>
    %156 = vector.broadcast %155 : vector<4x1xf32> to vector<4x4xf32>
    %157 = arith.subf %153, %156 : vector<4x4xf32>
    %158 = math.exp %157 : vector<4x4xf32>
    %cst_56 = arith.constant dense<0.000000e+00> : vector<4xf32>
    %159 = vector.multi_reduction <add>, %158, %cst_56 [1] : vector<4x4xf32> to vector<4xf32>
    %160 = vector.shape_cast %159 : vector<4xf32> to vector<4x1xf32>
    %161 = vector.broadcast %160 : vector<4x1xf32> to vector<4x4xf32>
    %162 = arith.divf %158, %161 : vector<4x4xf32>
    %cst_57 = arith.constant dense<0.000000e+00> : vector<4x2xf32>
    %163 = tpu.matmul %162, %150, %cst_57 {dimension_numbers = #tpu.dot_dimension_numbers<[1], [0], [0], [1], [0, 0, 1, 1], [], []>} : vector<4x4xf32>, vector<4x2xf32>, vector<4x2xf32> -> vector<4x2xf32>
    %164 = vector.extract_strided_slice %7 {offsets = [6, 0], sizes = [2, 8], strides = [1, 1]} : vector<8x8xf32> to vector<2x8xf32>
    %cst_58 = arith.constant dense<0.000000e+00> : vector<4x8xf32>
    %165 = tpu.matmul %163, %164, %cst_58 {dimension_numbers = #tpu.dot_dimension_numbers<[1], [0], [0], [1], [0, 0, 1, 1], [], []>} : vector<4x2xf32>, vector<2x8xf32>, vector<4x8xf32> -> vector<4x8xf32>
    %166 = arith.addf %147, %165 : vector<4x8xf32>
    %167 = vector.broadcast %8 : vector<1x8xf32> to vector<4x8xf32>
    %168 = arith.addf %166, %167 : vector<4x8xf32>
    %169 = tpu.concatenate %88, %168 in 0 : vector<4x8xf32>, vector<4x8xf32> -> vector<8x8xf32>
    %170 = arith.truncf %169 : vector<8x8xf32> to vector<8x8xbf16>
    %c0_59 = arith.constant 0 : index
    %c0_60 = arith.constant 0 : index
    %171 = vector.load %arg5[%c0_59, %c0_60] : memref<8x8xbf16, #tpu.memory_space<vmem>>, vector<8x8xbf16>
    tpu.vector_store %arg5[%c0_59, %c0_60], %170 {strides = array<i32>} : memref<8x8xbf16, #tpu.memory_space<vmem>>, vector<8x8xbf16>,
    return
  }
}

module attributes {stable_mosaic.version = 11 : i64} {
  func.func @_cross_concat_kernel(%arg0: memref<4xf32, #tpu.memory_space<smem>>, %arg1: memref<16x8xbf16, #tpu.memory_space<vmem>>, %arg2: memref<8x8xbf16, #tpu.memory_space<vmem>>, %arg3: memref<16x16xf32, #tpu.memory_space<vmem>>, %arg4: memref<32x8xf32, #tpu.memory_space<vmem>>, %arg5: memref<16x16xf32, #tpu.memory_space<vmem>>, %arg6: memref<24x8xbf16, #tpu.memory_space<vmem>>) attributes {dimension_semantics = [], scalar_prefetch = 0 : i64, scratch_operands = 0 : i64, tpu.core_type = #tpu.core_type<tc>} {
    %c0 = arith.constant 0 : index
    %c0_0 = arith.constant 0 : index
    %0 = vector.load %arg1[%c0, %c0_0] : memref<16x8xbf16, #tpu.memory_space<vmem>>, vector<16x8xbf16>
    %1 = arith.extf %0 : vector<16x8xbf16> to vector<16x8xf32>
    %c0_1 = arith.constant 0 : index
    %c0_2 = arith.constant 0 : index
    %2 = vector.load %arg2[%c0_1, %c0_2] : memref<8x8xbf16, #tpu.memory_space<vmem>>, vector<8x8xbf16>
    %3 = arith.extf %2 : vector<8x8xbf16> to vector<8x8xf32>
    %c0_3 = arith.constant 0 : index
    %c0_4 = arith.constant 0 : index
    %4 = vector.load %arg3[%c0_3, %c0_4] : memref<16x16xf32, #tpu.memory_space<vmem>>, vector<16x16xf32>
    %cst = arith.constant dense<0.000000e+00> : vector<16x8xf32>
    %5 = tpu.matmul %4, %1, %cst {dimension_numbers = #tpu.dot_dimension_numbers<[1], [0], [0], [1], [0, 0, 1, 1], [], []>} : vector<16x16xf32>, vector<16x8xf32>, vector<16x8xf32> -> vector<16x8xf32>
    %c0_5 = arith.constant 0 : index
    %c0_6 = arith.constant 0 : index
    %6 = vector.load %arg4[%c0_5, %c0_6] : memref<32x8xf32, #tpu.memory_space<vmem>>, vector<32x8xf32>
    %cst_7 = arith.constant dense<0.000000e+00> : vector<32x8xf32>
    %7 = tpu.matmul %6, %3, %cst_7 {dimension_numbers = #tpu.dot_dimension_numbers<[1], [0], [0], [1], [0, 0, 1, 1], [], []>} : vector<32x8xf32>, vector<8x8xf32>, vector<32x8xf32> -> vector<32x8xf32>
    %8 = vector.extract_strided_slice %7 {offsets = [0, 0], sizes = [16, 8], strides = [1, 1]} : vector<32x8xf32> to vector<16x8xf32>
    %9 = vector.extract_strided_slice %7 {offsets = [16, 0], sizes = [16, 8], strides = [1, 1]} : vector<32x8xf32> to vector<16x8xf32>
    %c0_8 = arith.constant 0 : index
    %c0_9 = arith.constant 0 : index
    %10 = vector.load %arg5[%c0_8, %c0_9] : memref<16x16xf32, #tpu.memory_space<vmem>>, vector<16x16xf32>
    %cst_10 = arith.constant 0.000000e+00 : f32
    %11 = vector.broadcast %cst_10 : f32 to vector<16x4xf32>
    %12 = vector.extract_strided_slice %5 {offsets = [0, 0], sizes = [4, 4], strides = [1, 1]} : vector<16x8xf32> to vector<4x4xf32>
    %13 = arith.mulf %12, %12 : vector<4x4xf32>
    %cst_11 = arith.constant dense<0.000000e+00> : vector<4xf32>
    %14 = vector.multi_reduction <add>, %13, %cst_11 [1] : vector<4x4xf32> to vector<4xf32>
    %15 = vector.shape_cast %14 : vector<4xf32> to vector<4x1xf32>
    %16 = math.sqrt %15 : vector<4x1xf32>
    %cst_12 = arith.constant 9.99999996E-13 : f32
    %17 = vector.broadcast %cst_12 : f32 to vector<4x1xf32>
    %18 = arith.maximumf %16, %17 : vector<4x1xf32>
    %19 = vector.broadcast %18 : vector<4x1xf32> to vector<4x4xf32>
    %20 = arith.divf %12, %19 : vector<4x4xf32>
    %21 = vector.extract_strided_slice %8 {offsets = [0, 0], sizes = [4, 4], strides = [1, 1]} : vector<16x8xf32> to vector<4x4xf32>
    %22 = arith.mulf %21, %21 : vector<4x4xf32>
    %cst_13 = arith.constant dense<0.000000e+00> : vector<4xf32>
    %23 = vector.multi_reduction <add>, %22, %cst_13 [1] : vector<4x4xf32> to vector<4xf32>
    %24 = vector.shape_cast %23 : vector<4xf32> to vector<4x1xf32>
    %25 = math.sqrt %24 : vector<4x1xf32>
    %cst_14 = arith.constant 9.99999996E-13 : f32
    %26 = vector.broadcast %cst_14 : f32 to vector<4x1xf32>
    %27 = arith.maximumf %25, %26 : vector<4x1xf32>
    %28 = vector.broadcast %27 : vector<4x1xf32> to vector<4x4xf32>
    %29 = arith.divf %21, %28 : vector<4x4xf32>
    "tpu.trace_start"() <{level = 10 : i32, message = "cs,ds->cd"}> : () -> ()
    %cst_15 = arith.constant dense<0.000000e+00> : vector<4x4xf32>
    %30 = tpu.matmul %20, %29, %cst_15 {dimension_numbers = #tpu.dot_dimension_numbers<[1], [1], [0], [0], [0, 0, 1, 0], [], []>} : vector<4x4xf32>, vector<4x4xf32>, vector<4x4xf32> -> vector<4x4xf32>
    "tpu.trace_stop"() : () -> ()
    %c0_16 = arith.constant 0 : index
    %31 = memref.load %arg0[%c0_16] : memref<4xf32, #tpu.memory_space<smem>>
    %32 = vector.broadcast %31 : f32 to vector<4x4xf32>
    %33 = arith.mulf %30, %32 : vector<4x4xf32>
    %cst_17 = arith.constant dense<0xFF800000> : vector<4xf32>
    %34 = vector.multi_reduction <maximumf>, %33, %cst_17 [1] : vector<4x4xf32> to vector<4xf32>
    %35 = vector.shape_cast %34 : vector<4xf32> to vector<4x1xf32>
    %36 = vector.broadcast %35 : vector<4x1xf32> to vector<4x4xf32>
    %37 = arith.subf %33, %36 : vector<4x4xf32>
    %38 = math.exp %37 : vector<4x4xf32>
    %cst_18 = arith.constant dense<0.000000e+00> : vector<4xf32>
    %39 = vector.multi_reduction <add>, %38, %cst_18 [1] : vector<4x4xf32> to vector<4xf32>
    %40 = vector.shape_cast %39 : vector<4xf32> to vector<4x1xf32>
    %41 = vector.broadcast %40 : vector<4x1xf32> to vector<4x4xf32>
    %42 = arith.divf %38, %41 : vector<4x4xf32>
    %43 = vector.extract_strided_slice %9 {offsets = [0, 0], sizes = [4, 4], strides = [1, 1]} : vector<16x8xf32> to vector<4x4xf32>
    %cst_19 = arith.constant dense<0.000000e+00> : vector<4x4xf32>
    %44 = tpu.matmul %42, %43, %cst_19 {dimension_numbers = #tpu.dot_dimension_numbers<[1], [0], [0], [1], [0, 0, 1, 1], [], []>} : vector<4x4xf32>, vector<4x4xf32>, vector<4x4xf32> -> vector<4x4xf32>
    %45 = vector.extract_strided_slice %10 {offsets = [0, 0], sizes = [16, 4], strides = [1, 1]} : vector<16x16xf32> to vector<16x4xf32>
    %cst_20 = arith.constant dense<0.000000e+00> : vector<16x4xf32>
    %46 = tpu.matmul %45, %44, %cst_20 {dimension_numbers = #tpu.dot_dimension_numbers<[1], [0], [0], [1], [0, 0, 1, 1], [], []>} : vector<16x4xf32>, vector<4x4xf32>, vector<16x4xf32> -> vector<16x4xf32>
    %47 = arith.addf %11, %46 : vector<16x4xf32>
    %48 = vector.extract_strided_slice %5 {offsets = [4, 0], sizes = [4, 4], strides = [1, 1]} : vector<16x8xf32> to vector<4x4xf32>
    %49 = arith.mulf %48, %48 : vector<4x4xf32>
    %cst_21 = arith.constant dense<0.000000e+00> : vector<4xf32>
    %50 = vector.multi_reduction <add>, %49, %cst_21 [1] : vector<4x4xf32> to vector<4xf32>
    %51 = vector.shape_cast %50 : vector<4xf32> to vector<4x1xf32>
    %52 = math.sqrt %51 : vector<4x1xf32>
    %cst_22 = arith.constant 9.99999996E-13 : f32
    %53 = vector.broadcast %cst_22 : f32 to vector<4x1xf32>
    %54 = arith.maximumf %52, %53 : vector<4x1xf32>
    %55 = vector.broadcast %54 : vector<4x1xf32> to vector<4x4xf32>
    %56 = arith.divf %48, %55 : vector<4x4xf32>
    %57 = vector.extract_strided_slice %8 {offsets = [4, 0], sizes = [4, 4], strides = [1, 1]} : vector<16x8xf32> to vector<4x4xf32>
    %58 = arith.mulf %57, %57 : vector<4x4xf32>
    %cst_23 = arith.constant dense<0.000000e+00> : vector<4xf32>
    %59 = vector.multi_reduction <add>, %58, %cst_23 [1] : vector<4x4xf32> to vector<4xf32>
    %60 = vector.shape_cast %59 : vector<4xf32> to vector<4x1xf32>
    %61 = math.sqrt %60 : vector<4x1xf32>
    %cst_24 = arith.constant 9.99999996E-13 : f32
    %62 = vector.broadcast %cst_24 : f32 to vector<4x1xf32>
    %63 = arith.maximumf %61, %62 : vector<4x1xf32>
    %64 = vector.broadcast %63 : vector<4x1xf32> to vector<4x4xf32>
    %65 = arith.divf %57, %64 : vector<4x4xf32>
    "tpu.trace_start"() <{level = 10 : i32, message = "cs,ds->cd"}> : () -> ()
    %cst_25 = arith.constant dense<0.000000e+00> : vector<4x4xf32>
    %66 = tpu.matmul %56, %65, %cst_25 {dimension_numbers = #tpu.dot_dimension_numbers<[1], [1], [0], [0], [0, 0, 1, 0], [], []>} : vector<4x4xf32>, vector<4x4xf32>, vector<4x4xf32> -> vector<4x4xf32>
    "tpu.trace_stop"() : () -> ()
    %c1 = arith.constant 1 : index
    %67 = memref.load %arg0[%c1] : memref<4xf32, #tpu.memory_space<smem>>
    %68 = vector.broadcast %67 : f32 to vector<4x4xf32>
    %69 = arith.mulf %66, %68 : vector<4x4xf32>
    %cst_26 = arith.constant dense<0xFF800000> : vector<4xf32>
    %70 = vector.multi_reduction <maximumf>, %69, %cst_26 [1] : vector<4x4xf32> to vector<4xf32>
    %71 = vector.shape_cast %70 : vector<4xf32> to vector<4x1xf32>
    %72 = vector.broadcast %71 : vector<4x1xf32> to vector<4x4xf32>
    %73 = arith.subf %69, %72 : vector<4x4xf32>
    %74 = math.exp %73 : vector<4x4xf32>
    %cst_27 = arith.constant dense<0.000000e+00> : vector<4xf32>
    %75 = vector.multi_reduction <add>, %74, %cst_27 [1] : vector<4x4xf32> to vector<4xf32>
    %76 = vector.shape_cast %75 : vector<4xf32> to vector<4x1xf32>
    %77 = vector.broadcast %76 : vector<4x1xf32> to vector<4x4xf32>
    %78 = arith.divf %74, %77 : vector<4x4xf32>
    %79 = vector.extract_strided_slice %9 {offsets = [4, 0], sizes = [4, 4], strides = [1, 1]} : vector<16x8xf32> to vector<4x4xf32>
    %cst_28 = arith.constant dense<0.000000e+00> : vector<4x4xf32>
    %80 = tpu.matmul %78, %79, %cst_28 {dimension_numbers = #tpu.dot_dimension_numbers<[1], [0], [0], [1], [0, 0, 1, 1], [], []>} : vector<4x4xf32>, vector<4x4xf32>, vector<4x4xf32> -> vector<4x4xf32>
    %81 = vector.extract_strided_slice %10 {offsets = [0, 4], sizes = [16, 4], strides = [1, 1]} : vector<16x16xf32> to vector<16x4xf32>
    %cst_29 = arith.constant dense<0.000000e+00> : vector<16x4xf32>
    %82 = tpu.matmul %81, %80, %cst_29 {dimension_numbers = #tpu.dot_dimension_numbers<[1], [0], [0], [1], [0, 0, 1, 1], [], []>} : vector<16x4xf32>, vector<4x4xf32>, vector<16x4xf32> -> vector<16x4xf32>
    %83 = arith.addf %47, %82 : vector<16x4xf32>
    %84 = vector.extract_strided_slice %5 {offsets = [8, 0], sizes = [4, 4], strides = [1, 1]} : vector<16x8xf32> to vector<4x4xf32>
    %85 = arith.mulf %84, %84 : vector<4x4xf32>
    %cst_30 = arith.constant dense<0.000000e+00> : vector<4xf32>
    %86 = vector.multi_reduction <add>, %85, %cst_30 [1] : vector<4x4xf32> to vector<4xf32>
    %87 = vector.shape_cast %86 : vector<4xf32> to vector<4x1xf32>
    %88 = math.sqrt %87 : vector<4x1xf32>
    %cst_31 = arith.constant 9.99999996E-13 : f32
    %89 = vector.broadcast %cst_31 : f32 to vector<4x1xf32>
    %90 = arith.maximumf %88, %89 : vector<4x1xf32>
    %91 = vector.broadcast %90 : vector<4x1xf32> to vector<4x4xf32>
    %92 = arith.divf %84, %91 : vector<4x4xf32>
    %93 = vector.extract_strided_slice %8 {offsets = [8, 0], sizes = [4, 4], strides = [1, 1]} : vector<16x8xf32> to vector<4x4xf32>
    %94 = arith.mulf %93, %93 : vector<4x4xf32>
    %cst_32 = arith.constant dense<0.000000e+00> : vector<4xf32>
    %95 = vector.multi_reduction <add>, %94, %cst_32 [1] : vector<4x4xf32> to vector<4xf32>
    %96 = vector.shape_cast %95 : vector<4xf32> to vector<4x1xf32>
    %97 = math.sqrt %96 : vector<4x1xf32>
    %cst_33 = arith.constant 9.99999996E-13 : f32
    %98 = vector.broadcast %cst_33 : f32 to vector<4x1xf32>
    %99 = arith.maximumf %97, %98 : vector<4x1xf32>
    %100 = vector.broadcast %99 : vector<4x1xf32> to vector<4x4xf32>
    %101 = arith.divf %93, %100 : vector<4x4xf32>
    "tpu.trace_start"() <{level = 10 : i32, message = "cs,ds->cd"}> : () -> ()
    %cst_34 = arith.constant dense<0.000000e+00> : vector<4x4xf32>
    %102 = tpu.matmul %92, %101, %cst_34 {dimension_numbers = #tpu.dot_dimension_numbers<[1], [1], [0], [0], [0, 0, 1, 0], [], []>} : vector<4x4xf32>, vector<4x4xf32>, vector<4x4xf32> -> vector<4x4xf32>
    "tpu.trace_stop"() : () -> ()
    %c2 = arith.constant 2 : index
    %103 = memref.load %arg0[%c2] : memref<4xf32, #tpu.memory_space<smem>>
    %104 = vector.broadcast %103 : f32 to vector<4x4xf32>
    %105 = arith.mulf %102, %104 : vector<4x4xf32>
    %cst_35 = arith.constant dense<0xFF800000> : vector<4xf32>
    %106 = vector.multi_reduction <maximumf>, %105, %cst_35 [1] : vector<4x4xf32> to vector<4xf32>
    %107 = vector.shape_cast %106 : vector<4xf32> to vector<4x1xf32>
    %108 = vector.broadcast %107 : vector<4x1xf32> to vector<4x4xf32>
    %109 = arith.subf %105, %108 : vector<4x4xf32>
    %110 = math.exp %109 : vector<4x4xf32>
    %cst_36 = arith.constant dense<0.000000e+00> : vector<4xf32>
    %111 = vector.multi_reduction <add>, %110, %cst_36 [1] : vector<4x4xf32> to vector<4xf32>
    %112 = vector.shape_cast %111 : vector<4xf32> to vector<4x1xf32>
    %113 = vector.broadcast %112 : vector<4x1xf32> to vector<4x4xf32>
    %114 = arith.divf %110, %113 : vector<4x4xf32>
    %115 = vector.extract_strided_slice %9 {offsets = [8, 0], sizes = [4, 4], strides = [1, 1]} : vector<16x8xf32> to vector<4x4xf32>
    %cst_37 = arith.constant dense<0.000000e+00> : vector<4x4xf32>
    %116 = tpu.matmul %114, %115, %cst_37 {dimension_numbers = #tpu.dot_dimension_numbers<[1], [0], [0], [1], [0, 0, 1, 1], [], []>} : vector<4x4xf32>, vector<4x4xf32>, vector<4x4xf32> -> vector<4x4xf32>
    %117 = vector.extract_strided_slice %10 {offsets = [0, 8], sizes = [16, 4], strides = [1, 1]} : vector<16x16xf32> to vector<16x4xf32>
    %cst_38 = arith.constant dense<0.000000e+00> : vector<16x4xf32>
    %118 = tpu.matmul %117, %116, %cst_38 {dimension_numbers = #tpu.dot_dimension_numbers<[1], [0], [0], [1], [0, 0, 1, 1], [], []>} : vector<16x4xf32>, vector<4x4xf32>, vector<16x4xf32> -> vector<16x4xf32>
    %119 = arith.addf %83, %118 : vector<16x4xf32>
    %120 = vector.extract_strided_slice %5 {offsets = [12, 0], sizes = [4, 4], strides = [1, 1]} : vector<16x8xf32> to vector<4x4xf32>
    %121 = arith.mulf %120, %120 : vector<4x4xf32>
    %cst_39 = arith.constant dense<0.000000e+00> : vector<4xf32>
    %122 = vector.multi_reduction <add>, %121, %cst_39 [1] : vector<4x4xf32> to vector<4xf32>
    %123 = vector.shape_cast %122 : vector<4xf32> to vector<4x1xf32>
    %124 = math.sqrt %123 : vector<4x1xf32>
    %cst_40 = arith.constant 9.99999996E-13 : f32
    %125 = vector.broadcast %cst_40 : f32 to vector<4x1xf32>
    %126 = arith.maximumf %124, %125 : vector<4x1xf32>
    %127 = vector.broadcast %126 : vector<4x1xf32> to vector<4x4xf32>
    %128 = arith.divf %120, %127 : vector<4x4xf32>
    %129 = vector.extract_strided_slice %8 {offsets = [12, 0], sizes = [4, 4], strides = [1, 1]} : vector<16x8xf32> to vector<4x4xf32>
    %130 = arith.mulf %129, %129 : vector<4x4xf32>
    %cst_41 = arith.constant dense<0.000000e+00> : vector<4xf32>
    %131 = vector.multi_reduction <add>, %130, %cst_41 [1] : vector<4x4xf32> to vector<4xf32>
    %132 = vector.shape_cast %131 : vector<4xf32> to vector<4x1xf32>
    %133 = math.sqrt %132 : vector<4x1xf32>
    %cst_42 = arith.constant 9.99999996E-13 : f32
    %134 = vector.broadcast %cst_42 : f32 to vector<4x1xf32>
    %135 = arith.maximumf %133, %134 : vector<4x1xf32>
    %136 = vector.broadcast %135 : vector<4x1xf32> to vector<4x4xf32>
    %137 = arith.divf %129, %136 : vector<4x4xf32>
    "tpu.trace_start"() <{level = 10 : i32, message = "cs,ds->cd"}> : () -> ()
    %cst_43 = arith.constant dense<0.000000e+00> : vector<4x4xf32>
    %138 = tpu.matmul %128, %137, %cst_43 {dimension_numbers = #tpu.dot_dimension_numbers<[1], [1], [0], [0], [0, 0, 1, 0], [], []>} : vector<4x4xf32>, vector<4x4xf32>, vector<4x4xf32> -> vector<4x4xf32>
    "tpu.trace_stop"() : () -> ()
    %c3 = arith.constant 3 : index
    %139 = memref.load %arg0[%c3] : memref<4xf32, #tpu.memory_space<smem>>
    %140 = vector.broadcast %139 : f32 to vector<4x4xf32>
    %141 = arith.mulf %138, %140 : vector<4x4xf32>
    %cst_44 = arith.constant dense<0xFF800000> : vector<4xf32>
    %142 = vector.multi_reduction <maximumf>, %141, %cst_44 [1] : vector<4x4xf32> to vector<4xf32>
    %143 = vector.shape_cast %142 : vector<4xf32> to vector<4x1xf32>
    %144 = vector.broadcast %143 : vector<4x1xf32> to vector<4x4xf32>
    %145 = arith.subf %141, %144 : vector<4x4xf32>
    %146 = math.exp %145 : vector<4x4xf32>
    %cst_45 = arith.constant dense<0.000000e+00> : vector<4xf32>
    %147 = vector.multi_reduction <add>, %146, %cst_45 [1] : vector<4x4xf32> to vector<4xf32>
    %148 = vector.shape_cast %147 : vector<4xf32> to vector<4x1xf32>
    %149 = vector.broadcast %148 : vector<4x1xf32> to vector<4x4xf32>
    %150 = arith.divf %146, %149 : vector<4x4xf32>
    %151 = vector.extract_strided_slice %9 {offsets = [12, 0], sizes = [4, 4], strides = [1, 1]} : vector<16x8xf32> to vector<4x4xf32>
    %cst_46 = arith.constant dense<0.000000e+00> : vector<4x4xf32>
    %152 = tpu.matmul %150, %151, %cst_46 {dimension_numbers = #tpu.dot_dimension_numbers<[1], [0], [0], [1], [0, 0, 1, 1], [], []>} : vector<4x4xf32>, vector<4x4xf32>, vector<4x4xf32> -> vector<4x4xf32>
    %153 = vector.extract_strided_slice %10 {offsets = [0, 12], sizes = [16, 4], strides = [1, 1]} : vector<16x16xf32> to vector<16x4xf32>
    %cst_47 = arith.constant dense<0.000000e+00> : vector<16x4xf32>
    %154 = tpu.matmul %153, %152, %cst_47 {dimension_numbers = #tpu.dot_dimension_numbers<[1], [0], [0], [1], [0, 0, 1, 1], [], []>} : vector<16x4xf32>, vector<4x4xf32>, vector<16x4xf32> -> vector<16x4xf32>
    %155 = arith.addf %119, %154 : vector<16x4xf32>
    %cst_48 = arith.constant 0.000000e+00 : f32
    %156 = vector.broadcast %cst_48 : f32 to vector<16x4xf32>
    %157 = vector.extract_strided_slice %5 {offsets = [0, 4], sizes = [4, 4], strides = [1, 1]} : vector<16x8xf32> to vector<4x4xf32>
    %158 = arith.mulf %157, %157 : vector<4x4xf32>
    %cst_49 = arith.constant dense<0.000000e+00> : vector<4xf32>
    %159 = vector.multi_reduction <add>, %158, %cst_49 [1] : vector<4x4xf32> to vector<4xf32>
    %160 = vector.shape_cast %159 : vector<4xf32> to vector<4x1xf32>
    %161 = math.sqrt %160 : vector<4x1xf32>
    %cst_50 = arith.constant 9.99999996E-13 : f32
    %162 = vector.broadcast %cst_50 : f32 to vector<4x1xf32>
    %163 = arith.maximumf %161, %162 : vector<4x1xf32>
    %164 = vector.broadcast %163 : vector<4x1xf32> to vector<4x4xf32>
    %165 = arith.divf %157, %164 : vector<4x4xf32>
    %166 = vector.extract_strided_slice %8 {offsets = [0, 4], sizes = [4, 4], strides = [1, 1]} : vector<16x8xf32> to vector<4x4xf32>
    %167 = arith.mulf %166, %166 : vector<4x4xf32>
    %cst_51 = arith.constant dense<0.000000e+00> : vector<4xf32>
    %168 = vector.multi_reduction <add>, %167, %cst_51 [1] : vector<4x4xf32> to vector<4xf32>
    %169 = vector.shape_cast %168 : vector<4xf32> to vector<4x1xf32>
    %170 = math.sqrt %169 : vector<4x1xf32>
    %cst_52 = arith.constant 9.99999996E-13 : f32
    %171 = vector.broadcast %cst_52 : f32 to vector<4x1xf32>
    %172 = arith.maximumf %170, %171 : vector<4x1xf32>
    %173 = vector.broadcast %172 : vector<4x1xf32> to vector<4x4xf32>
    %174 = arith.divf %166, %173 : vector<4x4xf32>
    "tpu.trace_start"() <{level = 10 : i32, message = "cs,ds->cd"}> : () -> ()
    %cst_53 = arith.constant dense<0.000000e+00> : vector<4x4xf32>
    %175 = tpu.matmul %165, %174, %cst_53 {dimension_numbers = #tpu.dot_dimension_numbers<[1], [1], [0], [0], [0, 0, 1, 0], [], []>} : vector<4x4xf32>, vector<4x4xf32>, vector<4x4xf32> -> vector<4x4xf32>
    "tpu.trace_stop"() : () -> ()
    %c0_54 = arith.constant 0 : index
    %176 = memref.load %arg0[%c0_54] : memref<4xf32, #tpu.memory_space<smem>>
    %177 = vector.broadcast %176 : f32 to vector<4x4xf32>
    %178 = arith.mulf %175, %177 : vector<4x4xf32>
    %cst_55 = arith.constant dense<0xFF800000> : vector<4xf32>
    %179 = vector.multi_reduction <maximumf>, %178, %cst_55 [1] : vector<4x4xf32> to vector<4xf32>
    %180 = vector.shape_cast %179 : vector<4xf32> to vector<4x1xf32>
    %181 = vector.broadcast %180 : vector<4x1xf32> to vector<4x4xf32>
    %182 = arith.subf %178, %181 : vector<4x4xf32>
    %183 = math.exp %182 : vector<4x4xf32>
    %cst_56 = arith.constant dense<0.000000e+00> : vector<4xf32>
    %184 = vector.multi_reduction <add>, %183, %cst_56 [1] : vector<4x4xf32> to vector<4xf32>
    %185 = vector.shape_cast %184 : vector<4xf32> to vector<4x1xf32>
    %186 = vector.broadcast %185 : vector<4x1xf32> to vector<4x4xf32>
    %187 = arith.divf %183, %186 : vector<4x4xf32>
    %188 = vector.extract_strided_slice %9 {offsets = [0, 4], sizes = [4, 4], strides = [1, 1]} : vector<16x8xf32> to vector<4x4xf32>
    %cst_57 = arith.constant dense<0.000000e+00> : vector<4x4xf32>
    %189 = tpu.matmul %187, %188, %cst_57 {dimension_numbers = #tpu.dot_dimension_numbers<[1], [0], [0], [1], [0, 0, 1, 1], [], []>} : vector<4x4xf32>, vector<4x4xf32>, vector<4x4xf32> -> vector<4x4xf32>
    %190 = vector.extract_strided_slice %10 {offsets = [0, 0], sizes = [16, 4], strides = [1, 1]} : vector<16x16xf32> to vector<16x4xf32>
    %cst_58 = arith.constant dense<0.000000e+00> : vector<16x4xf32>
    %191 = tpu.matmul %190, %189, %cst_58 {dimension_numbers = #tpu.dot_dimension_numbers<[1], [0], [0], [1], [0, 0, 1, 1], [], []>} : vector<16x4xf32>, vector<4x4xf32>, vector<16x4xf32> -> vector<16x4xf32>
    %192 = arith.addf %156, %191 : vector<16x4xf32>
    %193 = vector.extract_strided_slice %5 {offsets = [4, 4], sizes = [4, 4], strides = [1, 1]} : vector<16x8xf32> to vector<4x4xf32>
    %194 = arith.mulf %193, %193 : vector<4x4xf32>
    %cst_59 = arith.constant dense<0.000000e+00> : vector<4xf32>
    %195 = vector.multi_reduction <add>, %194, %cst_59 [1] : vector<4x4xf32> to vector<4xf32>
    %196 = vector.shape_cast %195 : vector<4xf32> to vector<4x1xf32>
    %197 = math.sqrt %196 : vector<4x1xf32>
    %cst_60 = arith.constant 9.99999996E-13 : f32
    %198 = vector.broadcast %cst_60 : f32 to vector<4x1xf32>
    %199 = arith.maximumf %197, %198 : vector<4x1xf32>
    %200 = vector.broadcast %199 : vector<4x1xf32> to vector<4x4xf32>
    %201 = arith.divf %193, %200 : vector<4x4xf32>
    %202 = vector.extract_strided_slice %8 {offsets = [4, 4], sizes = [4, 4], strides = [1, 1]} : vector<16x8xf32> to vector<4x4xf32>
    %203 = arith.mulf %202, %202 : vector<4x4xf32>
    %cst_61 = arith.constant dense<0.000000e+00> : vector<4xf32>
    %204 = vector.multi_reduction <add>, %203, %cst_61 [1] : vector<4x4xf32> to vector<4xf32>
    %205 = vector.shape_cast %204 : vector<4xf32> to vector<4x1xf32>
    %206 = math.sqrt %205 : vector<4x1xf32>
    %cst_62 = arith.constant 9.99999996E-13 : f32
    %207 = vector.broadcast %cst_62 : f32 to vector<4x1xf32>
    %208 = arith.maximumf %206, %207 : vector<4x1xf32>
    %209 = vector.broadcast %208 : vector<4x1xf32> to vector<4x4xf32>
    %210 = arith.divf %202, %209 : vector<4x4xf32>
    "tpu.trace_start"() <{level = 10 : i32, message = "cs,ds->cd"}> : () -> ()
    %cst_63 = arith.constant dense<0.000000e+00> : vector<4x4xf32>
    %211 = tpu.matmul %201, %210, %cst_63 {dimension_numbers = #tpu.dot_dimension_numbers<[1], [1], [0], [0], [0, 0, 1, 0], [], []>} : vector<4x4xf32>, vector<4x4xf32>, vector<4x4xf32> -> vector<4x4xf32>
    "tpu.trace_stop"() : () -> ()
    %c1_64 = arith.constant 1 : index
    %212 = memref.load %arg0[%c1_64] : memref<4xf32, #tpu.memory_space<smem>>
    %213 = vector.broadcast %212 : f32 to vector<4x4xf32>
    %214 = arith.mulf %211, %213 : vector<4x4xf32>
    %cst_65 = arith.constant dense<0xFF800000> : vector<4xf32>
    %215 = vector.multi_reduction <maximumf>, %214, %cst_65 [1] : vector<4x4xf32> to vector<4xf32>
    %216 = vector.shape_cast %215 : vector<4xf32> to vector<4x1xf32>
    %217 = vector.broadcast %216 : vector<4x1xf32> to vector<4x4xf32>
    %218 = arith.subf %214, %217 : vector<4x4xf32>
    %219 = math.exp %218 : vector<4x4xf32>
    %cst_66 = arith.constant dense<0.000000e+00> : vector<4xf32>
    %220 = vector.multi_reduction <add>, %219, %cst_66 [1] : vector<4x4xf32> to vector<4xf32>
    %221 = vector.shape_cast %220 : vector<4xf32> to vector<4x1xf32>
    %222 = vector.broadcast %221 : vector<4x1xf32> to vector<4x4xf32>
    %223 = arith.divf %219, %222 : vector<4x4xf32>
    %224 = vector.extract_strided_slice %9 {offsets = [4, 4], sizes = [4, 4], strides = [1, 1]} : vector<16x8xf32> to vector<4x4xf32>
    %cst_67 = arith.constant dense<0.000000e+00> : vector<4x4xf32>
    %225 = tpu.matmul %223, %224, %cst_67 {dimension_numbers = #tpu.dot_dimension_numbers<[1], [0], [0], [1], [0, 0, 1, 1], [], []>} : vector<4x4xf32>, vector<4x4xf32>, vector<4x4xf32> -> vector<4x4xf32>
    %226 = vector.extract_strided_slice %10 {offsets = [0, 4], sizes = [16, 4], strides = [1, 1]} : vector<16x16xf32> to vector<16x4xf32>
    %cst_68 = arith.constant dense<0.000000e+00> : vector<16x4xf32>
    %227 = tpu.matmul %226, %225, %cst_68 {dimension_numbers = #tpu.dot_dimension_numbers<[1], [0], [0], [1], [0, 0, 1, 1], [], []>} : vector<16x4xf32>, vector<4x4xf32>, vector<16x4xf32> -> vector<16x4xf32>
    %228 = arith.addf %192, %227 : vector<16x4xf32>
    %229 = vector.extract_strided_slice %5 {offsets = [8, 4], sizes = [4, 4], strides = [1, 1]} : vector<16x8xf32> to vector<4x4xf32>
    %230 = arith.mulf %229, %229 : vector<4x4xf32>
    %cst_69 = arith.constant dense<0.000000e+00> : vector<4xf32>
    %231 = vector.multi_reduction <add>, %230, %cst_69 [1] : vector<4x4xf32> to vector<4xf32>
    %232 = vector.shape_cast %231 : vector<4xf32> to vector<4x1xf32>
    %233 = math.sqrt %232 : vector<4x1xf32>
    %cst_70 = arith.constant 9.99999996E-13 : f32
    %234 = vector.broadcast %cst_70 : f32 to vector<4x1xf32>
    %235 = arith.maximumf %233, %234 : vector<4x1xf32>
    %236 = vector.broadcast %235 : vector<4x1xf32> to vector<4x4xf32>
    %237 = arith.divf %229, %236 : vector<4x4xf32>
    %238 = vector.extract_strided_slice %8 {offsets = [8, 4], sizes = [4, 4], strides = [1, 1]} : vector<16x8xf32> to vector<4x4xf32>
    %239 = arith.mulf %238, %238 : vector<4x4xf32>
    %cst_71 = arith.constant dense<0.000000e+00> : vector<4xf32>
    %240 = vector.multi_reduction <add>, %239, %cst_71 [1] : vector<4x4xf32> to vector<4xf32>
    %241 = vector.shape_cast %240 : vector<4xf32> to vector<4x1xf32>
    %242 = math.sqrt %241 : vector<4x1xf32>
    %cst_72 = arith.constant 9.99999996E-13 : f32
    %243 = vector.broadcast %cst_72 : f32 to vector<4x1xf32>
    %244 = arith.maximumf %242, %243 : vector<4x1xf32>
    %245 = vector.broadcast %244 : vector<4x1xf32> to vector<4x4xf32>
    %246 = arith.divf %238, %245 : vector<4x4xf32>
    "tpu.trace_start"() <{level = 10 : i32, message = "cs,ds->cd"}> : () -> ()
    %cst_73 = arith.constant dense<0.000000e+00> : vector<4x4xf32>
    %247 = tpu.matmul %237, %246, %cst_73 {dimension_numbers = #tpu.dot_dimension_numbers<[1], [1], [0], [0], [0, 0, 1, 0], [], []>} : vector<4x4xf32>, vector<4x4xf32>, vector<4x4xf32> -> vector<4x4xf32>
    "tpu.trace_stop"() : () -> ()
    %c2_74 = arith.constant 2 : index
    %248 = memref.load %arg0[%c2_74] : memref<4xf32, #tpu.memory_space<smem>>
    %249 = vector.broadcast %248 : f32 to vector<4x4xf32>
    %250 = arith.mulf %247, %249 : vector<4x4xf32>
    %cst_75 = arith.constant dense<0xFF800000> : vector<4xf32>
    %251 = vector.multi_reduction <maximumf>, %250, %cst_75 [1] : vector<4x4xf32> to vector<4xf32>
    %252 = vector.shape_cast %251 : vector<4xf32> to vector<4x1xf32>
    %253 = vector.broadcast %252 : vector<4x1xf32> to vector<4x4xf32>
    %254 = arith.subf %250, %253 : vector<4x4xf32>
    %255 = math.exp %254 : vector<4x4xf32>
    %cst_76 = arith.constant dense<0.000000e+00> : vector<4xf32>
    %256 = vector.multi_reduction <add>, %255, %cst_76 [1] : vector<4x4xf32> to vector<4xf32>
    %257 = vector.shape_cast %256 : vector<4xf32> to vector<4x1xf32>
    %258 = vector.broadcast %257 : vector<4x1xf32> to vector<4x4xf32>
    %259 = arith.divf %255, %258 : vector<4x4xf32>
    %260 = vector.extract_strided_slice %9 {offsets = [8, 4], sizes = [4, 4], strides = [1, 1]} : vector<16x8xf32> to vector<4x4xf32>
    %cst_77 = arith.constant dense<0.000000e+00> : vector<4x4xf32>
    %261 = tpu.matmul %259, %260, %cst_77 {dimension_numbers = #tpu.dot_dimension_numbers<[1], [0], [0], [1], [0, 0, 1, 1], [], []>} : vector<4x4xf32>, vector<4x4xf32>, vector<4x4xf32> -> vector<4x4xf32>
    %262 = vector.extract_strided_slice %10 {offsets = [0, 8], sizes = [16, 4], strides = [1, 1]} : vector<16x16xf32> to vector<16x4xf32>
    %cst_78 = arith.constant dense<0.000000e+00> : vector<16x4xf32>
    %263 = tpu.matmul %262, %261, %cst_78 {dimension_numbers = #tpu.dot_dimension_numbers<[1], [0], [0], [1], [0, 0, 1, 1], [], []>} : vector<16x4xf32>, vector<4x4xf32>, vector<16x4xf32> -> vector<16x4xf32>
    %264 = arith.addf %228, %263 : vector<16x4xf32>
    %265 = vector.extract_strided_slice %5 {offsets = [12, 4], sizes = [4, 4], strides = [1, 1]} : vector<16x8xf32> to vector<4x4xf32>
    %266 = arith.mulf %265, %265 : vector<4x4xf32>
    %cst_79 = arith.constant dense<0.000000e+00> : vector<4xf32>
    %267 = vector.multi_reduction <add>, %266, %cst_79 [1] : vector<4x4xf32> to vector<4xf32>
    %268 = vector.shape_cast %267 : vector<4xf32> to vector<4x1xf32>
    %269 = math.sqrt %268 : vector<4x1xf32>
    %cst_80 = arith.constant 9.99999996E-13 : f32
    %270 = vector.broadcast %cst_80 : f32 to vector<4x1xf32>
    %271 = arith.maximumf %269, %270 : vector<4x1xf32>
    %272 = vector.broadcast %271 : vector<4x1xf32> to vector<4x4xf32>
    %273 = arith.divf %265, %272 : vector<4x4xf32>
    %274 = vector.extract_strided_slice %8 {offsets = [12, 4], sizes = [4, 4], strides = [1, 1]} : vector<16x8xf32> to vector<4x4xf32>
    %275 = arith.mulf %274, %274 : vector<4x4xf32>
    %cst_81 = arith.constant dense<0.000000e+00> : vector<4xf32>
    %276 = vector.multi_reduction <add>, %275, %cst_81 [1] : vector<4x4xf32> to vector<4xf32>
    %277 = vector.shape_cast %276 : vector<4xf32> to vector<4x1xf32>
    %278 = math.sqrt %277 : vector<4x1xf32>
    %cst_82 = arith.constant 9.99999996E-13 : f32
    %279 = vector.broadcast %cst_82 : f32 to vector<4x1xf32>
    %280 = arith.maximumf %278, %279 : vector<4x1xf32>
    %281 = vector.broadcast %280 : vector<4x1xf32> to vector<4x4xf32>
    %282 = arith.divf %274, %281 : vector<4x4xf32>
    "tpu.trace_start"() <{level = 10 : i32, message = "cs,ds->cd"}> : () -> ()
    %cst_83 = arith.constant dense<0.000000e+00> : vector<4x4xf32>
    %283 = tpu.matmul %273, %282, %cst_83 {dimension_numbers = #tpu.dot_dimension_numbers<[1], [1], [0], [0], [0, 0, 1, 0], [], []>} : vector<4x4xf32>, vector<4x4xf32>, vector<4x4xf32> -> vector<4x4xf32>
    "tpu.trace_stop"() : () -> ()
    %c3_84 = arith.constant 3 : index
    %284 = memref.load %arg0[%c3_84] : memref<4xf32, #tpu.memory_space<smem>>
    %285 = vector.broadcast %284 : f32 to vector<4x4xf32>
    %286 = arith.mulf %283, %285 : vector<4x4xf32>
    %cst_85 = arith.constant dense<0xFF800000> : vector<4xf32>
    %287 = vector.multi_reduction <maximumf>, %286, %cst_85 [1] : vector<4x4xf32> to vector<4xf32>
    %288 = vector.shape_cast %287 : vector<4xf32> to vector<4x1xf32>
    %289 = vector.broadcast %288 : vector<4x1xf32> to vector<4x4xf32>
    %290 = arith.subf %286, %289 : vector<4x4xf32>
    %291 = math.exp %290 : vector<4x4xf32>
    %cst_86 = arith.constant dense<0.000000e+00> : vector<4xf32>
    %292 = vector.multi_reduction <add>, %291, %cst_86 [1] : vector<4x4xf32> to vector<4xf32>
    %293 = vector.shape_cast %292 : vector<4xf32> to vector<4x1xf32>
    %294 = vector.broadcast %293 : vector<4x1xf32> to vector<4x4xf32>
    %295 = arith.divf %291, %294 : vector<4x4xf32>
    %296 = vector.extract_strided_slice %9 {offsets = [12, 4], sizes = [4, 4], strides = [1, 1]} : vector<16x8xf32> to vector<4x4xf32>
    %cst_87 = arith.constant dense<0.000000e+00> : vector<4x4xf32>
    %297 = tpu.matmul %295, %296, %cst_87 {dimension_numbers = #tpu.dot_dimension_numbers<[1], [0], [0], [1], [0, 0, 1, 1], [], []>} : vector<4x4xf32>, vector<4x4xf32>, vector<4x4xf32> -> vector<4x4xf32>
    %298 = vector.extract_strided_slice %10 {offsets = [0, 12], sizes = [16, 4], strides = [1, 1]} : vector<16x16xf32> to vector<16x4xf32>
    %cst_88 = arith.constant dense<0.000000e+00> : vector<16x4xf32>
    %299 = tpu.matmul %298, %297, %cst_88 {dimension_numbers = #tpu.dot_dimension_numbers<[1], [0], [0], [1], [0, 0, 1, 1], [], []>} : vector<16x4xf32>, vector<4x4xf32>, vector<16x4xf32> -> vector<16x4xf32>
    %300 = arith.addf %264, %299 : vector<16x4xf32>
    %301 = tpu.concatenate %155, %300 in 1 : vector<16x4xf32>, vector<16x4xf32> -> vector<16x8xf32>
    %302 = tpu.concatenate %3, %301 in 0 : vector<8x8xf32>, vector<16x8xf32> -> vector<24x8xf32>
    %303 = arith.truncf %302 : vector<24x8xf32> to vector<24x8xbf16>
    %c0_89 = arith.constant 0 : index
    %c0_90 = arith.constant 0 : index
    %304 = vector.load %arg6[%c0_89, %c0_90] : memref<24x8xbf16, #tpu.memory_space<vmem>>, vector<24x8xbf16>
    tpu.vector_store %arg6[%c0_89, %c0_90], %303 {strides = array<i32>} : memref<24x8xbf16, #tpu.memory_space<vmem>>, vector<24x8xbf16>,
    return
  }
}

module attributes {stable_mosaic.version = 11 : i64} {
  func.func @_up_add_relu_kernel(%arg0: memref<48x4xbf16, #tpu.memory_space<vmem>>, %arg1: memref<4x16xbf16, #tpu.memory_space<vmem>>, %arg2: memref<48x16xbf16, #tpu.memory_space<vmem>>, %arg3: memref<48x16xbf16, #tpu.memory_space<vmem>>) attributes {dimension_semantics = [], scalar_prefetch = 0 : i64, scratch_operands = 0 : i64, tpu.core_type = #tpu.core_type<tc>} {
    %c0 = arith.constant 0 : index
    %c0_0 = arith.constant 0 : index
    %0 = vector.load %arg0[%c0, %c0_0] : memref<48x4xbf16, #tpu.memory_space<vmem>>, vector<48x4xbf16>
    %c0_1 = arith.constant 0 : index
    %c0_2 = arith.constant 0 : index
    %1 = vector.load %arg1[%c0_1, %c0_2] : memref<4x16xbf16, #tpu.memory_space<vmem>>, vector<4x16xbf16>
    %cst = arith.constant dense<0.000000e+00> : vector<48x16xf32>
    %2 = tpu.matmul %0, %1, %cst {dimension_numbers = #tpu.dot_dimension_numbers<[1], [0], [0], [1], [0, 0, 1, 1], [], []>} : vector<48x4xbf16>, vector<4x16xbf16>, vector<48x16xf32> -> vector<48x16xf32>
    %c0_3 = arith.constant 0 : index
    %c0_4 = arith.constant 0 : index
    %3 = vector.load %arg2[%c0_3, %c0_4] : memref<48x16xbf16, #tpu.memory_space<vmem>>, vector<48x16xbf16>
    %4 = arith.extf %3 : vector<48x16xbf16> to vector<48x16xf32>
    %5 = arith.addf %2, %4 : vector<48x16xf32>
    %cst_5 = arith.constant 0.000000e+00 : f32
    %6 = vector.broadcast %cst_5 : f32 to vector<48x16xf32>
    %7 = arith.maximumf %5, %6 : vector<48x16xf32>
    %8 = arith.truncf %7 : vector<48x16xf32> to vector<48x16xbf16>
    %c0_6 = arith.constant 0 : index
    %c0_7 = arith.constant 0 : index
    %9 = vector.load %arg3[%c0_6, %c0_7] : memref<48x16xbf16, #tpu.memory_space<vmem>>, vector<48x16xbf16>
    tpu.vector_store %arg3[%c0_6, %c0_7], %8 {strides = array<i32>} : memref<48x16xbf16, #tpu.memory_space<vmem>>, vector<48x16xbf16>,
    return
  }
}

module attributes {stable_mosaic.version = 11 : i64} {
  func.func @_conv_gemm_kernel(%arg0: i32, %arg1: memref<24x216xbf16, #tpu.memory_space<vmem>>, %arg2: memref<216x32xbf16, #tpu.memory_space<vmem>>, %arg3: memref<24x1xf32, #tpu.memory_space<vmem>>, %arg4: memref<24x32xbf16, #tpu.memory_space<vmem>>) attributes {dimension_semantics = [#tpu.dimension_semantics<parallel>], iteration_bounds = array<i64: 1>, scalar_prefetch = 0 : i64, scratch_operands = 0 : i64, tpu.core_type = #tpu.core_type<tc>, window_params = [{pipeline_mode = #tpu.pipeline_mode<synchronous>, transform_indices = @transform_0, window_bounds = array<i64: 24, 216>}, {transform_indices = @transform_1, window_bounds = array<i64: 216, 32>}, {pipeline_mode = #tpu.pipeline_mode<synchronous>, transform_indices = @transform_2, window_bounds = array<i64: 24, 1>}, {transform_indices = @transform_3, window_bounds = array<i64: 24, 32>}]} {
    %c0 = arith.constant 0 : index
    %c0_0 = arith.constant 0 : index
    %0 = vector.load %arg1[%c0, %c0_0] : memref<24x216xbf16, #tpu.memory_space<vmem>>, vector<24x216xbf16>
    %c0_1 = arith.constant 0 : index
    %c0_2 = arith.constant 0 : index
    %1 = vector.load %arg2[%c0_1, %c0_2] : memref<216x32xbf16, #tpu.memory_space<vmem>>, vector<216x32xbf16>
    %cst = arith.constant dense<0.000000e+00> : vector<24x32xf32>
    %2 = tpu.matmul %0, %1, %cst {dimension_numbers = #tpu.dot_dimension_numbers<[1], [0], [0], [1], [0, 0, 1, 1], [], []>} : vector<24x216xbf16>, vector<216x32xbf16>, vector<24x32xf32> -> vector<24x32xf32>
    %c0_3 = arith.constant 0 : index
    %c0_4 = arith.constant 0 : index
    %3 = vector.load %arg3[%c0_3, %c0_4] : memref<24x1xf32, #tpu.memory_space<vmem>>, vector<24x1xf32>
    %4 = vector.broadcast %3 : vector<24x1xf32> to vector<24x32xf32>
    %5 = arith.addf %2, %4 : vector<24x32xf32>
    %6 = arith.truncf %5 : vector<24x32xf32> to vector<24x32xbf16>
    %c0_5 = arith.constant 0 : index
    %c0_6 = arith.constant 0 : index
    %7 = vector.load %arg4[%c0_5, %c0_6] : memref<24x32xbf16, #tpu.memory_space<vmem>>, vector<24x32xbf16>
    tpu.vector_store %arg4[%c0_5, %c0_6], %6 {strides = array<i32>} : memref<24x32xbf16, #tpu.memory_space<vmem>>, vector<24x32xbf16>,
    return
  }
  func.func @transform_0(%arg0: i32) -> (i32, i32) {
    %c0_i32 = arith.constant 0 : i32
    %c0_i32_0 = arith.constant 0 : i32
    %c0_i32_1 = arith.constant 0 : i32
    return %c0_i32, %c0_i32_0 : i32, i32
  }
  func.func @transform_1(%arg0: i32) -> (i32, i32) {
    %c0_i32 = arith.constant 0 : i32
    %c0_i32_0 = arith.constant 0 : i32
    return %c0_i32, %arg0 : i32, i32
  }
  func.func @transform_2(%arg0: i32) -> (i32, i32) {
    %c0_i32 = arith.constant 0 : i32
    %c0_i32_0 = arith.constant 0 : i32
    %c0_i32_1 = arith.constant 0 : i32
    return %c0_i32, %c0_i32_0 : i32, i32
  }
  func.func @transform_3(%arg0: i32) -> (i32, i32) {
    %c0_i32 = arith.constant 0 : i32
    %c0_i32_0 = arith.constant 0 : i32
    return %c0_i32, %arg0 : i32, i32
  }
}

module attributes {stable_mosaic.version = 11 : i64} {
  func.func @_up_add_relu_kernel(%arg0: memref<48x16xbf16, #tpu.memory_space<vmem>>, %arg1: memref<16x64xbf16, #tpu.memory_space<vmem>>, %arg2: memref<48x64xbf16, #tpu.memory_space<vmem>>, %arg3: memref<48x64xbf16, #tpu.memory_space<vmem>>) attributes {dimension_semantics = [], scalar_prefetch = 0 : i64, scratch_operands = 0 : i64, tpu.core_type = #tpu.core_type<tc>} {
    %c0 = arith.constant 0 : index
    %c0_0 = arith.constant 0 : index
    %0 = vector.load %arg0[%c0, %c0_0] : memref<48x16xbf16, #tpu.memory_space<vmem>>, vector<48x16xbf16>
    %c0_1 = arith.constant 0 : index
    %c0_2 = arith.constant 0 : index
    %1 = vector.load %arg1[%c0_1, %c0_2] : memref<16x64xbf16, #tpu.memory_space<vmem>>, vector<16x64xbf16>
    %cst = arith.constant dense<0.000000e+00> : vector<48x64xf32>
    %2 = tpu.matmul %0, %1, %cst {dimension_numbers = #tpu.dot_dimension_numbers<[1], [0], [0], [1], [0, 0, 1, 1], [], []>} : vector<48x16xbf16>, vector<16x64xbf16>, vector<48x64xf32> -> vector<48x64xf32>
    %c0_3 = arith.constant 0 : index
    %c0_4 = arith.constant 0 : index
    %3 = vector.load %arg2[%c0_3, %c0_4] : memref<48x64xbf16, #tpu.memory_space<vmem>>, vector<48x64xbf16>
    %4 = arith.extf %3 : vector<48x64xbf16> to vector<48x64xf32>
    %5 = arith.addf %2, %4 : vector<48x64xf32>
    %cst_5 = arith.constant 0.000000e+00 : f32
    %6 = vector.broadcast %cst_5 : f32 to vector<48x64xf32>
    %7 = arith.maximumf %5, %6 : vector<48x64xf32>
    %8 = arith.truncf %7 : vector<48x64xf32> to vector<48x64xbf16>
    %c0_6 = arith.constant 0 : index
    %c0_7 = arith.constant 0 : index
    %9 = vector.load %arg3[%c0_6, %c0_7] : memref<48x64xbf16, #tpu.memory_space<vmem>>, vector<48x64xbf16>
    tpu.vector_store %arg3[%c0_6, %c0_7], %8 {strides = array<i32>} : memref<48x64xbf16, #tpu.memory_space<vmem>>, vector<48x64xbf16>,
    return
  }
}

module attributes {stable_mosaic.version = 11 : i64} {
  func.func @_conv_gemm_kernel(%arg0: i32, %arg1: memref<24x216xbf16, #tpu.memory_space<vmem>>, %arg2: memref<216x128xbf16, #tpu.memory_space<vmem>>, %arg3: memref<24x1xf32, #tpu.memory_space<vmem>>, %arg4: memref<24x128xbf16, #tpu.memory_space<vmem>>) attributes {dimension_semantics = [#tpu.dimension_semantics<parallel>], iteration_bounds = array<i64: 1>, scalar_prefetch = 0 : i64, scratch_operands = 0 : i64, tpu.core_type = #tpu.core_type<tc>, window_params = [{pipeline_mode = #tpu.pipeline_mode<synchronous>, transform_indices = @transform_0, window_bounds = array<i64: 24, 216>}, {transform_indices = @transform_1, window_bounds = array<i64: 216, 128>}, {pipeline_mode = #tpu.pipeline_mode<synchronous>, transform_indices = @transform_2, window_bounds = array<i64: 24, 1>}, {transform_indices = @transform_3, window_bounds = array<i64: 24, 128>}]} {
    %c0 = arith.constant 0 : index
    %c0_0 = arith.constant 0 : index
    %0 = vector.load %arg1[%c0, %c0_0] : memref<24x216xbf16, #tpu.memory_space<vmem>>, vector<24x216xbf16>
    %c0_1 = arith.constant 0 : index
    %c0_2 = arith.constant 0 : index
    %1 = vector.load %arg2[%c0_1, %c0_2] : memref<216x128xbf16, #tpu.memory_space<vmem>>, vector<216x128xbf16>
    %cst = arith.constant dense<0.000000e+00> : vector<24x128xf32>
    %2 = tpu.matmul %0, %1, %cst {dimension_numbers = #tpu.dot_dimension_numbers<[1], [0], [0], [1], [0, 0, 1, 1], [], []>} : vector<24x216xbf16>, vector<216x128xbf16>, vector<24x128xf32> -> vector<24x128xf32>
    %c0_3 = arith.constant 0 : index
    %c0_4 = arith.constant 0 : index
    %3 = vector.load %arg3[%c0_3, %c0_4] : memref<24x1xf32, #tpu.memory_space<vmem>>, vector<24x1xf32>
    %4 = vector.broadcast %3 : vector<24x1xf32> to vector<24x128xf32>
    %5 = arith.addf %2, %4 : vector<24x128xf32>
    %6 = arith.truncf %5 : vector<24x128xf32> to vector<24x128xbf16>
    %c0_5 = arith.constant 0 : index
    %c0_6 = arith.constant 0 : index
    %7 = vector.load %arg4[%c0_5, %c0_6] : memref<24x128xbf16, #tpu.memory_space<vmem>>, vector<24x128xbf16>
    tpu.vector_store %arg4[%c0_5, %c0_6], %6 {strides = array<i32>} : memref<24x128xbf16, #tpu.memory_space<vmem>>, vector<24x128xbf16>,
    return
  }
  func.func @transform_0(%arg0: i32) -> (i32, i32) {
    %c0_i32 = arith.constant 0 : i32
    %c0_i32_0 = arith.constant 0 : i32
    %c0_i32_1 = arith.constant 0 : i32
    return %c0_i32, %c0_i32_0 : i32, i32
  }
  func.func @transform_1(%arg0: i32) -> (i32, i32) {
    %c0_i32 = arith.constant 0 : i32
    %c0_i32_0 = arith.constant 0 : i32
    return %c0_i32, %arg0 : i32, i32
  }
  func.func @transform_2(%arg0: i32) -> (i32, i32) {
    %c0_i32 = arith.constant 0 : i32
    %c0_i32_0 = arith.constant 0 : i32
    %c0_i32_1 = arith.constant 0 : i32
    return %c0_i32, %c0_i32_0 : i32, i32
  }
  func.func @transform_3(%arg0: i32) -> (i32, i32) {
    %c0_i32 = arith.constant 0 : i32
    %c0_i32_0 = arith.constant 0 : i32
    return %c0_i32, %arg0 : i32, i32
  }
}

module attributes {stable_mosaic.version = 11 : i64} {
  func.func @_up_add_relu_kernel(%arg0: memref<48x64xbf16, #tpu.memory_space<vmem>>, %arg1: memref<64x256xbf16, #tpu.memory_space<vmem>>, %arg2: memref<48x256xbf16, #tpu.memory_space<vmem>>, %arg3: memref<48x256xbf16, #tpu.memory_space<vmem>>) attributes {dimension_semantics = [], scalar_prefetch = 0 : i64, scratch_operands = 0 : i64, tpu.core_type = #tpu.core_type<tc>} {
    %c0 = arith.constant 0 : index
    %c0_0 = arith.constant 0 : index
    %0 = vector.load %arg0[%c0, %c0_0] : memref<48x64xbf16, #tpu.memory_space<vmem>>, vector<48x64xbf16>
    %c0_1 = arith.constant 0 : index
    %c0_2 = arith.constant 0 : index
    %1 = vector.load %arg1[%c0_1, %c0_2] : memref<64x256xbf16, #tpu.memory_space<vmem>>, vector<64x256xbf16>
    %cst = arith.constant dense<0.000000e+00> : vector<48x256xf32>
    %2 = tpu.matmul %0, %1, %cst {dimension_numbers = #tpu.dot_dimension_numbers<[1], [0], [0], [1], [0, 0, 1, 1], [], []>} : vector<48x64xbf16>, vector<64x256xbf16>, vector<48x256xf32> -> vector<48x256xf32>
    %c0_3 = arith.constant 0 : index
    %c0_4 = arith.constant 0 : index
    %3 = vector.load %arg2[%c0_3, %c0_4] : memref<48x256xbf16, #tpu.memory_space<vmem>>, vector<48x256xbf16>
    %4 = arith.extf %3 : vector<48x256xbf16> to vector<48x256xf32>
    %5 = arith.addf %2, %4 : vector<48x256xf32>
    %cst_5 = arith.constant 0.000000e+00 : f32
    %6 = vector.broadcast %cst_5 : f32 to vector<48x256xf32>
    %7 = arith.maximumf %5, %6 : vector<48x256xf32>
    %8 = arith.truncf %7 : vector<48x256xf32> to vector<48x256xbf16>
    %c0_6 = arith.constant 0 : index
    %c0_7 = arith.constant 0 : index
    %9 = vector.load %arg3[%c0_6, %c0_7] : memref<48x256xbf16, #tpu.memory_space<vmem>>, vector<48x256xbf16>
    tpu.vector_store %arg3[%c0_6, %c0_7], %8 {strides = array<i32>} : memref<48x256xbf16, #tpu.memory_space<vmem>>, vector<48x256xbf16>,
    return
  }
}

module attributes {stable_mosaic.version = 11 : i64} {
  func.func @_conv_gemm_kernel(%arg0: i32, %arg1: memref<24x216xbf16, #tpu.memory_space<vmem>>, %arg2: memref<216x256xbf16, #tpu.memory_space<vmem>>, %arg3: memref<24x1xf32, #tpu.memory_space<vmem>>, %arg4: memref<24x256xbf16, #tpu.memory_space<vmem>>) attributes {dimension_semantics = [#tpu.dimension_semantics<parallel>], iteration_bounds = array<i64: 2>, scalar_prefetch = 0 : i64, scratch_operands = 0 : i64, tpu.core_type = #tpu.core_type<tc>, window_params = [{pipeline_mode = #tpu.pipeline_mode<synchronous>, transform_indices = @transform_0, window_bounds = array<i64: 24, 216>}, {transform_indices = @transform_1, window_bounds = array<i64: 216, 256>}, {pipeline_mode = #tpu.pipeline_mode<synchronous>, transform_indices = @transform_2, window_bounds = array<i64: 24, 1>}, {transform_indices = @transform_3, window_bounds = array<i64: 24, 256>}]} {
    %c0 = arith.constant 0 : index
    %c0_0 = arith.constant 0 : index
    %0 = vector.load %arg1[%c0, %c0_0] : memref<24x216xbf16, #tpu.memory_space<vmem>>, vector<24x216xbf16>
    %c0_1 = arith.constant 0 : index
    %c0_2 = arith.constant 0 : index
    %1 = vector.load %arg2[%c0_1, %c0_2] : memref<216x256xbf16, #tpu.memory_space<vmem>>, vector<216x256xbf16>
    %cst = arith.constant dense<0.000000e+00> : vector<24x256xf32>
    %2 = tpu.matmul %0, %1, %cst {dimension_numbers = #tpu.dot_dimension_numbers<[1], [0], [0], [1], [0, 0, 1, 1], [], []>} : vector<24x216xbf16>, vector<216x256xbf16>, vector<24x256xf32> -> vector<24x256xf32>
    %c0_3 = arith.constant 0 : index
    %c0_4 = arith.constant 0 : index
    %3 = vector.load %arg3[%c0_3, %c0_4] : memref<24x1xf32, #tpu.memory_space<vmem>>, vector<24x1xf32>
    %4 = vector.broadcast %3 : vector<24x1xf32> to vector<24x256xf32>
    %5 = arith.addf %2, %4 : vector<24x256xf32>
    %6 = arith.truncf %5 : vector<24x256xf32> to vector<24x256xbf16>
    %c0_5 = arith.constant 0 : index
    %c0_6 = arith.constant 0 : index
    %7 = vector.load %arg4[%c0_5, %c0_6] : memref<24x256xbf16, #tpu.memory_space<vmem>>, vector<24x256xbf16>
    tpu.vector_store %arg4[%c0_5, %c0_6], %6 {strides = array<i32>} : memref<24x256xbf16, #tpu.memory_space<vmem>>, vector<24x256xbf16>,
    return
  }
  func.func @transform_0(%arg0: i32) -> (i32, i32) {
    %c0_i32 = arith.constant 0 : i32
    %c0_i32_0 = arith.constant 0 : i32
    %c0_i32_1 = arith.constant 0 : i32
    return %c0_i32, %c0_i32_0 : i32, i32
  }
  func.func @transform_1(%arg0: i32) -> (i32, i32) {
    %c0_i32 = arith.constant 0 : i32
    %c0_i32_0 = arith.constant 0 : i32
    return %c0_i32, %arg0 : i32, i32
  }
  func.func @transform_2(%arg0: i32) -> (i32, i32) {
    %c0_i32 = arith.constant 0 : i32
    %c0_i32_0 = arith.constant 0 : i32
    %c0_i32_1 = arith.constant 0 : i32
    return %c0_i32, %c0_i32_0 : i32, i32
  }
  func.func @transform_3(%arg0: i32) -> (i32, i32) {
    %c0_i32 = arith.constant 0 : i32
    %c0_i32_0 = arith.constant 0 : i32
    return %c0_i32, %arg0 : i32, i32
  }
}

module attributes {stable_mosaic.version = 11 : i64} {
  func.func @_conv_gemm_kernel(%arg0: i32, %arg1: memref<24x216xbf16, #tpu.memory_space<vmem>>, %arg2: memref<216x256xbf16, #tpu.memory_space<vmem>>, %arg3: memref<24x1xf32, #tpu.memory_space<vmem>>, %arg4: memref<24x256xf32, #tpu.memory_space<vmem>>) attributes {dimension_semantics = [#tpu.dimension_semantics<parallel>], iteration_bounds = array<i64: 2>, scalar_prefetch = 0 : i64, scratch_operands = 0 : i64, tpu.core_type = #tpu.core_type<tc>, window_params = [{pipeline_mode = #tpu.pipeline_mode<synchronous>, transform_indices = @transform_0, window_bounds = array<i64: 24, 216>}, {transform_indices = @transform_1, window_bounds = array<i64: 216, 256>}, {pipeline_mode = #tpu.pipeline_mode<synchronous>, transform_indices = @transform_2, window_bounds = array<i64: 24, 1>}, {transform_indices = @transform_3, window_bounds = array<i64: 24, 256>}]} {
    %c0 = arith.constant 0 : index
    %c0_0 = arith.constant 0 : index
    %0 = vector.load %arg1[%c0, %c0_0] : memref<24x216xbf16, #tpu.memory_space<vmem>>, vector<24x216xbf16>
    %c0_1 = arith.constant 0 : index
    %c0_2 = arith.constant 0 : index
    %1 = vector.load %arg2[%c0_1, %c0_2] : memref<216x256xbf16, #tpu.memory_space<vmem>>, vector<216x256xbf16>
    %cst = arith.constant dense<0.000000e+00> : vector<24x256xf32>
    %2 = tpu.matmul %0, %1, %cst {dimension_numbers = #tpu.dot_dimension_numbers<[1], [0], [0], [1], [0, 0, 1, 1], [], []>} : vector<24x216xbf16>, vector<216x256xbf16>, vector<24x256xf32> -> vector<24x256xf32>
    %c0_3 = arith.constant 0 : index
    %c0_4 = arith.constant 0 : index
    %3 = vector.load %arg3[%c0_3, %c0_4] : memref<24x1xf32, #tpu.memory_space<vmem>>, vector<24x1xf32>
    %4 = vector.broadcast %3 : vector<24x1xf32> to vector<24x256xf32>
    %5 = arith.addf %2, %4 : vector<24x256xf32>
    %6 = math.tanh %5 : vector<24x256xf32>
    %c0_5 = arith.constant 0 : index
    %c0_6 = arith.constant 0 : index
    %7 = vector.load %arg4[%c0_5, %c0_6] : memref<24x256xf32, #tpu.memory_space<vmem>>, vector<24x256xf32>
    tpu.vector_store %arg4[%c0_5, %c0_6], %6 {strides = array<i32>} : memref<24x256xf32, #tpu.memory_space<vmem>>, vector<24x256xf32>,
    return
  }
  func.func @transform_0(%arg0: i32) -> (i32, i32) {
    %c0_i32 = arith.constant 0 : i32
    %c0_i32_0 = arith.constant 0 : i32
    %c0_i32_1 = arith.constant 0 : i32
    return %c0_i32, %c0_i32_0 : i32, i32
  }
  func.func @transform_1(%arg0: i32) -> (i32, i32) {
    %c0_i32 = arith.constant 0 : i32
    %c0_i32_0 = arith.constant 0 : i32
    return %c0_i32, %arg0 : i32, i32
  }
  func.func @transform_2(%arg0: i32) -> (i32, i32) {
    %c0_i32 = arith.constant 0 : i32
    %c0_i32_0 = arith.constant 0 : i32
    %c0_i32_1 = arith.constant 0 : i32
    return %c0_i32, %c0_i32_0 : i32, i32
  }
  func.func @transform_3(%arg0: i32) -> (i32, i32) {
    %c0_i32 = arith.constant 0 : i32
    %c0_i32_0 = arith.constant 0 : i32
    return %c0_i32, %arg0 : i32, i32
  }
}

</mosaic_0001>

<bundles_post_ra>
// kernel: denoiser_forward.14
= control target key start
LH: loop header
LB: loop body
LE: loop exit
PB: predicated region body
PF: predicated region fallthrough
CT: control target
= control target key end

     0   :  { %8 = vsyncpa [#allocation3], 0  ;;  %s662_s12 = smov 0   ;;  %s664_s13 = smov 0   ;;  %s776_s0 = inlined_call_operand.hbm [shape: bf16[24,27], index: 0, kind: input, shape index: {}]   ;;  %s777_s1 = inlined_call_operand.vmem [shape: bf16[27,512], index: 1, kind: input, shape index: {}]   ;;  %s778_s2 = inlined_call_operand.vmem [shape: f32[24,1], index: 2, kind: input, shape index: {}]   ;;  %s779_s3 = inlined_call_operand.vmem [shape: bf16[24,512], index: 3, kind: output, shape index: {}]  }
   0x1   :  { %s666_s14 = smov 0  }
   0x2 LB: > { %s678_s15 = sadd.s32 4294967295, %s635_s14   ;;  %s681_s16 = sadd.s32 1, %s635_s14   ;;  %s635_s14 = sphi %s666_s14, %s793_s14   ;;  %s631_s13 = sphi %s664_s13, %s792_s13   ;;  %s627_s12 = sphi %s662_s12, %s791_s12  }
   0x3   : > { %s39_s17 = ssub.s32 %s635_s14, %s681_s16  ;;  %s42_s18 = sadd.s32 1, %s631_s13 }
   0x4   : > { %p40_p0 = scmp.eq.s32.totalorder %s39_s17, 0  ;;  %p49_p1 = scmp.ne.s32.totalorder %s631_s13, %s627_s12 }
   0x5   : > { %p50_p2 = scmp.eq.s32.totalorder %s635_s14, 0  ;;  %p100_p3 = scmp.eq.s32.totalorder %s678_s15, 1 }
   0x6   : > { %s691_s19 = scalar_select %p40_p0, %s631_s13, %s42_s18  }
   0x7   : > { %p693_p4 = por %p50_p2, %p49_p1  ;;  %p697_p5 = por %p100_p3, %p49_p1 }
   0x8   : > { %p498_p6 = scmp.ge.s32.totalorder %s635_s14, 1  ;;  %p113_p7 = scmp.lt.s32.totalorder %s635_s14, 3 }
   0x9   : > { %s782_s20 = scalar_select %p693_p4, 1, 0 }
   0xa   : > { %s783_s21 = scalar_select %p697_p5, 1, 0 }
   0xb   : > { %p780_p8 = scmp.eq.s32.totalorder %s678_s15, 0  ;;  %p704_p9 = pnand %p498_p6, %p113_p7 }
   0xc   : > { %s637_s23 = smov [#allocation2]   ;;  %s581_s28 = scalar_lea.hbm %s776_s0, 192 }
   0xd   : > { %s784_s22 = scalar_select %p704_p9, 1, 0 }
   0xe   : > { %s125_s24 = sshll.u32 %s637_s23, 4  ;;  %p536_p10 = pneg %p704_p9  ;;  %s126_s24 = int_to_ptr.vmem [resolvable:$true] %s125_s24 }
   0xf   : > { %p582_p12 = scmp.ne.s32.totalorder %s776_s0, %s581_s28  ;;  %p588_p2 = scmp.lt.u32.totalorder %s581_s28, %s776_s0 }
  0x10   : > { %p712_p11 = pnand %p780_p8, %p536_p10 }
  0x12   : > { %p583_p13 = pneg %p712_p11 }
  0x14   : > { %p584_p0 = pnand %p583_p13, %p582_p12 }
  0x16   : > { %p585_p1 = pneg %p584_p0 }
  0x18   : > { %p590_p3 = pnand %p588_p2, %p585_p1 }
  0x1a   : > { %593 = shalt.err (!%p590_p3)
}
  0x1b   : > { %s594_s6 = scalar_lea.vmem %s126_s24, 192  ;;  %p602_p8 = scmp.lt.s32.totalorder %s126_s24, %s126_s24 }
  0x1c   : > { %p595_p6 = scmp.ne.s32.totalorder %s126_s24, %s594_s6  ;;  %p603_p5 = scmp.lt.s32.totalorder %s594_s6, %s594_s6 }
  0x1e   : > { %p597_p7 = pnand %p595_p6, %p583_p13  ;;  %p604_p9 = por %p603_p5, %p602_p8 }
  0x20   : > { %p598_p10 = pneg %p597_p7 }
  0x22   : > { %p605_p4 = pnand %p604_p9, %p598_p10 }
  0x24   : > { %608 = shalt.err (!%p605_p4)
}
  0x25   : > { %s638_s7 = smov 64   ;;  %s639_s8 = smov 4  }
  0x26   : > { %539 = dma.hbm_to_vmem [thread:$0]  (!%p712_p11), %s776_s0, 192, %s126_s24, [#allocation3], %s638_s7, %s638_s7, %s639_s8  }
  0x27   : > { %p500_p12 = scmp.ge.s32.totalorder %s635_s14, 2 }
  0x28   : > { %p786_p0 = scmp.ne.s32.totalorder (!%p500_p12), %s782_s20, 0 }
  0x29   : > { %138 = sbr.rel (%p500_p12) target bundleno = 55 (0x37), region = 24 }
  0x30   : > { %141 = sbr.rel (!%p786_p0) target bundleno = 55 (0x37), region = 28  ;;  %s143_s11 = sand.u32 (%p786_p0), 1, %s631_s13  }
  0x31   : > { %s522_s17 = sshll.u32 (%p786_p0), %s635_s14, 3  ;;  %s501_s18 = sshll.u32 (%p786_p0), %s143_s11, 5 }
  0x32   : > { %s148_s27 = scalar_lea.vmem (%p786_p0), %s777_s1, %s522_s17  ;;  %s145_s25 = scalar_lea.vmem (%p786_p0), [#allocation4], %s501_s18 }
  0x33   : > { %v182_v0 = vld [vmem:[%s148_s27] sm:$0xff] (%p786_p0)  ;;  %v184_v1 = vld [vmem:[%s148_s27 + $0x10] sm:$0xff] (%p786_p0) }
  0x34   : > { %v186_v2 = vld [vmem:[%s148_s27 + $0x20] sm:$0xff] (%p786_p0)  ;;  %183 = vst [vmem:[%s145_s25] sm:$0xff] (%p786_p0), %v182_v0  ;;  %185 = vst [vmem:[%s145_s25 + $0x8] sm:$0xff] (%p786_p0), %v184_v1  ;;  %v188_v3 = vld [vmem:[%s148_s27 + $0x30] sm:$0xff] (%p786_p0) }
  0x35   : > { %187 = vst [vmem:[%s145_s25 + $0x10] sm:$0xff] (%p786_p0), %v186_v2  ;;  %189 = vst [vmem:[%s145_s25 + $0x18] sm:$0xff] (%p786_p0), %v188_v3 }
  0x37 PF: > { %p787_p4 = scmp.ne.s32.totalorder %s784_s22, 0 }
  0x38   : > { %p788_p5 = scmp.eq.s32.totalorder (!%p787_p4), %s678_s15, 0 }
  0x39   : > { %198 = sbr.rel (%p787_p4) target bundleno = 307 (0x133), region = 66 }
  0x40   : > { %622 = dma.done.wait (%p788_p5), [#allocation3], 192   ;;  %p789_p8 = pmov %p788_p5 }
  0x41   : > { %s205_s14 = sand.u32 1, %s627_s12   ;;  %vm288_vm0 = vcmask 1044480   ;;  %v640_v4 = vmov 0   ;;  %vm289_vm1 = vcmask 1045504   ;;  %v641_v5 = vmov 65535   ;;  %v237_v14 = vld [vmem:[%s778_s2] sm:$0xff] }
  0x42   : > { %624 = vsyncadd (%p789_p8), [#allocation3], 4294967104  ;;  %s506_s20 = sshll.u32 %s205_s14, 5  ;;  %330 = vmatprep.mubr.bf16.mxu0 %v640_v4  ;;  %340 = vmatprep.mubr.bf16.mxu1 %v640_v4  ;;  %v290_v6 = vsel %vm288_vm0, 4294967295, %v641_v5  ;;  %v239_v15 = vld [vmem:[%s778_s2 + $0x10] sm:$0xff]  ;;  %v579_v16 = vld [vmem:[#allocation2] sm:$0xff]  }
  0x43   : > { %571 = vset.pattern.permute.xlu0 %v640_v4  ;;  %572 = vset.pattern.permute.xlu1 %v640_v4  ;;  %s207_s22 = scalar_lea.vmem [#allocation4], %s506_s20  ;;  %v291_v9 = vsel %vm289_vm1, %v290_v6, 0  ;;  %v580_v17 = vld [vmem:[#allocation2 + $0x8] ss:$0 sps:$4 sm:$0xff]   ;;  %vm281_vm2 = vcmask 220160   ;;  %s531_s6 = smul.u32 24, %s205_s14 }
  0x44   : > { %v573_v7 = vld [vmem:[%s207_s22 + $0x4] ss:$8 sps:$4 sm:$0xff]   ;;  %v575_v8 = vld [vmem:[%s207_s22] ss:$8 sps:$4 sm:$0xff]   ;;  %242 = vperm.xlu0 %571, %v237_v14   ;;  %252 = vperm.xlu1 %572, %v239_v15   ;;  %p790_p9 = scmp.ne.s32.totalorder %s783_s21, 0 }
  0x45   : > { %298 = vmatprep.subr.bf16.mxu0 %v573_v7  ;;  %527 = vmatprep.subr.bf16.mxu1 %v573_v7  ;;  %v576_v10 = vld [vmem:[%s207_s22 + $0x14] ss:$8 sps:$4 sm:$0x3f]   ;;  %v578_v11 = vld [vmem:[%s207_s22 + $0x10] ss:$8 sps:$4 sm:$0x3f]  }
  0x46   : > { %299 = vmatpush1.bf16.msra.mxu0 %v575_v8  ;;  %529 = vmatpush1.bf16.msra.mxu1 %v575_v8  ;;  %v296_v12 = vand.u32 %v576_v10, %v291_v9  ;;  %v293_v13 = vand.u32 %v578_v11, %v291_v9  ;;  %v238_v18 = vld [vmem:[%s778_s2 + $0x8] sm:$0xff]  ;;  %s226_s12 = scalar_lea.vmem [#allocation5], %s531_s6  ;;  %s526_s7 = sshll.u32 (%p790_p9), %s678_s15, 3 }
  0x47   : > { %s387_s10 = scalar_lea.vmem (%p790_p9), %s779_s3, %s526_s7 }
  0x48   : > { %300 = vmatprep.subr.bf16.mxu0 %v296_v12  ;;  %528 = vmatprep.subr.bf16.mxu1 %v296_v12 }
  0x49   : > { %247 = vperm.xlu0 %571, %v238_v18  }
  0x4a   : > { %301 = vmatpush1.bf16.msra.mxu0 %v293_v13  ;;  %530 = vmatpush1.bf16.msra.mxu1 %v293_v13 }
  0x4d   : > { %513 = vmatmul.mubr.msk.bf16.vlgmr.msra.gmra.mrb[0].mxu0 %vm281_vm2, %v579_v16  ;;  %514 = vmatmul.mubr.msk.bf16.vlgmr.msra.gmra.mrb[0].mxu1 %vm281_vm2, %v580_v17 }
  0xc3   : > { %v243_v19 = vpop.permute.xlu0 %242  ;;  %v253_v20 = vpop.permute.xlu1 %252 }
  0xc8   : > { %v248_v21 = vpop.permute.xlu0 %247 }
 0x120   : > { %v332_v22 = vpop.f32.mrb[0].mxu0  ;;  %v342_v23 = vpop.f32.mrb[0].mxu1 }
 0x121   : > { %v333_v24 = vadd.f32 %v332_v22, %v243_v19  ;;  %v334_v25 = vpop.f32.mrb[1].mxu0  ;;  %v344_v26 = vpop.f32.mrb[1].mxu1  ;;  %v343_v27 = vadd.f32 %v342_v23, %v253_v20 }
 0x122   : > { %v335_v28 = vadd.f32 %v334_v25, %v243_v19  ;;  %v345_v29 = vadd.f32 %v344_v26, %v253_v20  ;;  %v336_v30 = vpop.f32.mrb[2].mxu0  ;;  %v346_v31 = vpop.f32.mrb[2].mxu1 }
 0x123   : > { %v349_v32 = vmax.f32 %v333_v24, 0.0  ;;  %v353_v33 = vmax.f32 %v343_v27, 0.0  ;;  %v337_v34 = vadd.f32 %v336_v30, %v248_v21  ;;  %v338_v35 = vpop.f32.mrb[3].mxu0  ;;  %v347_v36 = vpop.f32.mrb[3].mxu1 }
 0x124   : > { %v350_v37 = vmax.f32 %v335_v28, 0.0  ;;  %v354_v38 = vmax.f32 %v345_v29, 0.0  ;;  %v339_v39 = vadd.f32 %v338_v35, %v248_v21  ;;  %384 = sbr.rel (!%p790_p9) target bundleno = 307 (0x133), region = 78 }
 0x125   : > { %v351_v40 = vmax.f32 %v337_v34, 0.0 }
 0x126   : > { %v523_v41 = vpack.c.bf16 %v350_v37, %v349_v32  ;;  %v525_v42 = vpack.c.bf16 %v354_v38, %v353_v33  ;;  %v352_v43 = vmax.f32 %v339_v39, 0.0 }
 0x128   : > { %375 = vst [vmem:[%s226_s12] sm:$0xff] %v523_v41  ;;  %377 = vst [vmem:[%s226_s12 + $0x10] sm:$0xff] %v525_v42  ;;  %v524_v44 = vpack.c.bf16 %v352_v43, %v351_v40 }
 0x12a   : > { %376 = vst [vmem:[%s226_s12 + $0x8] sm:$0xff] %v524_v44 }
 0x12f   : > { %v419_v45 = vld [vmem:[%s226_s12] sm:$0xff]  ;;  %v423_v47 = vld [vmem:[%s226_s12 + $0x10] sm:$0xff] }
 0x130   : > { %420 = vst [vmem:[%s387_s10] sm:$0xff] %v419_v45  ;;  %424 = vst [vmem:[%s387_s10 + $0x20] sm:$0xff] %v423_v47 }
 0x131   : > { %v421_v46 = vld [vmem:[%s226_s12 + $0x8] sm:$0xff] }
 0x132   : > { %422 = vst [vmem:[%s387_s10 + $0x10] sm:$0xff] %v421_v46 }
 0x133 PF: > { %p11_p11 = scmp.ge.s32.totalorder %s681_s16, 4   ;;  %s791_s12 = smov %s631_s13 }
 0x134   : > { %s792_s13 = smov %s691_s19  ;;  %s793_s14 = smov %s681_s16 }
 0x135   :  { %13 = sbr.rel (!%p11_p11) target bundleno = 2 (0x2), region = 148 }
 0x13c   :  { %440 = vsyncpa [#allocation3], 1 }
 0x13d   :  { %442 = vsyncpa [#allocation3 + $0x1], 1 }

// kernel: denoiser_forward.15
= control target key start
LH: loop header
LB: loop body
LE: loop exit
PB: predicated region body
PF: predicated region fallthrough
CT: control target
= control target key end

     0   :  { %v322_v0 = vmov 0   ;;  %vm159_vm0 = vcmask 719872   ;;  %vm166_vm1 = vcmask 1043456   ;;  %s441_s1 = inlined_call_operand.vmem [shape: bf16[216,128], index: 1, kind: input, shape index: {}]   ;;  %s442_s0 = inlined_call_operand.vmem [shape: bf16[24,216], index: 0, kind: input, shape index: {}]   ;;  %s443_s2 = inlined_call_operand.vmem [shape: f32[24,1], index: 2, kind: input, shape index: {}]   ;;  %s444_s3 = inlined_call_operand.vmem [shape: bf16[24,128], index: 3, kind: output, shape index: {}]  }
   0x1   :  { %170 = vmatprep.subr.bf16.mxu0 %v322_v0  ;;  %272 = vmatprep.subr.bf16.mxu1 %v322_v0  ;;  %v303_v1 = vld [vmem:[%s441_s1] sm:$0xff]   ;;  %v304_v2 = vld [vmem:[%s441_s1 + $0x8] sm:$0xff]   ;;  %v305_v3 = vld [vmem:[%s441_s1 + $0x10] sm:$0xff]  }
   0x2   :  { %301 = vset.pattern.permute.xlu0 %v322_v0  ;;  %302 = vset.pattern.permute.xlu1 %v322_v0  ;;  %v306_v4 = vld [vmem:[%s441_s1 + $0x18] sm:$0xff]   ;;  %v307_v5 = vld [vmem:[%s441_s1 + $0x20] sm:$0xff]   ;;  %v17_v7 = vld [vmem:[%s442_s0 + $0x10] sm:$0xff] }
   0x3   :  { %171 = vmatpush1.bf16.msra.mxu0 %v303_v1  ;;  %286 = vmatpush1.bf16.msra.mxu1 %v303_v1  ;;  %v319_v6 = vld [vmem:[%s442_s0 + $0x4] ss:$8 sps:$4 sm:$0xff]   ;;  %v244_v9 = vcombine.high %v17_v7, %v17_v7  ;;  %v47_v10 = vld [vmem:[%s443_s2 + $0x10] sm:$0xff]  ;;  %v310_v14 = vld [vmem:[%s441_s1 + $0x38] sm:$0xff]   ;;  %v243_v23 = vcombine.low %v17_v7, %v17_v7 }
   0x4   :  { %172 = vmatprep.subr.bf16.mxu0 %v322_v0  ;;  %273 = vmatprep.subr.bf16.mxu1 %v322_v0  ;;  %v45_v8 = vld [vmem:[%s443_s2] sm:$0xff]  ;;  %v46_v11 = vld [vmem:[%s443_s2 + $0x8] sm:$0xff]  ;;  %v309_v13 = vld [vmem:[%s441_s1 + $0x30] sm:$0xff]  }
   0x5   :  { %259 = vmatprep.mubr.msk.bf16.mxu0 %vm159_vm0, %v319_v6  ;;  %50 = vperm.xlu0 %301, %v45_v8   ;;  %v308_v12 = vld [vmem:[%s441_s1 + $0x28] sm:$0xff]   ;;  %v311_v15 = vld [vmem:[%s441_s1 + $0x40] sm:$0xff]   ;;  %v313_v17 = vld [vmem:[%s441_s1 + $0x50] sm:$0xff]  }
   0x6   :  { %60 = vperm.xlu1 %302, %v47_v10   ;;  %260 = vmatprep.mubr.msk.bf16.mxu1 %vm159_vm0, %v244_v9  ;;  %v312_v16 = vld [vmem:[%s441_s1 + $0x48] sm:$0xff]   ;;  %v314_v18 = vld [vmem:[%s441_s1 + $0x58] sm:$0xff]   ;;  %v315_v19 = vld [vmem:[%s441_s1 + $0x60] sm:$0xff]  }
   0x7   :  { %173 = vmatpush1.bf16.msra.mxu0 %v304_v2  ;;  %287 = vmatpush1.bf16.msra.mxu1 %v304_v2  ;;  %v316_v20 = vld [vmem:[%s441_s1 + $0x68] ss:$0 sps:$4 sm:$0xff]  }
   0x8   :  { %174 = vmatprep.subr.bf16.mxu0 %v322_v0  ;;  %274 = vmatprep.subr.bf16.mxu1 %v322_v0  ;;  %v168_v21 = vsel %vm166_vm1, %v316_v20, 0  ;;  %v317_v22 = vld [vmem:[%s442_s0] ss:$8 sps:$4 sm:$0xff]  }
   0x9   :  { %55 = vperm.xlu0 %301, %v46_v11  }
   0xb   :  { %175 = vmatpush1.bf16.msra.mxu0 %v305_v3  ;;  %288 = vmatpush1.bf16.msra.mxu1 %v305_v3 }
   0xc   :  { %176 = vmatprep.subr.bf16.mxu0 %v322_v0  ;;  %275 = vmatprep.subr.bf16.mxu1 %v322_v0 }
   0xf   :  { %177 = vmatpush1.bf16.msra.mxu0 %v306_v4  ;;  %289 = vmatpush1.bf16.msra.mxu1 %v306_v4 }
  0x10   :  { %178 = vmatprep.subr.bf16.mxu0 %v322_v0  ;;  %276 = vmatprep.subr.bf16.mxu1 %v322_v0 }
  0x13   :  { %179 = vmatpush1.bf16.msra.mxu0 %v307_v5  ;;  %290 = vmatpush1.bf16.msra.mxu1 %v307_v5 }
  0x14   :  { %180 = vmatprep.subr.bf16.mxu0 %v322_v0  ;;  %277 = vmatprep.subr.bf16.mxu1 %v322_v0 }
  0x17   :  { %181 = vmatpush1.bf16.msra.mxu0 %v308_v12  ;;  %291 = vmatpush1.bf16.msra.mxu1 %v308_v12 }
  0x18   :  { %182 = vmatprep.subr.bf16.mxu0 %v322_v0  ;;  %278 = vmatprep.subr.bf16.mxu1 %v322_v0 }
  0x1b   :  { %183 = vmatpush1.bf16.msra.mxu0 %v309_v13  ;;  %292 = vmatpush1.bf16.msra.mxu1 %v309_v13 }
  0x1c   :  { %184 = vmatprep.subr.bf16.mxu0 %v322_v0  ;;  %279 = vmatprep.subr.bf16.mxu1 %v322_v0 }
  0x1f   :  { %185 = vmatpush1.bf16.msra.mxu0 %v310_v14  ;;  %293 = vmatpush1.bf16.msra.mxu1 %v310_v14 }
  0x20   :  { %186 = vmatprep.subr.bf16.mxu0 %v322_v0  ;;  %280 = vmatprep.subr.bf16.mxu1 %v322_v0 }
  0x23   :  { %187 = vmatpush1.bf16.msra.mxu0 %v311_v15  ;;  %294 = vmatpush1.bf16.msra.mxu1 %v311_v15 }
  0x24   :  { %188 = vmatprep.subr.bf16.mxu0 %v322_v0  ;;  %281 = vmatprep.subr.bf16.mxu1 %v322_v0 }
  0x27   :  { %189 = vmatpush1.bf16.msra.mxu0 %v312_v16  ;;  %295 = vmatpush1.bf16.msra.mxu1 %v312_v16 }
  0x28   :  { %190 = vmatprep.subr.bf16.mxu0 %v322_v0  ;;  %282 = vmatprep.subr.bf16.mxu1 %v322_v0 }
  0x2b   :  { %191 = vmatpush1.bf16.msra.mxu0 %v313_v17  ;;  %296 = vmatpush1.bf16.msra.mxu1 %v313_v17 }
  0x2c   :  { %192 = vmatprep.subr.bf16.mxu0 %v322_v0  ;;  %283 = vmatprep.subr.bf16.mxu1 %v322_v0 }
  0x2f   :  { %193 = vmatpush1.bf16.msra.mxu0 %v314_v18  ;;  %297 = vmatpush1.bf16.msra.mxu1 %v314_v18 }
  0x30   :  { %194 = vmatprep.subr.bf16.mxu0 %v322_v0  ;;  %284 = vmatprep.subr.bf16.mxu1 %v322_v0 }
  0x33   :  { %195 = vmatpush1.bf16.msra.mxu0 %v315_v19  ;;  %298 = vmatpush1.bf16.msra.mxu1 %v315_v19 }
  0x34   :  { %196 = vmatprep.subr.bf16.mxu0 %v322_v0  ;;  %285 = vmatprep.subr.bf16.mxu1 %v322_v0 }
  0x37   :  { %197 = vmatpush1.bf16.msra.mxu0 %v168_v21  ;;  %299 = vmatpush1.bf16.msra.mxu1 %v168_v21 }
  0x3a   :  { %203 = vmatmul.mubr.bf16.vlgmr.msra.gmra.mrb[0].mxu0 %v317_v22  ;;  %211 = vmatmul.mubr.bf16.vlgmr.msra.gmra.mrb[0].mxu1 %v243_v23 }
  0x84   :  { %v51_v24 = vpop.permute.xlu0 %50 }
  0x85   :  { %v61_v25 = vpop.permute.xlu1 %60 }
  0x88   :  { %v56_v26 = vpop.permute.xlu0 %55 }
 0x10d   :  { %v204_v27 = vpop.f32.mrb[0].mxu0  ;;  %v212_v28 = vpop.f32.mrb[0].mxu1 }
 0x10e   :  { %v205_v29 = vadd.f32 %v204_v27, %v51_v24  ;;  %v206_v30 = vpop.f32.mrb[1].mxu0  ;;  %v214_v31 = vpop.f32.mrb[1].mxu1  ;;  %v213_v32 = vadd.f32 %v212_v28, %v61_v25 }
 0x10f   :  { %v207_v33 = vpop.f32.mrb[2].mxu0  ;;  %v215_v34 = vpop.f32.mrb[2].mxu1 }
 0x110   :  { %v220_v35 = vmax.f32 %v213_v32, 0.0  ;;  %v208_v36 = vadd.f32 %v207_v33, %v56_v26  ;;  %v209_v37 = vpop.f32.mrb[3].mxu0  ;;  %v216_v38 = vpop.f32.mrb[3].mxu1  ;;  %v218_v39 = vmax.f32 %v205_v29, 0.0 }
 0x112   :  { %v266_v40 = vpack.c.bf16 %v220_v35, %v220_v35  ;;  %v219_v41 = vmax.f32 %v208_v36, 0.0 }
 0x114   :  { %236 = vst [vmem:[%s444_s3 + $0x8] sm:$0xf] %v266_v40  ;;  %v270_v42 = vpack.c.bf16 %v219_v41, %v218_v39 }
 0x116   :  { %271 = vst [vmem:[%s444_s3] sm:$0xff] %v270_v42  }

// kernel: denoiser_forward.16
= control target key start
LH: loop header
LB: loop body
LE: loop exit
PB: predicated region body
PF: predicated region fallthrough
CT: control target
= control target key end

     0   :  { %v318_v0 = vmov 0   ;;  %vm159_vm0 = vcmask 719872   ;;  %vm166_vm1 = vcmask 1043456   ;;  %vm234_vm2 = vcmask 257024   ;;  %s440_s1 = inlined_call_operand.vmem [shape: bf16[216,32], index: 1, kind: input, shape index: {}]   ;;  %s441_s0 = inlined_call_operand.vmem [shape: bf16[24,216], index: 0, kind: input, shape index: {}]   ;;  %s442_s2 = inlined_call_operand.vmem [shape: f32[24,1], index: 2, kind: input, shape index: {}]   ;;  %s443_s3 = inlined_call_operand.vmem [shape: bf16[24,32], index: 3, kind: output, shape index: {}]  }
   0x1   :  { %170 = vmatprep.subr.bf16.mxu0 %v318_v0  ;;  %268 = vmatprep.subr.bf16.mxu1 %v318_v0  ;;  %v299_v1 = vld [vmem:[%s440_s1] sm:$0xff]   ;;  %v300_v2 = vld [vmem:[%s440_s1 + $0x8] sm:$0xff]   ;;  %v301_v3 = vld [vmem:[%s440_s1 + $0x10] sm:$0xff]  }
   0x2   :  { %297 = vset.pattern.permute.xlu0 %v318_v0  ;;  %298 = vset.pattern.permute.xlu1 %v318_v0  ;;  %v302_v4 = vld [vmem:[%s440_s1 + $0x18] sm:$0xff]   ;;  %v303_v5 = vld [vmem:[%s440_s1 + $0x20] sm:$0xff]   ;;  %v17_v7 = vld [vmem:[%s441_s0 + $0x10] sm:$0xff] }
   0x3   :  { %171 = vmatpush1.bf16.msra.mxu0 %v299_v1  ;;  %282 = vmatpush1.bf16.msra.mxu1 %v299_v1  ;;  %v315_v6 = vld [vmem:[%s441_s0 + $0x4] ss:$8 sps:$4 sm:$0xff]   ;;  %v245_v9 = vcombine.high %v17_v7, %v17_v7  ;;  %v47_v10 = vld [vmem:[%s442_s2 + $0x10] sm:$0xff]  ;;  %v306_v14 = vld [vmem:[%s440_s1 + $0x38] sm:$0xff]   ;;  %v244_v23 = vcombine.low %v17_v7, %v17_v7 }
   0x4   :  { %172 = vmatprep.subr.bf16.mxu0 %v318_v0  ;;  %269 = vmatprep.subr.bf16.mxu1 %v318_v0  ;;  %v45_v8 = vld [vmem:[%s442_s2] sm:$0xff]  ;;  %v46_v11 = vld [vmem:[%s442_s2 + $0x8] sm:$0xff]  ;;  %v305_v13 = vld [vmem:[%s440_s1 + $0x30] sm:$0xff]  }
   0x5   :  { %260 = vmatprep.mubr.msk.bf16.mxu0 %vm159_vm0, %v315_v6  ;;  %50 = vperm.xlu0 %297, %v45_v8   ;;  %v304_v12 = vld [vmem:[%s440_s1 + $0x28] sm:$0xff]   ;;  %v307_v15 = vld [vmem:[%s440_s1 + $0x40] sm:$0xff]   ;;  %v309_v17 = vld [vmem:[%s440_s1 + $0x50] sm:$0xff]  }
   0x6   :  { %60 = vperm.xlu1 %298, %v47_v10   ;;  %261 = vmatprep.mubr.msk.bf16.mxu1 %vm159_vm0, %v245_v9  ;;  %v308_v16 = vld [vmem:[%s440_s1 + $0x48] sm:$0xff]   ;;  %v310_v18 = vld [vmem:[%s440_s1 + $0x58] sm:$0xff]   ;;  %v311_v19 = vld [vmem:[%s440_s1 + $0x60] sm:$0xff]  }
   0x7   :  { %173 = vmatpush1.bf16.msra.mxu0 %v300_v2  ;;  %283 = vmatpush1.bf16.msra.mxu1 %v300_v2  ;;  %v312_v20 = vld [vmem:[%s440_s1 + $0x68] ss:$0 sps:$4 sm:$0xff]  }
   0x8   :  { %174 = vmatprep.subr.bf16.mxu0 %v318_v0  ;;  %270 = vmatprep.subr.bf16.mxu1 %v318_v0  ;;  %v168_v21 = vsel %vm166_vm1, %v312_v20, 0  ;;  %v313_v22 = vld [vmem:[%s441_s0] ss:$8 sps:$4 sm:$0xff]  }
   0x9   :  { %55 = vperm.xlu0 %297, %v46_v11  }
   0xb   :  { %175 = vmatpush1.bf16.msra.mxu0 %v301_v3  ;;  %284 = vmatpush1.bf16.msra.mxu1 %v301_v3 }
   0xc   :  { %176 = vmatprep.subr.bf16.mxu0 %v318_v0  ;;  %271 = vmatprep.subr.bf16.mxu1 %v318_v0 }
   0xf   :  { %177 = vmatpush1.bf16.msra.mxu0 %v302_v4  ;;  %285 = vmatpush1.bf16.msra.mxu1 %v302_v4 }
  0x10   :  { %178 = vmatprep.subr.bf16.mxu0 %v318_v0  ;;  %272 = vmatprep.subr.bf16.mxu1 %v318_v0 }
  0x13   :  { %179 = vmatpush1.bf16.msra.mxu0 %v303_v5  ;;  %286 = vmatpush1.bf16.msra.mxu1 %v303_v5 }
  0x14   :  { %180 = vmatprep.subr.bf16.mxu0 %v318_v0  ;;  %273 = vmatprep.subr.bf16.mxu1 %v318_v0 }
  0x17   :  { %181 = vmatpush1.bf16.msra.mxu0 %v304_v12  ;;  %287 = vmatpush1.bf16.msra.mxu1 %v304_v12 }
  0x18   :  { %182 = vmatprep.subr.bf16.mxu0 %v318_v0  ;;  %274 = vmatprep.subr.bf16.mxu1 %v318_v0 }
  0x1b   :  { %183 = vmatpush1.bf16.msra.mxu0 %v305_v13  ;;  %288 = vmatpush1.bf16.msra.mxu1 %v305_v13 }
  0x1c   :  { %184 = vmatprep.subr.bf16.mxu0 %v318_v0  ;;  %275 = vmatprep.subr.bf16.mxu1 %v318_v0 }
  0x1f   :  { %185 = vmatpush1.bf16.msra.mxu0 %v306_v14  ;;  %289 = vmatpush1.bf16.msra.mxu1 %v306_v14 }
  0x20   :  { %186 = vmatprep.subr.bf16.mxu0 %v318_v0  ;;  %276 = vmatprep.subr.bf16.mxu1 %v318_v0 }
  0x23   :  { %187 = vmatpush1.bf16.msra.mxu0 %v307_v15  ;;  %290 = vmatpush1.bf16.msra.mxu1 %v307_v15 }
  0x24   :  { %188 = vmatprep.subr.bf16.mxu0 %v318_v0  ;;  %277 = vmatprep.subr.bf16.mxu1 %v318_v0 }
  0x27   :  { %189 = vmatpush1.bf16.msra.mxu0 %v308_v16  ;;  %291 = vmatpush1.bf16.msra.mxu1 %v308_v16 }
  0x28   :  { %190 = vmatprep.subr.bf16.mxu0 %v318_v0  ;;  %278 = vmatprep.subr.bf16.mxu1 %v318_v0 }
  0x2b   :  { %191 = vmatpush1.bf16.msra.mxu0 %v309_v17  ;;  %292 = vmatpush1.bf16.msra.mxu1 %v309_v17 }
  0x2c   :  { %192 = vmatprep.subr.bf16.mxu0 %v318_v0  ;;  %279 = vmatprep.subr.bf16.mxu1 %v318_v0 }
  0x2f   :  { %193 = vmatpush1.bf16.msra.mxu0 %v310_v18  ;;  %293 = vmatpush1.bf16.msra.mxu1 %v310_v18 }
  0x30   :  { %194 = vmatprep.subr.bf16.mxu0 %v318_v0  ;;  %280 = vmatprep.subr.bf16.mxu1 %v318_v0 }
  0x33   :  { %195 = vmatpush1.bf16.msra.mxu0 %v311_v19  ;;  %294 = vmatpush1.bf16.msra.mxu1 %v311_v19 }
  0x34   :  { %196 = vmatprep.subr.bf16.mxu0 %v318_v0  ;;  %281 = vmatprep.subr.bf16.mxu1 %v318_v0 }
  0x37   :  { %197 = vmatpush1.bf16.msra.mxu0 %v168_v21  ;;  %295 = vmatpush1.bf16.msra.mxu1 %v168_v21 }
  0x3a   :  { %203 = vmatmul.mubr.bf16.vlgmr.msra.gmra.mrb[0].mxu0 %v313_v22  ;;  %211 = vmatmul.mubr.bf16.vlgmr.msra.gmra.mrb[0].mxu1 %v244_v23 }
  0x84   :  { %v51_v24 = vpop.permute.xlu0 %50 }
  0x85   :  { %v61_v25 = vpop.permute.xlu1 %60 }
  0x88   :  { %v56_v26 = vpop.permute.xlu0 %55 }
 0x10d   :  { %v204_v27 = vpop.f32.mrb[0].mxu0  ;;  %v212_v28 = vpop.f32.mrb[0].mxu1 }
 0x10e   :  { %v205_v29 = vadd.f32 %v204_v27, %v51_v24  ;;  %v206_v30 = vpop.f32.mrb[1].mxu0  ;;  %v214_v31 = vpop.f32.mrb[1].mxu1  ;;  %v213_v32 = vadd.f32 %v212_v28, %v61_v25 }
 0x10f   :  { %v207_v33 = vpop.f32.mrb[2].mxu0  ;;  %v215_v34 = vpop.f32.mrb[2].mxu1 }
 0x110   :  { %v218_v35 = vmax.f32 %v205_v29, 0.0  ;;  %v220_v36 = vmax.f32 %v213_v32, 0.0  ;;  %v208_v37 = vadd.f32 %v207_v33, %v56_v26  ;;  %v209_v38 = vpop.f32.mrb[3].mxu0  ;;  %v216_v39 = vpop.f32.mrb[3].mxu1 }
 0x112   :  { %v265_v40 = vpack.c.bf16 %v218_v35, %v218_v35  ;;  %v267_v41 = vpack.c.bf16 %v220_v36, %v220_v36  ;;  %v219_v42 = vmax.f32 %v208_v37, 0.0 }
 0x114   :  { %235 = vst.msk [vmem:[%s443_s3] sm:$0xf] %vm234_vm2, %v265_v40  ;;  %237 = vst.msk [vmem:[%s443_s3 + $0x8] sm:$0xf] %vm234_vm2, %v267_v41  ;;  %v266_v43 = vpack.c.bf16 %v219_v42, %v219_v42 }
 0x116   :  { %236 = vst.msk [vmem:[%s443_s3 + $0x4] sm:$0xf] %vm234_vm2, %v266_v43 }

// kernel: denoiser_forward.17
= control target key start
LH: loop header
LB: loop body
LE: loop exit
PB: predicated region body
PF: predicated region fallthrough
CT: control target
= control target key end

     0   :  { %v318_v0 = vmov 0   ;;  %vm159_vm0 = vcmask 719872   ;;  %vm166_vm1 = vcmask 1043456   ;;  %vm234_vm2 = vcmask 60416   ;;  %s440_s1 = inlined_call_operand.vmem [shape: bf16[216,8], index: 1, kind: input, shape index: {}]   ;;  %s441_s0 = inlined_call_operand.vmem [shape: bf16[24,216], index: 0, kind: input, shape index: {}]   ;;  %s442_s2 = inlined_call_operand.vmem [shape: f32[24,1], index: 2, kind: input, shape index: {}]   ;;  %s443_s3 = inlined_call_operand.vmem [shape: bf16[24,8], index: 3, kind: output, shape index: {}]  }
   0x1   :  { %170 = vmatprep.subr.bf16.mxu0 %v318_v0  ;;  %268 = vmatprep.subr.bf16.mxu1 %v318_v0  ;;  %v299_v1 = vld [vmem:[%s440_s1] sm:$0xff]   ;;  %v300_v2 = vld [vmem:[%s440_s1 + $0x8] sm:$0xff]   ;;  %v301_v3 = vld [vmem:[%s440_s1 + $0x10] sm:$0xff]  }
   0x2   :  { %297 = vset.pattern.permute.xlu0 %v318_v0  ;;  %298 = vset.pattern.permute.xlu1 %v318_v0  ;;  %v302_v4 = vld [vmem:[%s440_s1 + $0x18] sm:$0xff]   ;;  %v303_v5 = vld [vmem:[%s440_s1 + $0x20] sm:$0xff]   ;;  %v17_v7 = vld [vmem:[%s441_s0 + $0x10] sm:$0xff] }
   0x3   :  { %171 = vmatpush1.bf16.msra.mxu0 %v299_v1  ;;  %282 = vmatpush1.bf16.msra.mxu1 %v299_v1  ;;  %v315_v6 = vld [vmem:[%s441_s0 + $0x4] ss:$8 sps:$4 sm:$0xff]   ;;  %v245_v9 = vcombine.high %v17_v7, %v17_v7  ;;  %v47_v10 = vld [vmem:[%s442_s2 + $0x10] sm:$0xff]  ;;  %v306_v14 = vld [vmem:[%s440_s1 + $0x38] sm:$0xff]   ;;  %v244_v23 = vcombine.low %v17_v7, %v17_v7 }
   0x4   :  { %172 = vmatprep.subr.bf16.mxu0 %v318_v0  ;;  %269 = vmatprep.subr.bf16.mxu1 %v318_v0  ;;  %v45_v8 = vld [vmem:[%s442_s2] sm:$0xff]  ;;  %v46_v11 = vld [vmem:[%s442_s2 + $0x8] sm:$0xff]  ;;  %v305_v13 = vld [vmem:[%s440_s1 + $0x30] sm:$0xff]  }
   0x5   :  { %260 = vmatprep.mubr.msk.bf16.mxu0 %vm159_vm0, %v315_v6  ;;  %50 = vperm.xlu0 %297, %v45_v8   ;;  %v304_v12 = vld [vmem:[%s440_s1 + $0x28] sm:$0xff]   ;;  %v307_v15 = vld [vmem:[%s440_s1 + $0x40] sm:$0xff]   ;;  %v309_v17 = vld [vmem:[%s440_s1 + $0x50] sm:$0xff]  }
   0x6   :  { %60 = vperm.xlu1 %298, %v47_v10   ;;  %261 = vmatprep.mubr.msk.bf16.mxu1 %vm159_vm0, %v245_v9  ;;  %v308_v16 = vld [vmem:[%s440_s1 + $0x48] sm:$0xff]   ;;  %v310_v18 = vld [vmem:[%s440_s1 + $0x58] sm:$0xff]   ;;  %v311_v19 = vld [vmem:[%s440_s1 + $0x60] sm:$0xff]  }
   0x7   :  { %173 = vmatpush1.bf16.msra.mxu0 %v300_v2  ;;  %283 = vmatpush1.bf16.msra.mxu1 %v300_v2  ;;  %v312_v20 = vld [vmem:[%s440_s1 + $0x68] ss:$0 sps:$4 sm:$0xff]  }
   0x8   :  { %174 = vmatprep.subr.bf16.mxu0 %v318_v0  ;;  %270 = vmatprep.subr.bf16.mxu1 %v318_v0  ;;  %v168_v21 = vsel %vm166_vm1, %v312_v20, 0  ;;  %v313_v22 = vld [vmem:[%s441_s0] ss:$8 sps:$4 sm:$0xff]  }
   0x9   :  { %55 = vperm.xlu0 %297, %v46_v11  }
   0xb   :  { %175 = vmatpush1.bf16.msra.mxu0 %v301_v3  ;;  %284 = vmatpush1.bf16.msra.mxu1 %v301_v3 }
   0xc   :  { %176 = vmatprep.subr.bf16.mxu0 %v318_v0  ;;  %271 = vmatprep.subr.bf16.mxu1 %v318_v0 }
   0xf   :  { %177 = vmatpush1.bf16.msra.mxu0 %v302_v4  ;;  %285 = vmatpush1.bf16.msra.mxu1 %v302_v4 }
  0x10   :  { %178 = vmatprep.subr.bf16.mxu0 %v318_v0  ;;  %272 = vmatprep.subr.bf16.mxu1 %v318_v0 }
  0x13   :  { %179 = vmatpush1.bf16.msra.mxu0 %v303_v5  ;;  %286 = vmatpush1.bf16.msra.mxu1 %v303_v5 }
  0x14   :  { %180 = vmatprep.subr.bf16.mxu0 %v318_v0  ;;  %273 = vmatprep.subr.bf16.mxu1 %v318_v0 }
  0x17   :  { %181 = vmatpush1.bf16.msra.mxu0 %v304_v12  ;;  %287 = vmatpush1.bf16.msra.mxu1 %v304_v12 }
  0x18   :  { %182 = vmatprep.subr.bf16.mxu0 %v318_v0  ;;  %274 = vmatprep.subr.bf16.mxu1 %v318_v0 }
  0x1b   :  { %183 = vmatpush1.bf16.msra.mxu0 %v305_v13  ;;  %288 = vmatpush1.bf16.msra.mxu1 %v305_v13 }
  0x1c   :  { %184 = vmatprep.subr.bf16.mxu0 %v318_v0  ;;  %275 = vmatprep.subr.bf16.mxu1 %v318_v0 }
  0x1f   :  { %185 = vmatpush1.bf16.msra.mxu0 %v306_v14  ;;  %289 = vmatpush1.bf16.msra.mxu1 %v306_v14 }
  0x20   :  { %186 = vmatprep.subr.bf16.mxu0 %v318_v0  ;;  %276 = vmatprep.subr.bf16.mxu1 %v318_v0 }
  0x23   :  { %187 = vmatpush1.bf16.msra.mxu0 %v307_v15  ;;  %290 = vmatpush1.bf16.msra.mxu1 %v307_v15 }
  0x24   :  { %188 = vmatprep.subr.bf16.mxu0 %v318_v0  ;;  %277 = vmatprep.subr.bf16.mxu1 %v318_v0 }
  0x27   :  { %189 = vmatpush1.bf16.msra.mxu0 %v308_v16  ;;  %291 = vmatpush1.bf16.msra.mxu1 %v308_v16 }
  0x28   :  { %190 = vmatprep.subr.bf16.mxu0 %v318_v0  ;;  %278 = vmatprep.subr.bf16.mxu1 %v318_v0 }
  0x2b   :  { %191 = vmatpush1.bf16.msra.mxu0 %v309_v17  ;;  %292 = vmatpush1.bf16.msra.mxu1 %v309_v17 }
  0x2c   :  { %192 = vmatprep.subr.bf16.mxu0 %v318_v0  ;;  %279 = vmatprep.subr.bf16.mxu1 %v318_v0 }
  0x2f   :  { %193 = vmatpush1.bf16.msra.mxu0 %v310_v18  ;;  %293 = vmatpush1.bf16.msra.mxu1 %v310_v18 }
  0x30   :  { %194 = vmatprep.subr.bf16.mxu0 %v318_v0  ;;  %280 = vmatprep.subr.bf16.mxu1 %v318_v0 }
  0x33   :  { %195 = vmatpush1.bf16.msra.mxu0 %v311_v19  ;;  %294 = vmatpush1.bf16.msra.mxu1 %v311_v19 }
  0x34   :  { %196 = vmatprep.subr.bf16.mxu0 %v318_v0  ;;  %281 = vmatprep.subr.bf16.mxu1 %v318_v0 }
  0x37   :  { %197 = vmatpush1.bf16.msra.mxu0 %v168_v21  ;;  %295 = vmatpush1.bf16.msra.mxu1 %v168_v21 }
  0x3a   :  { %203 = vmatmul.mubr.bf16.vlgmr.msra.gmra.mrb[0].mxu0 %v313_v22  ;;  %211 = vmatmul.mubr.bf16.vlgmr.msra.gmra.mrb[0].mxu1 %v244_v23 }
  0x84   :  { %v51_v24 = vpop.permute.xlu0 %50 }
  0x85   :  { %v61_v25 = vpop.permute.xlu1 %60 }
  0x88   :  { %v56_v26 = vpop.permute.xlu0 %55 }
 0x10d   :  { %v204_v27 = vpop.f32.mrb[0].mxu0  ;;  %v212_v28 = vpop.f32.mrb[0].mxu1 }
 0x10e   :  { %v205_v29 = vadd.f32 %v204_v27, %v51_v24  ;;  %v206_v30 = vpop.f32.mrb[1].mxu0  ;;  %v214_v31 = vpop.f32.mrb[1].mxu1  ;;  %v213_v32 = vadd.f32 %v212_v28, %v61_v25 }
 0x10f   :  { %v207_v33 = vpop.f32.mrb[2].mxu0  ;;  %v215_v34 = vpop.f32.mrb[2].mxu1 }
 0x110   :  { %v218_v35 = vmax.f32 %v205_v29, 0.0  ;;  %v220_v36 = vmax.f32 %v213_v32, 0.0  ;;  %v208_v37 = vadd.f32 %v207_v33, %v56_v26  ;;  %v209_v38 = vpop.f32.mrb[3].mxu0  ;;  %v216_v39 = vpop.f32.mrb[3].mxu1 }
 0x112   :  { %v265_v40 = vpack.c.bf16 %v218_v35, %v218_v35  ;;  %v267_v41 = vpack.c.bf16 %v220_v36, %v220_v36  ;;  %v219_v42 = vmax.f32 %v208_v37, 0.0 }
 0x114   :  { %235 = vst.msk [vmem:[%s443_s3] sm:$0xf] %vm234_vm2, %v265_v40  ;;  %237 = vst.msk [vmem:[%s443_s3 + $0x8] sm:$0xf] %vm234_vm2, %v267_v41  ;;  %v266_v43 = vpack.c.bf16 %v219_v42, %v219_v42 }
 0x116   :  { %236 = vst.msk [vmem:[%s443_s3 + $0x4] sm:$0xf] %vm234_vm2, %v266_v43 }

// kernel: denoiser_forward.20
= control target key start
LH: loop header
LB: loop body
LE: loop exit
PB: predicated region body
PF: predicated region fallthrough
CT: control target
= control target key end

     0   :  { %vm59_vm0 = vcmask 1041408   ;;  %v218_v0 = vmov 0.0   ;;  %vm219_vm1 = vmmov 0   ;;  %vm49_vm2 = vcmask 31744   ;;  %s285_s1 = inlined_call_operand.vmem [shape: bf16[4,16], index: 1, kind: input, shape index: {}]   ;;  %s286_s0 = inlined_call_operand.vmem [shape: bf16[48,4], index: 0, kind: input, shape index: {}]   ;;  %s287_s2 = inlined_call_operand.vmem [shape: bf16[48,16], index: 2, kind: input, shape index: {}]   ;;  %s288_s3 = inlined_call_operand.vmem [shape: bf16[48,16], index: 3, kind: output, shape index: {}]  }
   0x1   :  { %211 = vmatprep.subr.bf16.mxu1 %v218_v0  ;;  %v21_v1 = vld [vmem:[%s285_s1] sm:$0x3]  ;;  %203 = vmatprep.mubr.msk.bf16.mxu1 %vm219_vm1, %v218_v0  ;;  %v215_v3 = vld [vmem:[%s286_s0 + $0x8] sm:$0xff]   ;;  %v217_v5 = vld [vmem:[%s286_s0 + $0x10] sm:$0xff]   ;;  %vm150_vm3 = vcmask 125952  }
   0x2   :  { %v61_v2 = vsel %vm59_vm0, %v21_v1, 0  ;;  %197 = vmatprep.subr.bf16.mxu0 %v218_v0  ;;  %199 = vmatprep.mubr.msk.bf16.mxu0 %vm219_vm1, %v218_v0  ;;  %v216_v4 = vld [vmem:[%s286_s0] sm:$0xff]   ;;  %v191_v6 = vld [vmem:[%s287_s2 + $0x8] sm:$0xff]   ;;  %v192_v18 = vld [vmem:[%s287_s2 + $0x10] sm:$0xff]  }
   0x3   :  { %212 = vmatpush3.bf16.msra.mxu1 %v61_v2  ;;  %198 = vmatpush3.bf16.msra.mxu0 %v61_v2  ;;  %v180_v7 = vld [vmem:[%s287_s2] sm:$0xff]   ;;  %v185_v8 = vunpack.c.l.bf16 %v191_v6  ;;  %v186_v10 = vunpack.c.h.bf16 %v191_v6  ;;  %v189_v27 = vunpack.c.l.bf16 %v192_v18  ;;  %v190_v34 = vunpack.c.h.bf16 %v192_v18 }
   0x4   :  { %v181_v9 = vunpack.c.l.bf16 %v180_v7  ;;  %v182_v11 = vunpack.c.h.bf16 %v180_v7 }
   0x6   :  { %204 = vmatmul.mubr.msk.bf16.vlgmr.msra.gmra.mrb[0].mxu1 %vm49_vm2, %v215_v3  ;;  %200 = vmatmul.mubr.msk.bf16.vlgmr.msra.gmra.mrb[0].mxu0 %vm49_vm2, %v216_v4 }
   0x7   :  { %207 = vmatprep.mubr.msk.bf16.mxu1 %vm219_vm1, %v218_v0 }
   0xe   :  { %208 = vmatmul.mubr.msk.bf16.gmra.mrb[4].mxu1 %vm49_vm2, %v217_v5 }
  0xd9   :  { %v105_v12 = vpop.f32.mrb[0].mxu1  ;;  %v97_v13 = vpop.f32.mrb[0].mxu0 }
  0xda   :  { %v106_v14 = vadd.f32 %v185_v8, %v105_v12  ;;  %v205_v15 = vpop.f32.mrb[1].mxu1  ;;  %v98_v16 = vadd.f32 %v181_v9, %v97_v13  ;;  %v201_v17 = vpop.f32.mrb[1].mxu0 }
  0xdb   :  { %v108_v19 = vpop.f32.mrb[2].mxu1  ;;  %v100_v20 = vpop.f32.mrb[2].mxu0 }
  0xdc   :  { %v122_v21 = vmax.f32 %v106_v14, 0.0  ;;  %v109_v22 = vadd.f32 %v186_v10, %v108_v19  ;;  %v206_v23 = vpop.f32.mrb[3].mxu1  ;;  %v120_v24 = vmax.f32 %v98_v16, 0.0  ;;  %v101_v25 = vadd.f32 %v182_v11, %v100_v20  ;;  %v202_v26 = vpop.f32.mrb[3].mxu0 }
  0xde   :  { %v175_v28 = vpack.c.bf16 %v122_v21, %v122_v21  ;;  %v123_v29 = vmax.f32 %v109_v22, 0.0  ;;  %v173_v30 = vpack.c.bf16 %v120_v24, %v120_v24  ;;  %v121_v31 = vmax.f32 %v101_v25, 0.0 }
  0xe0   :  { %153 = vst.msk [vmem:[%s288_s3 + $0x8] sm:$0xf] %vm150_vm3, %v175_v28  ;;  %v176_v32 = vpack.c.bf16 %v123_v29, %v123_v29  ;;  %151 = vst.msk [vmem:[%s288_s3] sm:$0xf] %vm150_vm3, %v173_v30  ;;  %v174_v33 = vpack.c.bf16 %v121_v31, %v121_v31 }
  0xe1   :  { %v113_v35 = vpop.f32.mrb[4].mxu1 }
  0xe2   :  { %154 = vst.msk [vmem:[%s288_s3 + $0xc] sm:$0xf] %vm150_vm3, %v176_v32  ;;  %152 = vst.msk [vmem:[%s288_s3 + $0x4] sm:$0xf] %vm150_vm3, %v174_v33  ;;  %v114_v36 = vadd.f32 %v189_v27, %v113_v35  ;;  %v209_v37 = vpop.f32.mrb[5].mxu1 }
  0xe3   :  { %v116_v38 = vpop.f32.mrb[6].mxu1 }
  0xe4   :  { %v124_v39 = vmax.f32 %v114_v36, 0.0  ;;  %v117_v40 = vadd.f32 %v190_v34, %v116_v38  ;;  %v210_v41 = vpop.f32.mrb[7].mxu1 }
  0xe6   :  { %v177_v42 = vpack.c.bf16 %v124_v39, %v124_v39  ;;  %v125_v43 = vmax.f32 %v117_v40, 0.0 }
  0xe8   :  { %155 = vst.msk [vmem:[%s288_s3 + $0x10] sm:$0xf] %vm150_vm3, %v177_v42  ;;  %v178_v44 = vpack.c.bf16 %v125_v43, %v125_v43 }
  0xea   :  { %156 = vst.msk [vmem:[%s288_s3 + $0x14] sm:$0xf] %vm150_vm3, %v178_v44 }

// kernel: denoiser_forward.18
= control target key start
LH: loop header
LB: loop body
LE: loop exit
PB: predicated region body
PF: predicated region fallthrough
CT: control target
= control target key end

     0   :  { %v2335_v0 = vmov 0.0   ;;  %vm2336_vm0 = vmmov 0   ;;  %vm30_vm1 = vcmask 64512   ;;  %s2338_s23 = smov 120   ;;  %s2339_s24 = smov 118   ;;  %vm109_vm2 = vcmask 15360   ;;  %s2612_s1 = inlined_call_operand.vmem [shape: f32[8,24], index: 1, kind: input, shape index: {}]   ;;  %s2613_s0 = inlined_call_operand.vmem [shape: bf16[8,8], index: 0, kind: input, shape index: {}]   ;;  %s2614_s2 = inlined_call_operand.vmem [shape: f32[1,24], index: 2, kind: input, shape index: {}]   ;;  %s2615_s3 = inlined_call_operand.vmem [shape: f32[8,8], index: 3, kind: input, shape index: {}]   ;;  %s2616_s4 = inlined_call_operand.vmem [shape: f32[1,8], index: 4, kind: input, shape index: {}]   ;;  %s2617_s5 = inlined_call_operand.vmem [shape: bf16[8,8], index: 5, kind: output, shape index: {}]  }
   0x1   :  { %2165 = vmatprep.subr.mxu0 %v2335_v0  ;;  %v22_v1 = vld [vmem:[%s2612_s1] sm:$0xff]  ;;  %2167 = vmatprep.mubr.msk.f32.mxu0 %vm2336_vm0, %v2335_v0  ;;  %vm185_vm3 = vcmask 27648   ;;  %s2341_s25 = smov 112   ;;  %s2342_s26 = smov 116   ;;  %vm448_vm4 = vcmask 1041408   ;;  %vm203_vm5 = vcmask 1043456  }
   0x2   :  { %v20_v2 = vld [vmem:[%s2613_s0] sm:$0xf]  ;;  %2166 = vmatpush3.msra.mxu0 %v22_v1  ;;  %2170 = vmatprep.subr.mxu1 %v2335_v0  ;;  %s2337_s0 = smov 126   ;;  %s2343_s27 = smov 124   ;;  %vm199_vm6 = vcmask 31744   ;;  %vm2058_vm7 = vcmask 60416  }
   0x3   :  { %v21_v3 = vunpack.c.l.bf16 %v20_v2  ;;  %2172 = vmatprep.mubr.msk.f32.mxu1 %vm2336_vm0, %v2335_v0  ;;  %2175 = vmatprep.subr.mxu0 %v2335_v0  ;;  %v2064_v4 = vld [vmem:[%s2614_s2] ss:$0 sm:$0xff]  ;;  %s2340_s2 = smov 110   ;;  %s2345_s30 = smov 122  }
   0x4   :  { %v2430_v29 = vld [vmem:[%s2615_s3] sm:$0xff]  ;;  %s2344_s3 = smov 114   ;;  %s2346_s6 = smov 108  }
   0x5   :  { %2168 = vmatmul.mubr.msk.f32.vlgmr.msra.gmra.mrb[0].mxu0 %vm30_vm1, %v21_v3  ;;  %v444_v30 = vrot.slane %v2430_v29, 2  ;;  %v763_v3 = vrot.slane %v2430_v29, 4  ;;  %s2347_s7 = smov 106  }
   0x6   :  { %2177 = vmatprep.mubr.msk.f32.mxu0 %vm2336_vm0, %v2335_v0 }
  0xd8   :  { %v100_v5 = vpop.f32.mrb[0].mxu0 }
  0xd9   :  { %v2396_v6 = vadd.f32 %v2064_v4, %v100_v5  ;;  %v2169_v7 = vpop.f32.mrb[1].mxu0 }
  0xdb   :  { %276 = vrot.lane.b32.xlu1 %v2396_v6, %s2337_s0  ;;  %107 = vrot.lane.b32.xlu0 %v2396_v6, %s2338_s23  ;;  %v2469_v54 = vrot.slane %v2396_v6, 4 }
  0xdf   :  { %278 = vrot.lane.b32.xlu0 %v2396_v6, %s2339_s24 }
 0x14d   :  { %v108_v8 = vpop.permute.xlu0 %107  ;;  %v277_v10 = vpop.permute.xlu1 %276 }
 0x14e   :  { %2171 = vmatpush3.xpose.msk.msra.mxu1 %vm109_vm2, %v108_v8 }
 0x14f   :  { %2180 = vmatprep.subr.mxu1 %v2335_v0 }
 0x151   :  { %2173 = vmatmul.mubr.msk.f32.vlgmr.msra.gmra.mrb[0].mxu1 %vm109_vm2, %v2396_v6  ;;  %v279_v9 = vpop.permute.xlu0 %278 }
 0x152   :  { %2181 = vmatpush3.xpose.msk.msra.mxu1 %vm109_vm2, %v279_v9  ;;  %2182 = vmatprep.mubr.msk.f32.mxu1 %vm2336_vm0, %v2335_v0 }
 0x153   :  { %2190 = vmatprep.subr.mxu1 %v2335_v0 }
 0x155   :  { %2183 = vmatmul.mubr.msk.f32.vlgmr.msra.gmra.mrb[2].mxu1 %vm109_vm2, %v277_v10 }
 0x156   :  { %2192 = vmatprep.mubr.msk.f32.mxu1 %vm2336_vm0, %v2335_v0  ;;  %2191 = vmatpush3.msk.msra.mxu1 %vm448_vm4, %v444_v30 }
 0x157   :  { %2200 = vmatprep.subr.mxu1 %v2335_v0 }
 0x224   :  { %v180_v11 = vpop.f32.mrb[0].mxu1 }
 0x225   :  { %v184_v12 = vmul.f32 0.70710677, %v180_v11  ;;  %v2174_v13 = vpop.f32.mrb[1].mxu1 }
 0x227   :  { %v186_v14 = vsel %vm185_vm3, %v184_v12, -inf }
 0x228   :  { %187 = vmax.xlane.f32.xlu1 %v186_v14  ;;  %v350_v15 = vpop.f32.mrb[2].mxu1 }
 0x229   :  { %v354_v16 = vmul.f32 0.70710677, %v350_v15  ;;  %v2184_v17 = vpop.f32.mrb[3].mxu1 }
 0x22b   :  { %v355_v18 = vsel %vm185_vm3, %v354_v16, -inf }
 0x22c   :  { %356 = vmax.xlane.f32.xlu0 %v355_v18 }
 0x2b5   :  { %v188_v19 = vpop.xlane.xlu1 %187 }
 0x2b6   :  { %v189_v20 = vsub.f32 %v184_v12, %v188_v19 }
 0x2b8   :  { %v190_v21 = vmul.f32 1.442695, %v189_v20 }
 0x2b9   :  { %v357_v22 = vpop.xlane.xlu0 %356 }
 0x2ba   :  { %2303 = vpow2.f32 %v190_v21  ;;  %v358_v23 = vsub.f32 %v354_v16, %v357_v22 }
 0x2bc   :  { %v359_v24 = vmul.f32 1.442695, %v358_v23 }
 0x2be   :  { %2305 = vpow2.f32 %v359_v24 }
 0x2c4   :  { %v2304_v25 = vpop.eup %2303 }
 0x2c5   :  { %v192_v26 = vsel %vm185_vm3, %v2304_v25, 0.0 }
 0x2c6   :  { %193 = vadd.xlane.f32.xlu0 %v192_v26 }
 0x2c8   :  { %v2306_v27 = vpop.eup %2305 }
 0x2c9   :  { %v361_v28 = vsel %vm185_vm3, %v2306_v27, 0.0 }
 0x2ca   :  { %362 = vadd.xlane.f32.xlu1 %v361_v28 }
 0x2db   :  { %366 = vrot.lane.b32.xlu1 %v2396_v6, %s2340_s2 }
 0x2dc   :  { %197 = vrot.lane.b32.xlu0 %v2396_v6, %s2341_s25 }
 0x2df   :  { %598 = vrot.lane.b32.xlu1 %v2396_v6, %s2342_s26 }
 0x2e0   :  { %596 = vrot.lane.b32.xlu0 %v2396_v6, %s2343_s27 }
 0x353   :  { %v194_v31 = vpop.xlane.xlu0 %193 }
 0x354   :  { %2307 = vrcp.f32 %v194_v31 }
 0x357   :  { %v363_v32 = vpop.xlane.xlu1 %362  ;;  %v198_v33 = vpop.permute.xlu0 %197 }
 0x358   :  { %2309 = vrcp.f32 %v363_v32  ;;  %2176 = vmatpush3.msk.msra.mxu0 %vm203_vm5, %v198_v33 }
 0x359   :  { %2185 = vmatprep.subr.mxu0 %v2335_v0 }
 0x35b   :  { %v367_v36 = vpop.permute.xlu1 %366  ;;  %v597_v44 = vpop.permute.xlu0 %596 }
 0x35e   :  { %v2308_v34 = vpop.eup %2307 }
 0x35f   :  { %v196_v35 = vmul.f32 %v2308_v34, %v2304_v25  ;;  %v599_v42 = vpop.permute.xlu1 %598  ;;  %v1007_v25 = vrot.slane %v2430_v29, 6 }
 0x361   :  { %2178 = vmatmul.mubr.msk.f32.vlgmr.msra.gmra.mrb[2].mxu0 %vm199_vm6, %v196_v35 }
 0x362   :  { %v2310_v37 = vpop.eup %2309  ;;  %2186 = vmatpush3.msk.msra.mxu0 %vm203_vm5, %v367_v36  ;;  %2187 = vmatprep.mubr.msk.f32.mxu0 %vm2336_vm0, %v2335_v0 }
 0x363   :  { %v365_v38 = vmul.f32 %v2310_v37, %v2306_v27  ;;  %2195 = vmatprep.subr.mxu0 %v2335_v0 }
 0x365   :  { %2188 = vmatmul.mubr.msk.f32.vlgmr.msra.gmra.mrb[4].mxu0 %vm199_vm6, %v365_v38 }
 0x366   :  { %2196 = vmatpush3.msk.msra.mxu0 %vm448_vm4, %v2430_v29  ;;  %2197 = vmatprep.mubr.msk.f32.mxu0 %vm2336_vm0, %v2335_v0 }
 0x367   :  { %2205 = vmatprep.subr.mxu0 %v2335_v0 }
 0x434   :  { %v272_v39 = vpop.f32.mrb[2].mxu0 }
 0x435   :  { %v2179_v40 = vpop.f32.mrb[3].mxu0  ;;  %2198 = vmatmul.mubr.msk.f32.vlgmr.msra.gmra.mrb[6].mxu0 %vm109_vm2, %v272_v39 }
 0x436   :  { %2207 = vmatprep.mubr.msk.f32.mxu0 %vm2336_vm0, %v2335_v0 }
 0x438   :  { %v439_v41 = vpop.f32.mrb[4].mxu0 }
 0x439   :  { %v2189_v43 = vpop.f32.mrb[5].mxu0  ;;  %2193 = vmatmul.mubr.msk.f32.vlgmr.msra.gmra.mrb[4].mxu1 %vm109_vm2, %v439_v41 }
 0x43a   :  { %2201 = vmatpush3.xpose.msk.msra.mxu1 %vm109_vm2, %v599_v42  ;;  %2202 = vmatprep.mubr.msk.f32.mxu1 %vm2336_vm0, %v2335_v0 }
 0x43b   :  { %2210 = vmatprep.subr.mxu1 %v2335_v0 }
 0x43d   :  { %2203 = vmatmul.mubr.msk.f32.vlgmr.msra.gmra.mrb[6].mxu1 %vm109_vm2, %v597_v44 }
 0x43e   :  { %2212 = vmatprep.mubr.msk.f32.mxu1 %vm2336_vm0, %v2335_v0  ;;  %2211 = vmatpush3.msk.msra.mxu1 %vm448_vm4, %v763_v3 }
 0x43f   :  { %2220 = vmatprep.subr.mxu1 %v2335_v0 }
 0x508   :  { %v592_v45 = vpop.f32.mrb[6].mxu0 }
 0x509   :  { %v2199_v46 = vpop.f32.mrb[7].mxu0 }
 0x50c   :  { %v517_v47 = vpop.f32.mrb[4].mxu1 }
 0x50d   :  { %v2461_v48 = vadd.f32 %v592_v45, %v517_v47  ;;  %v2194_v49 = vpop.f32.mrb[5].mxu1 }
 0x510   :  { %v670_v50 = vpop.f32.mrb[6].mxu1 }
 0x511   :  { %v674_v51 = vmul.f32 0.70710677, %v670_v50  ;;  %v2204_v52 = vpop.f32.mrb[7].mxu1 }
 0x513   :  { %v675_v53 = vsel %vm185_vm3, %v674_v51, -inf }
 0x514   :  { %676 = vmax.xlane.f32.xlu1 %v675_v53 }
 0x525   :  { %842 = vrot.lane.b32.xlu1 %v2396_v6, %s2344_s3 }
 0x529   :  { %840 = vrot.lane.b32.xlu1 %v2396_v6, %s2345_s30 }
 0x52d   :  { %1092 = vrot.lane.b32.xlu1 %v2469_v54, %s2338_s23 }
 0x5a1   :  { %v677_v55 = vpop.xlane.xlu1 %676 }
 0x5a2   :  { %v678_v56 = vsub.f32 %v674_v51, %v677_v55 }
 0x5a4   :  { %v679_v57 = vmul.f32 1.442695, %v678_v56 }
 0x5a5   :  { %v843_v63 = vpop.permute.xlu1 %842 }
 0x5a6   :  { %2311 = vpow2.f32 %v679_v57 }
 0x5a9   :  { %v841_v2 = vpop.permute.xlu1 %840 }
 0x5ad   :  { %v1093_v19 = vpop.permute.xlu1 %1092 }
 0x5b0   :  { %v2312_v58 = vpop.eup %2311 }
 0x5b1   :  { %v681_v59 = vsel %vm185_vm3, %v2312_v58, 0.0 }
 0x5b2   :  { %682 = vadd.xlane.f32.xlu0 %v681_v59 }
 0x5c8   :  { %686 = vrot.lane.b32.xlu0 %v2396_v6, %s2346_s6 }
 0x63f   :  { %v683_v60 = vpop.xlane.xlu0 %682 }
 0x640   :  { %2313 = vrcp.f32 %v683_v60 }
 0x643   :  { %v687_v61 = vpop.permute.xlu0 %686 }
 0x644   :  { %2206 = vmatpush3.msk.msra.mxu0 %vm203_vm5, %v687_v61 }
 0x645   :  { %2215 = vmatprep.subr.mxu0 %v2335_v0 }
 0x64a   :  { %v2314_v62 = vpop.eup %2313 }
 0x64b   :  { %v685_v1 = vmul.f32 %v2314_v62, %v2312_v58 }
 0x64d   :  { %2208 = vmatmul.mubr.msk.f32.vlgmr.msra.gmra.mrb[8].mxu0 %vm199_vm6, %v685_v1 }
 0x64e   :  { %2216 = vmatpush3.xpose.msk.msra.mxu0 %vm109_vm2, %v843_v63  ;;  %2217 = vmatprep.mubr.msk.f32.mxu0 %vm2336_vm0, %v2335_v0 }
 0x64f   :  { %2225 = vmatprep.subr.mxu0 %v2335_v0 }
 0x651   :  { %2218 = vmatmul.mubr.msk.f32.vlgmr.msra.gmra.mrb[10].mxu0 %vm109_vm2, %v841_v2 }
 0x652   :  { %2227 = vmatprep.mubr.msk.f32.mxu0 %vm2336_vm0, %v2335_v0  ;;  %2226 = vmatpush3.msk.msra.mxu0 %vm448_vm4, %v1007_v25 }
 0x653   :  { %2235 = vmatprep.subr.mxu0 %v2335_v0 }
 0x720   :  { %v759_v4 = vpop.f32.mrb[8].mxu0 }
 0x721   :  { %v2209_v5 = vpop.f32.mrb[9].mxu0  ;;  %2213 = vmatmul.mubr.msk.f32.vlgmr.msra.gmra.mrb[8].mxu1 %vm109_vm2, %v759_v4 }
 0x722   :  { %2222 = vmatprep.mubr.msk.f32.mxu1 %vm2336_vm0, %v2335_v0 }
 0x724   :  { %v914_v7 = vpop.f32.mrb[10].mxu0 }
 0x725   :  { %v918_v8 = vmul.f32 0.70710677, %v914_v7  ;;  %v2219_v9 = vpop.f32.mrb[11].mxu0 }
 0x727   :  { %v919_v10 = vsel %vm185_vm3, %v918_v8, -inf }
 0x728   :  { %920 = vmax.xlane.f32.xlu0 %v919_v10 }
 0x73e   :  { %930 = vrot.lane.b32.xlu0 %v2396_v6, %s2347_s7 }
 0x742   :  { %1259 = vrot.lane.b32.xlu0 %v2469_v54, %s2339_s24 }
 0x7b5   :  { %v921_v11 = vpop.xlane.xlu0 %920 }
 0x7b6   :  { %v922_v12 = vsub.f32 %v918_v8, %v921_v11 }
 0x7b8   :  { %v923_v13 = vmul.f32 1.442695, %v922_v12 }
 0x7b9   :  { %v931_v14 = vpop.permute.xlu0 %930 }
 0x7ba   :  { %2315 = vpow2.f32 %v923_v13  ;;  %2221 = vmatpush3.msk.msra.mxu1 %vm203_vm5, %v931_v14 }
 0x7bb   :  { %2230 = vmatprep.subr.mxu1 %v2335_v0 }
 0x7bd   :  { %v1260_v23 = vpop.permute.xlu0 %1259 }
 0x7c4   :  { %v2316_v15 = vpop.eup %2315 }
 0x7c5   :  { %v925_v16 = vsel %vm185_vm3, %v2316_v15, 0.0 }
 0x7c6   :  { %926 = vadd.xlane.f32.xlu1 %v925_v16 }
 0x7d7   :  { %1257 = vrot.lane.b32.xlu1 %v2469_v54, %s2337_s0 }
 0x7f4   :  { %v835_v6 = vpop.f32.mrb[8].mxu1 }
 0x7f5   :  { %v839_v17 = vadd.f32 %v835_v6, %v2461_v48  ;;  %v2214_v18 = vpop.f32.mrb[9].mxu1 }
 0x853   :  { %v927_v20 = vpop.xlane.xlu1 %926 }
 0x854   :  { %2317 = vrcp.f32 %v927_v20 }
 0x857   :  { %v1258_v24 = vpop.permute.xlu1 %1257 }
 0x85e   :  { %v2318_v21 = vpop.eup %2317 }
 0x85f   :  { %v929_v22 = vmul.f32 %v2318_v21, %v2316_v15 }
 0x861   :  { %2223 = vmatmul.mubr.msk.f32.vlgmr.msra.gmra.mrb[10].mxu1 %vm199_vm6, %v929_v22 }
 0x862   :  { %2231 = vmatpush3.xpose.msk.msra.mxu1 %vm109_vm2, %v1093_v19  ;;  %2232 = vmatprep.mubr.msk.f32.mxu1 %vm2336_vm0, %v2335_v0 }
 0x863   :  { %2240 = vmatprep.subr.mxu1 %v2335_v0 }
 0x865   :  { %2233 = vmatmul.mubr.msk.f32.vlgmr.msra.gmra.mrb[12].mxu1 %vm109_vm2, %v2469_v54 }
 0x866   :  { %2241 = vmatpush3.xpose.msk.msra.mxu1 %vm109_vm2, %v1260_v23  ;;  %2242 = vmatprep.mubr.msk.f32.mxu1 %vm2336_vm0, %v2335_v0 }
 0x867   :  { %2250 = vmatprep.subr.mxu1 %v2335_v0 }
 0x869   :  { %2243 = vmatmul.mubr.msk.f32.vlgmr.msra.gmra.mrb[14].mxu1 %vm109_vm2, %v1258_v24 }
 0x86a   :  { %2251 = vmatpush3.msk.msra.mxu1 %vm448_vm4, %v444_v30  ;;  %2252 = vmatprep.mubr.msk.f32.mxu1 %vm2336_vm0, %v2335_v0 }
 0x86b   :  { %2260 = vmatprep.subr.mxu1 %v2335_v0 }
 0x934   :  { %v1003_v26 = vpop.f32.mrb[10].mxu1 }
 0x935   :  { %v2224_v27 = vpop.f32.mrb[11].mxu1  ;;  %2228 = vmatmul.mubr.msk.f32.vlgmr.msra.gmra.mrb[12].mxu0 %vm109_vm2, %v1003_v26 }
 0x936   :  { %2237 = vmatprep.mubr.msk.f32.mxu0 %vm2336_vm0, %v2335_v0 }
 0x938   :  { %v1164_v28 = vpop.f32.mrb[12].mxu1 }
 0x939   :  { %v1168_v30 = vmul.f32 0.70710677, %v1164_v28  ;;  %v2234_v31 = vpop.f32.mrb[13].mxu1 }
 0x93b   :  { %v1169_v32 = vsel %vm185_vm3, %v1168_v30, -inf }
 0x93c   :  { %1170 = vmax.xlane.f32.xlu0 %v1169_v32  ;;  %v1331_v33 = vpop.f32.mrb[14].mxu1 }
 0x93d   :  { %v1335_v34 = vmul.f32 0.70710677, %v1331_v33  ;;  %v2244_v35 = vpop.f32.mrb[15].mxu1 }
 0x93f   :  { %v1336_v36 = vsel %vm185_vm3, %v1335_v34, -inf }
 0x940   :  { %1337 = vmax.xlane.f32.xlu1 %v1336_v36 }
 0x951   :  { %1180 = vrot.lane.b32.xlu1 %v2469_v54, %s2341_s25 }
 0x955   :  { %1572 = vrot.lane.b32.xlu1 %v2469_v54, %s2342_s26 }
 0x959   :  { %1570 = vrot.lane.b32.xlu1 %v2469_v54, %s2343_s27 }
 0x9c9   :  { %v1171_v37 = vpop.xlane.xlu0 %1170 }
 0x9ca   :  { %v1172_v38 = vsub.f32 %v1168_v30, %v1171_v37 }
 0x9cc   :  { %v1173_v39 = vmul.f32 1.442695, %v1172_v38 }
 0x9cd   :  { %v1338_v40 = vpop.xlane.xlu1 %1337 }
 0x9ce   :  { %2319 = vpow2.f32 %v1173_v39  ;;  %v1339_v41 = vsub.f32 %v1335_v34, %v1338_v40 }
 0x9d0   :  { %v1340_v42 = vmul.f32 1.442695, %v1339_v41 }
 0x9d1   :  { %v1181_v43 = vpop.permute.xlu1 %1180 }
 0x9d2   :  { %2321 = vpow2.f32 %v1340_v42  ;;  %2236 = vmatpush3.msk.msra.mxu0 %vm203_vm5, %v1181_v43 }
 0x9d3   :  { %2245 = vmatprep.subr.mxu0 %v2335_v0 }
 0x9d5   :  { %v1573_v61 = vpop.permute.xlu1 %1572 }
 0x9d8   :  { %v2320_v44 = vpop.eup %2319 }
 0x9d9   :  { %v1175_v45 = vsel %vm185_vm3, %v2320_v44, 0.0  ;;  %v1571_v1 = vpop.permute.xlu1 %1570 }
 0x9da   :  { %1176 = vadd.xlane.f32.xlu0 %v1175_v45 }
 0x9dc   :  { %v2322_v46 = vpop.eup %2321 }
 0x9dd   :  { %v1342_v47 = vsel %vm185_vm3, %v2322_v46, 0.0 }
 0x9de   :  { %1343 = vadd.xlane.f32.xlu0 %v1342_v47 }
 0x9f4   :  { %1347 = vrot.lane.b32.xlu0 %v2469_v54, %s2340_s2 }
 0xa08   :  { %v1079_v48 = vpop.f32.mrb[12].mxu0 }
 0xa09   :  { %v2545_v49 = vadd.f32 %v1079_v48, %v839_v17  ;;  %v2229_v50 = vpop.f32.mrb[13].mxu0 }
 0xa67   :  { %v1177_v51 = vpop.xlane.xlu0 %1176 }
 0xa68   :  { %2323 = vrcp.f32 %v1177_v51 }
 0xa6b   :  { %v1344_v52 = vpop.xlane.xlu0 %1343 }
 0xa6c   :  { %2325 = vrcp.f32 %v1344_v52 }
 0xa6f   :  { %v1348_v56 = vpop.permute.xlu0 %1347 }
 0xa72   :  { %v2324_v53 = vpop.eup %2323 }
 0xa73   :  { %v1179_v55 = vmul.f32 %v2324_v53, %v2320_v44 }
 0xa75   :  { %2238 = vmatmul.mubr.msk.f32.vlgmr.msra.gmra.mrb[14].mxu0 %vm199_vm6, %v1179_v55 }
 0xa76   :  { %v2326_v57 = vpop.eup %2325  ;;  %2246 = vmatpush3.msk.msra.mxu0 %vm203_vm5, %v1348_v56  ;;  %2247 = vmatprep.mubr.msk.f32.mxu0 %vm2336_vm0, %v2335_v0 }
 0xa77   :  { %v1346_v58 = vmul.f32 %v2326_v57, %v2322_v46  ;;  %2255 = vmatprep.subr.mxu0 %v2335_v0 }
 0xa79   :  { %2248 = vmatmul.mubr.msk.f32.vlgmr.msra.gmra.mrb[16].mxu0 %vm199_vm6, %v1346_v58 }
 0xa7a   :  { %2256 = vmatpush3.msk.msra.mxu0 %vm448_vm4, %v2430_v29  ;;  %2257 = vmatprep.mubr.msk.f32.mxu0 %vm2336_vm0, %v2335_v0 }
 0xa7b   :  { %2265 = vmatprep.subr.mxu0 %v2335_v0 }
 0xb48   :  { %v1253_v59 = vpop.f32.mrb[14].mxu0 }
 0xb49   :  { %v2239_v60 = vpop.f32.mrb[15].mxu0  ;;  %2258 = vmatmul.mubr.msk.f32.vlgmr.msra.gmra.mrb[18].mxu0 %vm109_vm2, %v1253_v59 }
 0xb4a   :  { %2267 = vmatprep.mubr.msk.f32.mxu0 %vm2336_vm0, %v2335_v0 }
 0xb4c   :  { %v1420_v62 = vpop.f32.mrb[16].mxu0 }
 0xb4d   :  { %v2249_v63 = vpop.f32.mrb[17].mxu0  ;;  %2253 = vmatmul.mubr.msk.f32.vlgmr.msra.gmra.mrb[16].mxu1 %vm109_vm2, %v1420_v62 }
 0xb4e   :  { %2261 = vmatpush3.xpose.msk.msra.mxu1 %vm109_vm2, %v1573_v61  ;;  %2262 = vmatprep.mubr.msk.f32.mxu1 %vm2336_vm0, %v2335_v0 }
 0xb4f   :  { %2270 = vmatprep.subr.mxu1 %v2335_v0 }
 0xb51   :  { %2263 = vmatmul.mubr.msk.f32.vlgmr.msra.gmra.mrb[18].mxu1 %vm109_vm2, %v1571_v1 }
 0xb52   :  { %2271 = vmatpush3.msk.msra.mxu1 %vm448_vm4, %v763_v3  ;;  %2272 = vmatprep.mubr.msk.f32.mxu1 %vm2336_vm0, %v2335_v0 }
 0xb53   :  { %2280 = vmatprep.subr.mxu1 %v2335_v0 }
 0xc1c   :  { %v1566_v2 = vpop.f32.mrb[18].mxu0 }
 0xc1d   :  { %v2259_v4 = vpop.f32.mrb[19].mxu0 }
 0xc20   :  { %v1493_v5 = vpop.f32.mrb[16].mxu1 }
 0xc21   :  { %v1567_v7 = vadd.f32 %v1566_v2, %v1493_v5  ;;  %v2254_v8 = vpop.f32.mrb[17].mxu1 }
 0xc24   :  { %v1644_v9 = vpop.f32.mrb[18].mxu1 }
 0xc25   :  { %v1648_v10 = vmul.f32 0.70710677, %v1644_v9  ;;  %v2264_v11 = vpop.f32.mrb[19].mxu1 }
 0xc27   :  { %v1649_v12 = vsel %vm185_vm3, %v1648_v10, -inf }
 0xc28   :  { %1650 = vmax.xlane.f32.xlu0 %v1649_v12 }
 0xc3e   :  { %1660 = vrot.lane.b32.xlu0 %v2469_v54, %s2346_s6 }
 0xc42   :  { %1811 = vrot.lane.b32.xlu0 %v2469_v54, %s2345_s30 }
 0xcb5   :  { %v1651_v3 = vpop.xlane.xlu0 %1650 }
 0xcb6   :  { %v1652_v13 = vsub.f32 %v1648_v10, %v1651_v3 }
 0xcb8   :  { %v1653_v14 = vmul.f32 1.442695, %v1652_v13 }
 0xcb9   :  { %v1661_v15 = vpop.permute.xlu0 %1660 }
 0xcba   :  { %2327 = vpow2.f32 %v1653_v14  ;;  %2266 = vmatpush3.msk.msra.mxu0 %vm203_vm5, %v1661_v15 }
 0xcbb   :  { %2275 = vmatprep.subr.mxu0 %v2335_v0 }
 0xcbd   :  { %v1812_v21 = vpop.permute.xlu0 %1811 }
 0xcc4   :  { %v2328_v16 = vpop.eup %2327 }
 0xcc5   :  { %v1655_v6 = vsel %vm185_vm3, %v2328_v16, 0.0 }
 0xcc6   :  { %1656 = vadd.xlane.f32.xlu1 %v1655_v6 }
 0xcd7   :  { %1813 = vrot.lane.b32.xlu1 %v2469_v54, %s2344_s3 }
 0xd53   :  { %v1657_v17 = vpop.xlane.xlu1 %1656 }
 0xd54   :  { %2329 = vrcp.f32 %v1657_v17 }
 0xd57   :  { %v1814_v20 = vpop.permute.xlu1 %1813 }
 0xd5e   :  { %v2330_v18 = vpop.eup %2329 }
 0xd5f   :  { %v1659_v19 = vmul.f32 %v2330_v18, %v2328_v16 }
 0xd61   :  { %2268 = vmatmul.mubr.msk.f32.vlgmr.msra.gmra.mrb[20].mxu0 %vm199_vm6, %v1659_v19 }
 0xd62   :  { %2276 = vmatpush3.xpose.msk.msra.mxu0 %vm109_vm2, %v1814_v20  ;;  %2277 = vmatprep.mubr.msk.f32.mxu0 %vm2336_vm0, %v2335_v0 }
 0xd63   :  { %2285 = vmatprep.subr.mxu0 %v2335_v0 }
 0xd65   :  { %2278 = vmatmul.mubr.msk.f32.vlgmr.msra.gmra.mrb[22].mxu0 %vm109_vm2, %v1812_v21 }
 0xd66   :  { %2286 = vmatpush3.msk.msra.mxu0 %vm448_vm4, %v1007_v25  ;;  %2287 = vmatprep.mubr.msk.f32.mxu0 %vm2336_vm0, %v2335_v0 }
 0xe34   :  { %v1733_v22 = vpop.f32.mrb[20].mxu0 }
 0xe35   :  { %v2269_v23 = vpop.f32.mrb[21].mxu0  ;;  %2273 = vmatmul.mubr.msk.f32.vlgmr.msra.gmra.mrb[20].mxu1 %vm109_vm2, %v1733_v22 }
 0xe36   :  { %2282 = vmatprep.mubr.msk.f32.mxu1 %vm2336_vm0, %v2335_v0 }
 0xe38   :  { %v1885_v24 = vpop.f32.mrb[22].mxu0 }
 0xe39   :  { %v1889_v26 = vmul.f32 0.70710677, %v1885_v24  ;;  %v2279_v27 = vpop.f32.mrb[23].mxu0 }
 0xe3b   :  { %v1890_v28 = vsel %vm185_vm3, %v1889_v26, -inf }
 0xe3c   :  { %1891 = vmax.xlane.f32.xlu1 %v1890_v28 }
 0xec9   :  { %v1892_v30 = vpop.xlane.xlu1 %1891 }
 0xeca   :  { %v1893_v29 = vsub.f32 %v1889_v26, %v1892_v30 }
 0xecc   :  { %v1894_v31 = vmul.f32 1.442695, %v1893_v29 }
 0xece   :  { %2331 = vpow2.f32 %v1894_v31 }
 0xed8   :  { %v2332_v25 = vpop.eup %2331 }
 0xed9   :  { %v1896_v32 = vsel %vm185_vm3, %v2332_v25, 0.0 }
 0xeda   :  { %1897 = vadd.xlane.f32.xlu0 %v1896_v32 }
 0xef0   :  { %1901 = vrot.lane.b32.xlu0 %v2469_v54, %s2347_s7  ;;  %v2090_v54 = vld [vmem:[%s2616_s4] ss:$0 sm:$0xff] }
 0xef1   :  { %v1090_v45 = vadd.f32 %v2090_v54, %v2545_v49 }
 0xf08   :  { %v1806_v33 = vpop.f32.mrb[20].mxu1 }
 0xf09   :  { %v1810_v34 = vadd.f32 %v1806_v33, %v1567_v7  ;;  %v2274_v0 = vpop.f32.mrb[21].mxu1 }
 0xf67   :  { %v1898_v35 = vpop.xlane.xlu0 %1897 }
 0xf68   :  { %2333 = vrcp.f32 %v1898_v35 }
 0xf6b   :  { %v1902_v36 = vpop.permute.xlu0 %1901 }
 0xf6c   :  { %2281 = vmatpush3.msk.msra.mxu1 %vm203_vm5, %v1902_v36 }
 0xf72   :  { %v2334_v37 = vpop.eup %2333 }
 0xf73   :  { %v1900_v38 = vmul.f32 %v2334_v37, %v2332_v25 }
 0xf75   :  { %2283 = vmatmul.mubr.msk.f32.vlgmr.msra.gmra.mrb[22].mxu1 %vm199_vm6, %v1900_v38 }
0x1048   :  { %v1974_v39 = vpop.f32.mrb[22].mxu1 }
0x1049   :  { %v2284_v40 = vpop.f32.mrb[23].mxu1  ;;  %2288 = vmatmul.mubr.msk.f32.vlgmr.msra.gmra.mrb[24].mxu0 %vm109_vm2, %v1974_v39 }
0x111c   :  { %v2047_v41 = vpop.f32.mrb[24].mxu0 }
0x111d   :  { %v2051_v42 = vadd.f32 %v2047_v41, %v1810_v34  ;;  %v2289_v43 = vpop.f32.mrb[25].mxu0 }
0x111f   :  { %v2052_v44 = vadd.f32 %v2090_v54, %v2051_v42 }
0x1121   :  { %v2054_v46 = vrot.slane %v2052_v44, 4 }
0x1123   :  { %v2056_v47 = vsel %vm203_vm5, %v1090_v45, %v2054_v46 }
0x1124   :  { %v2057_v48 = vpack.c.bf16 %v2056_v47, %v2056_v47 }
0x1126   :  { %2059 = vst.msk [vmem:[%s2617_s5] sm:$0xf] %vm2058_vm7, %v2057_v48 }

// kernel: denoiser_forward.19
= control target key start
LH: loop header
LB: loop body
LE: loop exit
PB: predicated region body
PF: predicated region fallthrough
CT: control target
= control target key end

     0   :  { %11 = vsyncpa [#allocation3], 0  ;;  %s3337_s0 = inlined_call_operand.vmem [shape: f32[4], index: 0, kind: input, shape index: {}]   ;;  %s3338_s1 = inlined_call_operand.vmem [shape: bf16[16,8], index: 1, kind: input, shape index: {}]   ;;  %s3339_s2 = inlined_call_operand.vmem [shape: bf16[8,8], index: 2, kind: input, shape index: {}]   ;;  %s3340_s3 = inlined_call_operand.vmem [shape: f32[16,16], index: 3, kind: input, shape index: {}]   ;;  %s3341_s4 = inlined_call_operand.vmem [shape: f32[32,8], index: 4, kind: input, shape index: {}]   ;;  %s3342_s5 = inlined_call_operand.vmem [shape: f32[16,16], index: 5, kind: input, shape index: {}]   ;;  %s3343_s6 = inlined_call_operand.vmem [shape: bf16[24,8], index: 6, kind: output, shape index: {}]  }
   0x1   :  { %s18_s23 = sshll.u32 %s3337_s0, 4  ;;  %s19_s23 = int_to_ptr.vmem [resolvable:$true] %s18_s23 }
   0x2   :  { %s2916_s24 = scalar_lea.vmem %s19_s23, 16  ;;  %p2921_p1 = scmp.lt.s32.totalorder %s19_s23, %s19_s23 }
   0x3   :  { %p2917_p0 = scmp.ne.s32.totalorder %s19_s23, %s2916_s24  ;;  %p2922_p2 = scmp.lt.s32.totalorder %s2916_s24, %s2916_s24 }
   0x5   :  { %p2923_p3 = por %p2922_p2, %p2921_p1 }
   0x7   :  { %p2924_p4 = pnand %p2923_p3, %p2917_p0 }
   0x9   :  { %2927 = shalt.err (!%p2924_p4)
}
   0xa   :  { %s2930_s25 = smov [#allocation2]  }
   0xb   :  { %21 = dma.vmem_to_smem %s19_s23, 16, %s2930_s25, [#allocation3]  }
   0xc   :  { %2928 = dma.done.wait [#allocation3], 16  }
   0xd   :  { %2929 = vsyncadd [#allocation3], 4294967280 }
   0xe   :  { %35 = sfence }
   0xf   :  { %v40_v0 = vld [vmem:[%s3339_s2] sm:$0xf]  ;;  %vm2503_vm0 = vcmask 60416   ;;  %vm130_vm1 = vcmask 64512   ;;  %vm44_vm2 = vcmask 130048   ;;  %v127_v6 = vld [vmem:[%s3341_s4 + $0x8] sm:$0xff] }
  0x10   :  { %v126_v1 = vld [vmem:[%s3341_s4] sm:$0xff]  ;;  %v41_v3 = vunpack.c.l.bf16 %v40_v0  ;;  %v2590_v4 = vcombine.low %v40_v0, %v40_v0  ;;  %v43_v7 = vld [vmem:[%s3340_s3 + $0x8] sm:$0xff]  ;;  %vm427_vm3 = vcmask 31748   ;;  %vm231_vm4 = vcmask 27648   ;;  %v128_v18 = vld [vmem:[%s3341_s4 + $0x10] sm:$0xff]  ;;  %s3057_s16 = sld [smem:[#allocation2 + $0x1]] }
  0x11   :  { %v2587_v2 = vld [vmem:[%s3338_s1] sm:$0xff]   ;;  %2665 = vmatprep.mubr.msk.f32.mxu1 %vm130_vm1, %v126_v1  ;;  %v129_v19 = vld [vmem:[%s3341_s4 + $0x18] sm:$0xff]  ;;  %v2931_v20 = vmov 0.0   ;;  %vm2932_vm5 = vmmov 0   ;;  %vm259_vm14 = vcmask 31744   ;;  %vm353_vm15 = vcmask 1043456  }
  0x12   :  { %2792 = vmatprep.subr.bf16.mxu0 %v2587_v2  ;;  %v42_v5 = vld [vmem:[%s3340_s3] sm:$0xff]  ;;  %2663 = vmatprep.subr.mxu1 %v41_v3  ;;  %2504 = vst.msk [vmem:[%s3343_s6] sm:$0xf] %vm2503_vm0, %v2590_v4  ;;  %s3055_s4 = sld [smem:[#allocation2]]  ;;  %s3106_s17 = sld [smem:[#allocation2 + $0x2]] }
  0x13   :  { %2794 = vmatpush3.bf16.msra.mxu0 %v2587_v2  ;;  %2660 = vmatprep.mubr.msk.f32.mxu0 %vm44_vm2, %v42_v5  ;;  %s2933_s20 = smov 124   ;;  %s2934_s23 = smov 120  }
  0x14   :  { %2664 = vmatpush3.msra.mxu1 %v41_v3  ;;  %2681 = vmatprep.subr.mxu0 %v2931_v20  ;;  %s3143_s24 = sld [smem:[#allocation2 + $0x3]]  ;;  %s2936_s25 = smov 4  }
  0x15   :  { %2666 = vmatmul.mubr.msk.f32.vlgmr.msra.gmra.mrb[0].mxu1 %vm130_vm1, %v127_v6  ;;  %2671 = vmatprep.subr.mxu1 %v2931_v20 }
  0x16   :  { %2661 = vmatmul.mubr.msk.f32.vlgmr.msra.gmra.mrb[0].mxu0 %vm44_vm2, %v43_v7  ;;  %2668 = vmatprep.mubr.msk.f32.mxu1 %vm130_vm1, %v128_v18  ;;  %v533_v62 = vstv %s3057_s16 }
  0x17   :  { %2683 = vmatprep.mubr.msk.f32.mxu0 %vm2932_vm5, %v2931_v20 }
  0x18   :  { %v337_v61 = vstv %s3055_s4 }
  0x19   :  { %2669 = vmatmul.mubr.msk.f32.gmra.mrb[2].mxu1 %vm130_vm1, %v129_v19 }
  0x1a   :  { %2673 = vmatprep.mubr.msk.f32.mxu1 %vm2932_vm5, %v2931_v20 }
  0xe8   :  { %v2999_v8 = vpop.f32.mrb[0].mxu1 }
  0xe9   :  { %v3001_v9 = vpop.f32.mrb[0].mxu0  ;;  %v3003_v10 = vpop.f32.mrb[1].mxu1  ;;  %v3068_v6 = vmul.f32 %v2999_v8, %v2999_v8 }
  0xea   :  { %v3005_v11 = vpop.f32.mrb[1].mxu0  ;;  %v3009_v12 = vmul.f32 %v3003_v10, %v3003_v10 }
  0xeb   :  { %v3013_v13 = vmul.f32 %v3005_v11, %v3005_v11 }
  0xec   :  { %v441_v14 = vsel %vm427_vm3, %v3009_v12, 0.0  ;;  %v246_v15 = vsel %vm231_vm4, %v3009_v12, 0.0  ;;  %v3048_v59 = vpop.f32.mrb[2].mxu1 }
  0xed   :  { %442 = vadd.xlane.f32.xlu1 %v441_v14  ;;  %247 = vadd.xlane.f32.xlu0 %v246_v15  ;;  %v428_v16 = vsel %vm427_vm3, %v3013_v13, 0.0  ;;  %v232_v17 = vsel %vm231_vm4, %v3013_v13, 0.0  ;;  %v3050_v60 = vpop.f32.mrb[3].mxu1  ;;  %v3073_v14 = vmul.f32 %v3001_v9, %v3001_v9  ;;  %v807_v15 = vsel %vm231_vm4, %v3068_v6, 0.0 }
  0xf1   :  { %429 = vadd.xlane.f32.xlu1 %v428_v16  ;;  %233 = vadd.xlane.f32.xlu0 %v232_v17  ;;  %v793_v16 = vsel %vm231_vm4, %v3073_v14, 0.0 }
 0x17a   :  { %v443_v21 = vpop.xlane.xlu1 %442  ;;  %v248_v22 = vpop.xlane.xlu0 %247 }
 0x17b   :  { %2820 = vrsqrt.f32 %v443_v21  ;;  %vm446_vm6 = vcmp.eq.f32.partialorder %v443_v21, inf  ;;  %v449_v28 = vand.u32 2147483648, %v443_v21  ;;  %vm448_vm7 = vcmp.eq.f32.partialorder %v443_v21, 0.0 }
 0x17c   :  { %2822 = vrsqrt.f32 %v248_v22  ;;  %vm251_vm8 = vcmp.eq.f32.partialorder %v248_v22, inf  ;;  %v254_v31 = vand.u32 2147483648, %v248_v22  ;;  %vm253_vm9 = vcmp.eq.f32.partialorder %v248_v22, 0.0 }
 0x17e   :  { %v430_v23 = vpop.xlane.xlu1 %429  ;;  %v234_v24 = vpop.xlane.xlu0 %233 }
 0x17f   :  { %2824 = vrsqrt.f32 %v430_v23  ;;  %vm433_vm10 = vcmp.eq.f32.partialorder %v430_v23, inf  ;;  %vm435_vm11 = vcmp.eq.f32.partialorder %v430_v23, 0.0  ;;  %v436_v40 = vand.u32 2147483648, %v430_v23 }
 0x180   :  { %2826 = vrsqrt.f32 %v234_v24  ;;  %vm237_vm12 = vcmp.eq.f32.partialorder %v234_v24, inf  ;;  %v240_v43 = vand.u32 2147483648, %v234_v24  ;;  %vm239_vm13 = vcmp.eq.f32.partialorder %v234_v24, 0.0 }
 0x185   :  { %v2821_v25 = vpop.eup %2820 }
 0x186   :  { %v2823_v26 = vpop.eup %2822  ;;  %v445_v27 = vmul.f32 %v2821_v25, %v443_v21 }
 0x187   :  { %v250_v29 = vmul.f32 %v2823_v26, %v248_v22 }
 0x188   :  { %v447_v30 = vsel %vm446_vm6, %v443_v21, %v445_v27 }
 0x189   :  { %v2825_v32 = vpop.eup %2824  ;;  %v450_v33 = vsel %vm448_vm7, %v449_v28, %v447_v30  ;;  %v252_v34 = vsel %vm251_vm8, %v248_v22, %v250_v29  ;;  %v1087_v28 = vsel %vm427_vm3, %v3068_v6, 0.0 }
 0x18a   :  { %v2827_v35 = vpop.eup %2826  ;;  %v451_v36 = vmax.f32 %v450_v33, 1e-12  ;;  %v255_v37 = vsel %vm253_vm9, %v254_v31, %v252_v34  ;;  %v432_v38 = vmul.f32 %v2825_v32, %v430_v23 }
 0x18b   :  { %v256_v39 = vmax.f32 %v255_v37, 1e-12  ;;  %v236_v41 = vmul.f32 %v2827_v35, %v234_v24 }
 0x18c   :  { %2828 = vrcp.f32 %v451_v36  ;;  %v434_v42 = vsel %vm433_vm10, %v430_v23, %v432_v38 }
 0x18d   :  { %2830 = vrcp.f32 %v256_v39  ;;  %v437_v44 = vsel %vm435_vm11, %v436_v40, %v434_v42  ;;  %v238_v45 = vsel %vm237_vm12, %v234_v24, %v236_v41 }
 0x18e   :  { %v438_v46 = vmax.f32 %v437_v44, 1e-12  ;;  %v241_v47 = vsel %vm239_vm13, %v240_v43, %v238_v45 }
 0x18f   :  { %v242_v48 = vmax.f32 %v241_v47, 1e-12 }
 0x190   :  { %2832 = vrcp.f32 %v438_v46 }
 0x191   :  { %2834 = vrcp.f32 %v242_v48  ;;  %v546_v48 = vrot.slane %v3050_v60, 4 }
 0x196   :  { %v2829_v49 = vpop.eup %2828 }
 0x197   :  { %v2831_v50 = vpop.eup %2830  ;;  %v453_v51 = vmul.f32 %v2829_v49, %v3003_v10 }
 0x198   :  { %v258_v52 = vmul.f32 %v2831_v50, %v3003_v10 }
 0x199   :  { %v457_v53 = vrot.slane %v453_v51, 4 }
 0x19a   :  { %v2833_v54 = vpop.eup %2832  ;;  %2672 = vmatpush3.xpose.msk.msra.mxu1 %vm259_vm14, %v258_v52 }
 0x19b   :  { %v2835_v55 = vpop.eup %2834  ;;  %2682 = vmatpush3.xpose.msk.msra.mxu0 %vm259_vm14, %v457_v53  ;;  %v440_v56 = vmul.f32 %v2833_v54, %v3005_v11  ;;  %2676 = vmatprep.subr.mxu1 %v2931_v20 }
 0x19c   :  { %v244_v57 = vmul.f32 %v2835_v55, %v3005_v11 }
 0x19d   :  { %v455_v58 = vrot.slane %v440_v56, 4 }
 0x19e   :  { %2674 = vmatmul.mubr.msk.f32.vlgmr.msra.gmra.mrb[4].mxu1 %vm259_vm14, %v244_v57 }
 0x19f   :  { %2684 = vmatmul.mubr.msk.f32.vlgmr.msra.gmra.mrb[2].mxu0 %vm259_vm14, %v455_v58  ;;  %2678 = vmatprep.mubr.msk.f32.mxu1 %vm2932_vm5, %v2931_v20  ;;  %v897_v58 = vstv %s3106_s17 }
 0x1a0   :  { %2677 = vmatpush3.msk.msra.mxu1 %vm353_vm15, %v3050_v60 }
 0x1a1   :  { %2686 = vmatprep.subr.mxu1 %v2931_v20 }
 0x271   :  { %v332_v63 = vpop.f32.mrb[4].mxu1 }
 0x272   :  { %v338_v0 = vmul.f32 %v337_v61, %v332_v63  ;;  %v2675_v1 = vpop.f32.mrb[5].mxu1  ;;  %v528_v2 = vpop.f32.mrb[2].mxu0 }
 0x273   :  { %v534_v3 = vmul.f32 %v533_v62, %v528_v2  ;;  %v2685_v4 = vpop.f32.mrb[3].mxu0 }
 0x274   :  { %v339_v5 = vsel %vm231_vm4, %v338_v0, -inf }
 0x275   :  { %340 = vmax.xlane.f32.xlu0 %v339_v5  ;;  %v535_v7 = vsel %vm231_vm4, %v534_v3, -inf }
 0x276   :  { %536 = vmax.xlane.f32.xlu1 %v535_v7 }
 0x279   :  { %808 = vadd.xlane.f32.xlu0 %v807_v15 }
 0x27a   :  { %794 = vadd.xlane.f32.xlu1 %v793_v16 }
 0x302   :  { %v341_v17 = vpop.xlane.xlu0 %340 }
 0x303   :  { %v342_v18 = vsub.f32 %v338_v0, %v341_v17  ;;  %v537_v19 = vpop.xlane.xlu1 %536 }
 0x304   :  { %v538_v21 = vsub.f32 %v534_v3, %v537_v19  ;;  %v1074_v3 = vsel %vm427_vm3, %v3073_v14, 0.0 }
 0x305   :  { %v343_v22 = vmul.f32 1.442695, %v342_v18 }
 0x306   :  { %v539_v23 = vmul.f32 1.442695, %v538_v21  ;;  %v809_v29 = vpop.xlane.xlu0 %808 }
 0x307   :  { %2836 = vpow2.f32 %v343_v22  ;;  %v795_v30 = vpop.xlane.xlu1 %794  ;;  %vm812_vm1 = vcmp.eq.f32.partialorder %v809_v29, inf  ;;  %v815_v36 = vand.u32 2147483648, %v809_v29  ;;  %vm814_vm2 = vcmp.eq.f32.partialorder %v809_v29, 0.0 }
 0x308   :  { %2838 = vpow2.f32 %v539_v23  ;;  %vm798_vm6 = vcmp.eq.f32.partialorder %v795_v30, inf  ;;  %v801_v40 = vand.u32 2147483648, %v795_v30  ;;  %vm800_vm7 = vcmp.eq.f32.partialorder %v795_v30, 0.0 }
 0x309   :  { %2840 = vrsqrt.f32 %v809_v29 }
 0x30a   :  { %2842 = vrsqrt.f32 %v795_v30 }
 0x311   :  { %v2837_v24 = vpop.eup %2836 }
 0x312   :  { %v2839_v25 = vpop.eup %2838  ;;  %v345_v26 = vsel %vm231_vm4, %v2837_v24, 0.0 }
 0x313   :  { %346 = vadd.xlane.f32.xlu0 %v345_v26  ;;  %v541_v27 = vsel %vm231_vm4, %v2839_v25, 0.0  ;;  %v2841_v31 = vpop.eup %2840 }
 0x314   :  { %542 = vadd.xlane.f32.xlu1 %v541_v27  ;;  %v2843_v32 = vpop.eup %2842  ;;  %v811_v33 = vmul.f32 %v2841_v31, %v809_v29 }
 0x315   :  { %v797_v34 = vmul.f32 %v2843_v32, %v795_v30 }
 0x316   :  { %v813_v35 = vsel %vm812_vm1, %v809_v29, %v811_v33 }
 0x317   :  { %v816_v37 = vsel %vm814_vm2, %v815_v36, %v813_v35  ;;  %v799_v38 = vsel %vm798_vm6, %v795_v30, %v797_v34 }
 0x318   :  { %1088 = vadd.xlane.f32.xlu1 %v1087_v28  ;;  %v817_v42 = vmax.f32 %v816_v37, 1e-12  ;;  %v802_v43 = vsel %vm800_vm7, %v801_v40, %v799_v38 }
 0x319   :  { %v803_v44 = vmax.f32 %v802_v43, 1e-12 }
 0x3a0   :  { %v347_v39 = vpop.xlane.xlu0 %346 }
 0x3a1   :  { %2844 = vrcp.f32 %v347_v39  ;;  %v543_v41 = vpop.xlane.xlu1 %542 }
 0x3a2   :  { %2846 = vrcp.f32 %v543_v41  ;;  %v3132_v41 = vld [vmem:[%s3342_s5 + $0x8] sm:$0xff] }
 0x3a3   :  { %2848 = vrcp.f32 %v817_v42  ;;  %v3139_v42 = vld [vmem:[%s3342_s5] sm:$0xff]  ;;  %s2935_s5 = smov 116  }
 0x3a4   :  { %2850 = vrcp.f32 %v803_v44 }
 0x3a5   :  { %v1089_v17 = vpop.xlane.xlu1 %1088 }
 0x3a6   :  { %vm1092_vm8 = vcmp.eq.f32.partialorder %v1089_v17, inf  ;;  %vm1094_vm9 = vcmp.eq.f32.partialorder %v1089_v17, 0.0 }
 0x3ab   :  { %v2845_v45 = vpop.eup %2844 }
 0x3ac   :  { %v349_v46 = vmul.f32 %v2845_v45, %v2837_v24  ;;  %v2847_v47 = vpop.eup %2846  ;;  %v1179_v45 = vstv %s3143_s24 }
 0x3ad   :  { %v545_v49 = vmul.f32 %v2847_v47, %v2839_v25  ;;  %v2849_v50 = vpop.eup %2848  ;;  %v1095_v25 = vand.u32 2147483648, %v1089_v17 }
 0x3ae   :  { %2679 = vmatmul.mubr.msk.f32.vlgmr.msra.gmra.mrb[6].mxu1 %vm259_vm14, %v349_v46  ;;  %v2851_v51 = vpop.eup %2850  ;;  %v819_v52 = vmul.f32 %v2849_v50, %v2999_v8 }
 0x3af   :  { %2687 = vmatpush3.msk.msra.mxu1 %vm353_vm15, %v546_v48  ;;  %2688 = vmatprep.mubr.msk.f32.mxu1 %vm2932_vm5, %v2931_v20  ;;  %v805_v53 = vmul.f32 %v2851_v51, %v3001_v9 }
 0x3b0   :  { %2701 = vmatprep.subr.mxu1 %v2931_v20 }
 0x3b2   :  { %2689 = vmatmul.mubr.msk.f32.vlgmr.msra.gmra.mrb[8].mxu1 %vm259_vm14, %v545_v49 }
 0x3b3   :  { %2703 = vmatprep.mubr.msk.f32.mxu1 %vm2932_vm5, %v2931_v20 }
 0x3b6   :  { %2702 = vmatpush3.xpose.msk.msra.mxu1 %vm259_vm14, %v819_v52 }
 0x3b7   :  { %2706 = vmatprep.subr.mxu1 %v2931_v20 }
 0x3b9   :  { %2704 = vmatmul.mubr.msk.f32.vlgmr.msra.gmra.mrb[10].mxu1 %vm259_vm14, %v805_v53 }
 0x3ba   :  { %2707 = vmatpush3.msk.msra.mxu1 %vm353_vm15, %v3048_v59  ;;  %2708 = vmatprep.mubr.msk.f32.mxu1 %vm2932_vm5, %v2931_v20 }
 0x3bb   :  { %2716 = vmatprep.subr.mxu1 %v2931_v20 }
 0x481   :  { %v3104_v54 = vpop.f32.mrb[6].mxu1 }
 0x482   :  { %v2680_v55 = vpop.f32.mrb[7].mxu1 }
 0x485   :  { %v618_v56 = vpop.f32.mrb[8].mxu1 }
 0x486   :  { %v2690_v57 = vpop.f32.mrb[9].mxu1  ;;  %2691 = vmatprep.subr.msk.mxu0 %vm353_vm15, %v618_v56 }
 0x487   :  { %2692 = vmatpush3.msk.msra.mxu0 %vm353_vm15, %v618_v56 }
 0x488   :  { %2696 = vmatprep.subr.msk.mxu0 %vm353_vm15, %v3104_v54 }
 0x48c   :  { %v892_v63 = vpop.f32.mrb[10].mxu1 }
 0x48d   :  { %v898_v0 = vmul.f32 %v897_v58, %v892_v63  ;;  %v2705_v1 = vpop.f32.mrb[11].mxu1 }
 0x48f   :  { %v899_v2 = vsel %vm231_vm4, %v898_v0, -inf }
 0x490   :  { %900 = vmax.xlane.f32.xlu0 %v899_v2 }
 0x494   :  { %1075 = vadd.xlane.f32.xlu0 %v1074_v3 }
 0x51d   :  { %v901_v4 = vpop.xlane.xlu0 %900 }
 0x51e   :  { %v902_v5 = vsub.f32 %v898_v0, %v901_v4 }
 0x520   :  { %v903_v7 = vmul.f32 1.442695, %v902_v5 }
 0x521   :  { %v1076_v18 = vpop.xlane.xlu0 %1075 }
 0x522   :  { %2852 = vpow2.f32 %v903_v7  ;;  %vm1079_vm10 = vcmp.eq.f32.partialorder %v1076_v18, inf  ;;  %v1082_v28 = vand.u32 2147483648, %v1076_v18  ;;  %vm1081_vm11 = vcmp.eq.f32.partialorder %v1076_v18, 0.0 }
 0x523   :  { %2854 = vrsqrt.f32 %v1089_v17  ;;  %v1192_v7 = vrot.slane %v3048_v59, 4 }
 0x524   :  { %2856 = vrsqrt.f32 %v1076_v18 }
 0x52c   :  { %v2853_v15 = vpop.eup %2852 }
 0x52d   :  { %v905_v16 = vsel %vm231_vm4, %v2853_v15, 0.0  ;;  %v2855_v19 = vpop.eup %2854 }
 0x52e   :  { %906 = vadd.xlane.f32.xlu1 %v905_v16  ;;  %v2857_v21 = vpop.eup %2856  ;;  %v1091_v22 = vmul.f32 %v2855_v19, %v1089_v17 }
 0x52f   :  { %v1078_v23 = vmul.f32 %v2857_v21, %v1076_v18 }
 0x530   :  { %v1093_v24 = vsel %vm1092_vm8, %v1089_v17, %v1091_v22 }
 0x531   :  { %v1096_v26 = vsel %vm1094_vm9, %v1095_v25, %v1093_v24  ;;  %v1080_v27 = vsel %vm1079_vm10, %v1076_v18, %v1078_v23 }
 0x532   :  { %v1097_v29 = vmax.f32 %v1096_v26, 1e-12  ;;  %v1083_v30 = vsel %vm1081_vm11, %v1082_v28, %v1080_v27 }
 0x533   :  { %v1084_v31 = vmax.f32 %v1083_v30, 1e-12 }
 0x534   :  { %2858 = vrcp.f32 %v1097_v29 }
 0x535   :  { %2860 = vrcp.f32 %v1084_v31 }
 0x53e   :  { %v2859_v33 = vpop.eup %2858 }
 0x53f   :  { %v2861_v34 = vpop.eup %2860  ;;  %v1099_v35 = vmul.f32 %v2859_v33, %v2999_v8  ;;  %626 = vrot.lane.b32.xlu1 %v3132_v41, %s2933_s20 }
 0x540   :  { %v1086_v38 = vmul.f32 %v2861_v34, %v3001_v9 }
 0x541   :  { %v1103_v39 = vrot.slane %v1099_v35, 4 }
 0x542   :  { %v1101_v40 = vrot.slane %v1086_v38, 4 }
 0x543   :  { %986 = vrot.lane.b32.xlu1 %v3139_v42, %s2934_s23 }
 0x5bb   :  { %v907_v32 = vpop.xlane.xlu1 %906 }
 0x5bc   :  { %2862 = vrcp.f32 %v907_v32 }
 0x5bf   :  { %v3153_v55 = vpop.permute.xlu1 %626 }
 0x5c3   :  { %v3167_v63 = vpop.permute.xlu1 %986 }
 0x5c6   :  { %v2863_v36 = vpop.eup %2862 }
 0x5c7   :  { %v909_v37 = vmul.f32 %v2863_v36, %v2853_v15 }
 0x5c9   :  { %2709 = vmatmul.mubr.msk.f32.vlgmr.msra.gmra.mrb[12].mxu1 %vm259_vm14, %v909_v37 }
 0x5ca   :  { %2717 = vmatpush3.xpose.msk.msra.mxu1 %vm259_vm14, %v1103_v39  ;;  %2718 = vmatprep.mubr.msk.f32.mxu1 %vm2932_vm5, %v2931_v20 }
 0x5cb   :  { %2731 = vmatprep.subr.mxu1 %v2931_v20 }
 0x5cd   :  { %2719 = vmatmul.mubr.msk.f32.vlgmr.msra.gmra.mrb[14].mxu1 %vm259_vm14, %v1101_v40 }
 0x5ce   :  { %2733 = vmatprep.mubr.msk.f32.mxu1 %vm2932_vm5, %v2931_v20 }
 0x69c   :  { %v982_v43 = vpop.f32.mrb[12].mxu1 }
 0x69d   :  { %v2710_v44 = vpop.f32.mrb[13].mxu1 }
 0x6a0   :  { %v1174_v46 = vpop.f32.mrb[14].mxu1 }
 0x6a1   :  { %v1180_v47 = vmul.f32 %v1179_v45, %v1174_v46  ;;  %v2720_v49 = vpop.f32.mrb[15].mxu1 }
 0x6a3   :  { %v1181_v50 = vsel %vm231_vm4, %v1180_v47, -inf }
 0x6a4   :  { %1182 = vmax.xlane.f32.xlu0 %v1181_v50 }
 0x6ba   :  { %624 = vrot.lane.b32.xlu0 %v3139_v42, %s2933_s20 }
 0x6be   :  { %1374 = vrot.lane.b32.xlu0 %v3009_v12, %s2933_s20 }
 0x731   :  { %v1183_v51 = vpop.xlane.xlu0 %1182 }
 0x732   :  { %v1184_v52 = vsub.f32 %v1180_v47, %v1183_v51 }
 0x734   :  { %v1185_v53 = vmul.f32 1.442695, %v1184_v52 }
 0x735   :  { %v3155_v56 = vpop.permute.xlu0 %624 }
 0x736   :  { %2864 = vpow2.f32 %v1185_v53  ;;  %2693 = vmatprep.mubr.msk.f32.mxu0 %vm259_vm14, %v3155_v56 }
 0x737   :  { %2694 = vmatmul.mubr.msk.f32.vlgmr.msra.gmra.mrb[4].mxu0 %vm259_vm14, %v3153_v55 }
 0x738   :  { %2697 = vmatpush3.msk.msra.mxu0 %vm353_vm15, %v3104_v54  ;;  %2698 = vmatprep.mubr.msk.f32.mxu0 %vm259_vm14, %v3139_v42 }
 0x739   :  { %2711 = vmatprep.subr.msk.mxu0 %vm353_vm15, %v982_v43  ;;  %v1375_v12 = vpop.permute.xlu0 %1374 }
 0x73a   :  { %v1377_v57 = vsel %vm231_vm4, %v1375_v12, 0.0  ;;  %v1574_v0 = vsel %vm427_vm3, %v1375_v12, 0.0 }
 0x73b   :  { %1378 = vadd.xlane.f32.xlu0 %v1377_v57 }
 0x73f   :  { %2699 = vmatmul.mubr.msk.f32.vlgmr.msra.gmra.mrb[4].mxu0 %vm259_vm14, %v3132_v41  ;;  %1575 = vadd.xlane.f32.xlu0 %v1574_v0 }
 0x740   :  { %v2865_v1 = vpop.eup %2864  ;;  %2712 = vmatpush3.msk.msra.mxu0 %vm353_vm15, %v982_v43  ;;  %2713 = vmatprep.mubr.msk.f32.mxu0 %vm259_vm14, %v3167_v63 }
 0x741   :  { %v1187_v54 = vsel %vm231_vm4, %v2865_v1, 0.0  ;;  %2721 = vmatprep.subr.mxu0 %v2931_v20 }
 0x742   :  { %1188 = vadd.xlane.f32.xlu1 %v1187_v54 }
 0x753   :  { %988 = vrot.lane.b32.xlu1 %v3132_v41, %s2934_s23 }
 0x757   :  { %1357 = vrot.lane.b32.xlu1 %v3013_v13, %s2933_s20 }
 0x7c8   :  { %v1379_v2 = vpop.xlane.xlu0 %1378 }
 0x7c9   :  { %2866 = vrsqrt.f32 %v1379_v2  ;;  %vm1382_vm12 = vcmp.eq.f32.partialorder %v1379_v2, inf  ;;  %v1385_v17 = vand.u32 2147483648, %v1379_v2  ;;  %vm1384_vm13 = vcmp.eq.f32.partialorder %v1379_v2, 0.0 }
 0x7cc   :  { %v1576_v3 = vpop.xlane.xlu0 %1575 }
 0x7cd   :  { %2868 = vrsqrt.f32 %v1576_v3  ;;  %vm1579_vm1 = vcmp.eq.f32.partialorder %v1576_v3, inf  ;;  %v1582_v25 = vand.u32 2147483648, %v1576_v3  ;;  %vm1581_vm2 = vcmp.eq.f32.partialorder %v1576_v3, 0.0 }
 0x7cf   :  { %v1189_v4 = vpop.xlane.xlu1 %1188 }
 0x7d0   :  { %2870 = vrcp.f32 %v1189_v4 }
 0x7d3   :  { %v2867_v5 = vpop.eup %2866  ;;  %v3182_v15 = vpop.permute.xlu1 %988 }
 0x7d4   :  { %v1381_v16 = vmul.f32 %v2867_v5, %v1379_v2  ;;  %2714 = vmatmul.mubr.msk.f32.vlgmr.msra.gmra.mrb[4].mxu0 %vm259_vm14, %v3182_v15 }
 0x7d5   :  { %2722 = vmatpush3.msk.msra.mxu0 %vm353_vm15, %v1192_v7  ;;  %2723 = vmatprep.mubr.msk.f32.mxu0 %vm2932_vm5, %v2931_v20 }
 0x7d6   :  { %v1383_v13 = vsel %vm1382_vm12, %v1379_v2, %v1381_v16 }
 0x7d7   :  { %v2869_v18 = vpop.eup %2868  ;;  %v1358_v19 = vpop.permute.xlu1 %1357  ;;  %v1386_v21 = vsel %vm1384_vm13, %v1385_v17, %v1383_v13 }
 0x7d8   :  { %v1578_v22 = vmul.f32 %v2869_v18, %v1576_v3  ;;  %v1360_v23 = vsel %vm231_vm4, %v1358_v19, 0.0  ;;  %v1561_v24 = vsel %vm427_vm3, %v1358_v19, 0.0  ;;  %v1387_v28 = vmax.f32 %v1386_v21, 1e-12 }
 0x7d9   :  { %1361 = vadd.xlane.f32.xlu1 %v1360_v23  ;;  %1562 = vadd.xlane.f32.xlu0 %v1561_v24 }
 0x7da   :  { %v2871_v26 = vpop.eup %2870  ;;  %v1580_v27 = vsel %vm1579_vm1, %v1576_v3, %v1578_v22  ;;  %2872 = vrcp.f32 %v1387_v28 }
 0x7db   :  { %v1583_v29 = vsel %vm1581_vm2, %v1582_v25, %v1580_v27  ;;  %v1191_v30 = vmul.f32 %v2871_v26, %v2865_v1 }
 0x7dc   :  { %v1584_v31 = vmax.f32 %v1583_v29, 1e-12 }
 0x7dd   :  { %2724 = vmatmul.mubr.msk.f32.vlgmr.msra.gmra.mrb[6].mxu0 %vm259_vm14, %v1191_v30 }
 0x7de   :  { %2874 = vrcp.f32 %v1584_v31 }
 0x7e4   :  { %v2873_v32 = vpop.eup %2872 }
 0x7e5   :  { %v1389_v34 = vmul.f32 %v2873_v32, %v3003_v10 }
 0x7e8   :  { %v2875_v33 = vpop.eup %2874 }
 0x7e9   :  { %v1586_v35 = vmul.f32 %v2875_v33, %v3003_v10 }
 0x7eb   :  { %v1592_v36 = vrot.slane %v1586_v35, 4 }
 0x7ef   :  { %1394 = vrot.lane.b32.xlu0 %v1389_v34, %s2933_s20 }
 0x7f3   :  { %1593 = vrot.lane.b32.xlu0 %v1592_v36, %s2933_s20 }
 0x7f7   :  { %1934 = vrot.lane.b32.xlu0 %v3068_v6, %s2933_s20 }
 0x866   :  { %v1362_v37 = vpop.xlane.xlu1 %1361  ;;  %v1563_v38 = vpop.xlane.xlu0 %1562 }
 0x867   :  { %2876 = vrsqrt.f32 %v1362_v37  ;;  %vm1365_vm6 = vcmp.eq.f32.partialorder %v1362_v37, inf  ;;  %v1368_v44 = vand.u32 2147483648, %v1362_v37  ;;  %vm1367_vm7 = vcmp.eq.f32.partialorder %v1362_v37, 0.0 }
 0x868   :  { %2878 = vrsqrt.f32 %v1563_v38  ;;  %vm1566_vm8 = vcmp.eq.f32.partialorder %v1563_v38, inf  ;;  %v1569_v50 = vand.u32 2147483648, %v1563_v38  ;;  %vm1568_vm9 = vcmp.eq.f32.partialorder %v1563_v38, 0.0 }
 0x86a   :  { %v1395_v39 = vpop.permute.xlu0 %1394 }
 0x86b   :  { %2732 = vmatpush3.xpose.msk.msra.mxu1 %vm259_vm14, %v1395_v39 }
 0x86c   :  { %2736 = vmatprep.subr.mxu1 %v2931_v20 }
 0x86e   :  { %v1594_v5 = vpop.permute.xlu0 %1593 }
 0x871   :  { %v2877_v40 = vpop.eup %2876 }
 0x872   :  { %v2879_v43 = vpop.eup %2878  ;;  %v1364_v10 = vmul.f32 %v2877_v40, %v1362_v37  ;;  %v1935_v21 = vpop.permute.xlu0 %1934 }
 0x873   :  { %v1565_v46 = vmul.f32 %v2879_v43, %v1563_v38  ;;  %v1937_v22 = vsel %vm231_vm4, %v1935_v21, 0.0 }
 0x874   :  { %v1366_v47 = vsel %vm1365_vm6, %v1362_v37, %v1364_v10 }
 0x875   :  { %v1369_v49 = vsel %vm1367_vm7, %v1368_v44, %v1366_v47  ;;  %v1567_v6 = vsel %vm1566_vm8, %v1563_v38, %v1565_v46 }
 0x876   :  { %v1370_v51 = vmax.f32 %v1369_v49, 1e-12  ;;  %v1570_v52 = vsel %vm1568_vm9, %v1569_v50, %v1567_v6 }
 0x877   :  { %v1571_v53 = vmax.f32 %v1570_v52, 1e-12 }
 0x878   :  { %2880 = vrcp.f32 %v1370_v51 }
 0x879   :  { %2882 = vrcp.f32 %v1571_v53 }
 0x882   :  { %v2881_v12 = vpop.eup %2880 }
 0x883   :  { %v1372_v57 = vmul.f32 %v2881_v12, %v3005_v11  ;;  %v2883_v0 = vpop.eup %2882 }
 0x884   :  { %v1573_v1 = vmul.f32 %v2883_v0, %v3005_v11  ;;  %v2214_v0 = vsel %vm427_vm3, %v1935_v21, 0.0 }
 0x885   :  { %1391 = vrot.lane.b32.xlu1 %v1372_v57, %s2933_s20 }
 0x886   :  { %v1588_v54 = vrot.slane %v1573_v1, 4 }
 0x889   :  { %1268 = vrot.lane.b32.xlu1 %v3139_v42, %s2935_s5 }
 0x88d   :  { %1270 = vrot.lane.b32.xlu1 %v3132_v41, %s2935_s5 }
 0x891   :  { %1589 = vrot.lane.b32.xlu1 %v1588_v54, %s2933_s20 }
 0x895   :  { %1917 = vrot.lane.b32.xlu1 %v3073_v14, %s2933_s20 }
 0x8b0   :  { %v1264_v2 = vpop.f32.mrb[6].mxu0 }
 0x8b1   :  { %v2725_v3 = vpop.f32.mrb[7].mxu0  ;;  %2726 = vmatprep.subr.msk.mxu0 %vm353_vm15, %v1264_v2 }
 0x8b2   :  { %2727 = vmatpush3.msk.msra.mxu0 %vm353_vm15, %v1264_v2 }
 0x8b3   :  { %2741 = vmatprep.subr.mxu0 %v2931_v20 }
 0x8f7   :  { %v1392_v4 = vpop.permute.xlu1 %1391 }
 0x8f8   :  { %2734 = vmatmul.mubr.msk.f32.vlgmr.msra.gmra.mrb[16].mxu1 %vm259_vm14, %v1392_v4 }
 0x8f9   :  { %2738 = vmatprep.mubr.msk.f32.mxu1 %vm2932_vm5, %v2931_v20 }
 0x8fb   :  { %v3216_v11 = vpop.permute.xlu1 %1268 }
 0x8fc   :  { %2728 = vmatprep.mubr.msk.f32.mxu0 %vm259_vm14, %v3216_v11 }
 0x8ff   :  { %v3220_v14 = vpop.permute.xlu1 %1270 }
 0x900   :  { %2729 = vmatmul.mubr.msk.f32.vlgmr.msra.gmra.mrb[4].mxu0 %vm259_vm14, %v3220_v14 }
 0x901   :  { %2742 = vmatpush3.xpose.msk.msra.mxu0 %vm259_vm14, %v1594_v5  ;;  %2743 = vmatprep.mubr.msk.f32.mxu0 %vm2932_vm5, %v2931_v20 }
 0x903   :  { %v1590_v16 = vpop.permute.xlu1 %1589 }
 0x904   :  { %2744 = vmatmul.mubr.msk.f32.vlgmr.msra.gmra.mrb[8].mxu0 %vm259_vm14, %v1590_v16 }
 0x905   :  { %2753 = vmatprep.mubr.msk.f32.mxu0 %vm259_vm14, %v3155_v56 }
 0x907   :  { %v3234_v23 = vpop.permute.xlu1 %1917 }
 0x908   :  { %v1920_v56 = vsel %vm231_vm4, %v3234_v23, 0.0 }
 0x9cb   :  { %v1466_v13 = vpop.f32.mrb[16].mxu1 }
 0x9cc   :  { %v1472_v17 = vmul.f32 %v1466_v13, %v337_v61  ;;  %v2735_v18 = vpop.f32.mrb[17].mxu1 }
 0x9ce   :  { %v1473_v19 = vsel %vm231_vm4, %v1472_v17, -inf }
 0x9cf   :  { %1474 = vmax.xlane.f32.xlu0 %v1473_v19 }
 0x9d3   :  { %v3236_v24 = vpop.f32.mrb[4].mxu0  ;;  %1938 = vadd.xlane.f32.xlu0 %v1937_v22 }
 0x9d4   :  { %v3238_v25 = vpop.f32.mrb[5].mxu0 }
 0x9d7   :  { %v1665_v26 = vpop.f32.mrb[8].mxu0  ;;  %1921 = vadd.xlane.f32.xlu0 %v1920_v56 }
 0x9d8   :  { %v1671_v61 = vmul.f32 %v1665_v26, %v533_v62  ;;  %v2745_v27 = vpop.f32.mrb[9].mxu0 }
 0x9da   :  { %v1672_v28 = vsel %vm231_vm4, %v1671_v61, -inf }
 0x9db   :  { %1673 = vmax.xlane.f32.xlu1 %v1672_v28 }
 0x9ec   :  { %1683 = vrot.lane.b32.xlu1 %v546_v48, %s2933_s20 }
 0xa5c   :  { %v1475_v29 = vpop.xlane.xlu0 %1474 }
 0xa5d   :  { %v1476_v30 = vsub.f32 %v1472_v17, %v1475_v29 }
 0xa5f   :  { %v1477_v31 = vmul.f32 1.442695, %v1476_v30 }
 0xa60   :  { %v1939_v32 = vpop.xlane.xlu0 %1938 }
 0xa61   :  { %2884 = vpow2.f32 %v1477_v31  ;;  %vm1942_vm10 = vcmp.eq.f32.partialorder %v1939_v32, inf  ;;  %v1945_v62 = vand.u32 2147483648, %v1939_v32  ;;  %vm1944_vm11 = vcmp.eq.f32.partialorder %v1939_v32, 0.0 }
 0xa62   :  { %2886 = vrsqrt.f32 %v1939_v32 }
 0xa64   :  { %v1922_v43 = vpop.xlane.xlu0 %1921 }
 0xa65   :  { %vm1925_vm12 = vcmp.eq.f32.partialorder %v1922_v43, inf  ;;  %v1928_v50 = vand.u32 2147483648, %v1922_v43  ;;  %vm1927_vm13 = vcmp.eq.f32.partialorder %v1922_v43, 0.0 }
 0xa68   :  { %v1674_v10 = vpop.xlane.xlu1 %1673 }
 0xa69   :  { %v1675_v44 = vsub.f32 %v1671_v61, %v1674_v10 }
 0xa6b   :  { %v2885_v33 = vpop.eup %2884  ;;  %v1676_v46 = vmul.f32 1.442695, %v1675_v44 }
 0xa6c   :  { %v2887_v34 = vpop.eup %2886  ;;  %v1479_v35 = vsel %vm231_vm4, %v2885_v33, 0.0  ;;  %v1684_v4 = vpop.permute.xlu1 %1683 }
 0xa6d   :  { %v1941_v36 = vmul.f32 %v2887_v34, %v1939_v32  ;;  %1480 = vadd.xlane.f32.xlu0 %v1479_v35 }
 0xa6f   :  { %v1943_v37 = vsel %vm1942_vm10, %v1939_v32, %v1941_v36 }
 0xa70   :  { %v1946_v38 = vsel %vm1944_vm11, %v1945_v62, %v1943_v37 }
 0xa71   :  { %v1947_v39 = vmax.f32 %v1946_v38, 1e-12 }
 0xa73   :  { %2888 = vrcp.f32 %v1947_v39 }
 0xa74   :  { %2890 = vrsqrt.f32 %v1922_v43 }
 0xa75   :  { %2892 = vpow2.f32 %v1676_v46 }
 0xa7d   :  { %v2889_v48 = vpop.eup %2888 }
 0xa7e   :  { %v1949_v40 = vmul.f32 %v2889_v48, %v2999_v8  ;;  %v2891_v47 = vpop.eup %2890 }
 0xa7f   :  { %v1924_v49 = vmul.f32 %v2891_v47, %v1922_v43  ;;  %v2893_v52 = vpop.eup %2892 }
 0xa80   :  { %1954 = vrot.lane.b32.xlu1 %v1949_v40, %s2933_s20  ;;  %v1678_v12 = vsel %vm231_vm4, %v2893_v52, 0.0 }
 0xa81   :  { %v1926_v6 = vsel %vm1925_vm12, %v1922_v43, %v1924_v49 }
 0xa82   :  { %v1929_v51 = vsel %vm1927_vm13, %v1928_v50, %v1926_v6 }
 0xa83   :  { %1484 = vrot.lane.b32.xlu0 %v3050_v60, %s2933_s20  ;;  %v1930_v53 = vmax.f32 %v1929_v51, 1e-12 }
 0xa85   :  { %2894 = vrcp.f32 %v1930_v53 }
 0xa8f   :  { %v2895_v60 = vpop.eup %2894 }
 0xa90   :  { %v1932_v57 = vmul.f32 %v2895_v60, %v3001_v9 }
 0xaa4   :  { %1679 = vadd.xlane.f32.xlu1 %v1678_v12 }
 0xab5   :  { %1951 = vrot.lane.b32.xlu1 %v1932_v57, %s2933_s20 }
 0xad9   :  { %2215 = vadd.xlane.f32.xlu1 %v2214_v0 }
 0xaf2   :  { %v1955_v5 = vpop.permute.xlu1 %1954 }
 0xafa   :  { %v1481_v1 = vpop.xlane.xlu0 %1480 }
 0xafb   :  { %2896 = vrcp.f32 %v1481_v1 }
 0xafe   :  { %v1485_v54 = vpop.permute.xlu0 %1484 }
 0xaff   :  { %2737 = vmatpush3.msk.msra.mxu1 %vm353_vm15, %v1485_v54 }
 0xb00   :  { %2746 = vmatprep.subr.mxu1 %v2931_v20 }
 0xb05   :  { %v2897_v2 = vpop.eup %2896 }
 0xb06   :  { %v1483_v3 = vmul.f32 %v2897_v2, %v2885_v33 }
 0xb08   :  { %2739 = vmatmul.mubr.msk.f32.vlgmr.msra.gmra.mrb[18].mxu1 %vm259_vm14, %v1483_v3 }
 0xb09   :  { %2747 = vmatpush3.msk.msra.mxu1 %vm353_vm15, %v1684_v4  ;;  %2748 = vmatprep.mubr.msk.f32.mxu1 %vm2932_vm5, %v2931_v20 }
 0xb0a   :  { %2761 = vmatprep.subr.mxu1 %v2931_v20 }
 0xb31   :  { %v1680_v16 = vpop.xlane.xlu1 %1679 }
 0xb32   :  { %2898 = vrcp.f32 %v1680_v16 }
 0xb35   :  { %v1952_v18 = vpop.permute.xlu1 %1951 }
 0xb3c   :  { %v2899_v13 = vpop.eup %2898 }
 0xb3d   :  { %v1682_v17 = vmul.f32 %v2899_v13, %v2893_v52 }
 0xb3f   :  { %2749 = vmatmul.mubr.msk.f32.vlgmr.msra.gmra.mrb[20].mxu1 %vm259_vm14, %v1682_v17 }
 0xb40   :  { %2762 = vmatpush3.xpose.msk.msra.mxu1 %vm259_vm14, %v1955_v5  ;;  %2763 = vmatprep.mubr.msk.f32.mxu1 %vm2932_vm5, %v2931_v20 }
 0xb41   :  { %2766 = vmatprep.subr.mxu1 %v2931_v20 }
 0xb43   :  { %2764 = vmatmul.mubr.msk.f32.vlgmr.msra.gmra.mrb[22].mxu1 %vm259_vm14, %v1952_v18 }
 0xb44   :  { %2768 = vmatprep.mubr.msk.f32.mxu1 %vm2932_vm5, %v2931_v20 }
 0xb66   :  { %v2216_v19 = vpop.xlane.xlu1 %2215 }
 0xb67   :  { %2900 = vrsqrt.f32 %v2216_v19  ;;  %vm2219_vm1 = vcmp.eq.f32.partialorder %v2216_v19, inf  ;;  %v2222_v56 = vand.u32 2147483648, %v2216_v19  ;;  %vm2221_vm2 = vcmp.eq.f32.partialorder %v2216_v19, 0.0 }
 0xb71   :  { %v2901_v21 = vpop.eup %2900 }
 0xb72   :  { %v2218_v22 = vmul.f32 %v2901_v21, %v2216_v19 }
 0xb74   :  { %v2220_v26 = vsel %vm2219_vm1, %v2216_v19, %v2218_v22 }
 0xb75   :  { %v2223_v61 = vsel %vm2221_vm2, %v2222_v56, %v2220_v26 }
 0xb76   :  { %v2224_v27 = vmax.f32 %v2223_v61, 1e-12 }
 0xb78   :  { %2902 = vrcp.f32 %v2224_v27 }
 0xb82   :  { %v2903_v28 = vpop.eup %2902 }
 0xb83   :  { %v2226_v29 = vmul.f32 %v2903_v28, %v2999_v8 }
 0xb85   :  { %v2232_v30 = vrot.slane %v2226_v29, 4 }
 0xb87   :  { %2233 = vrot.lane.b32.xlu1 %v2232_v30, %s2933_s20 }
 0xbdb   :  { %v1557_v31 = vpop.f32.mrb[18].mxu1 }
 0xbdc   :  { %v2740_v32 = vpop.f32.mrb[19].mxu1 }
 0xbf9   :  { %v2234_v52 = vpop.permute.xlu1 %2233 }
 0xc12   :  { %v1756_v33 = vpop.f32.mrb[20].mxu1 }
 0xc13   :  { %v2750_v34 = vpop.f32.mrb[21].mxu1  ;;  %2751 = vmatprep.subr.msk.mxu0 %vm353_vm15, %v1756_v33 }
 0xc14   :  { %2752 = vmatpush3.msk.msra.mxu0 %vm353_vm15, %v1756_v33 }
 0xc15   :  { %2754 = vmatmul.mubr.msk.f32.vlgmr.msra.gmra.mrb[10].mxu0 %vm259_vm14, %v3153_v55  ;;  %2756 = vmatprep.subr.msk.mxu0 %vm353_vm15, %v1557_v31  ;;  %v2201_v55 = vsel %vm427_vm3, %v3234_v23, 0.0 }
 0xc16   :  { %2757 = vmatpush3.msk.msra.mxu0 %vm353_vm15, %v1557_v31  ;;  %v2026_v35 = vpop.f32.mrb[22].mxu1  ;;  %2758 = vmatprep.mubr.msk.f32.mxu0 %vm259_vm14, %v3139_v42 }
 0xc17   :  { %v2032_v8 = vmul.f32 %v2026_v35, %v897_v58  ;;  %v2765_v36 = vpop.f32.mrb[23].mxu1 }
 0xc19   :  { %v2033_v62 = vsel %vm231_vm4, %v2032_v8, -inf }
 0xc1a   :  { %2034 = vmax.xlane.f32.xlu0 %v2033_v62 }
 0xc1d   :  { %2759 = vmatmul.mubr.msk.f32.vlgmr.msra.gmra.mrb[10].mxu0 %vm259_vm14, %v3132_v41 }
 0xc1e   :  { %2773 = vmatprep.mubr.msk.f32.mxu0 %vm259_vm14, %v3167_v63  ;;  %2202 = vadd.xlane.f32.xlu0 %v2201_v55 }
 0xca7   :  { %v2035_v37 = vpop.xlane.xlu0 %2034 }
 0xca8   :  { %v2036_v38 = vsub.f32 %v2032_v8, %v2035_v37 }
 0xcaa   :  { %v2037_v39 = vmul.f32 1.442695, %v2036_v38 }
 0xcab   :  { %v2203_v42 = vpop.xlane.xlu0 %2202 }
 0xcac   :  { %2904 = vpow2.f32 %v2037_v39  ;;  %vm2206_vm6 = vcmp.eq.f32.partialorder %v2203_v42, inf  ;;  %v2209_v41 = vand.u32 2147483648, %v2203_v42  ;;  %vm2208_vm3 = vcmp.eq.f32.partialorder %v2203_v42, 0.0 }
 0xcad   :  { %2906 = vrsqrt.f32 %v2203_v42 }
 0xcb6   :  { %v2905_v58 = vpop.eup %2904 }
 0xcb7   :  { %v2907_v48 = vpop.eup %2906  ;;  %v2039_v40 = vsel %vm231_vm4, %v2905_v58, 0.0 }
 0xcb8   :  { %v2205_v43 = vmul.f32 %v2907_v48, %v2203_v42  ;;  %2040 = vadd.xlane.f32.xlu0 %v2039_v40 }
 0xcba   :  { %v2207_v10 = vsel %vm2206_vm6, %v2203_v42, %v2205_v43 }
 0xcbb   :  { %v2210_v23 = vsel %vm2208_vm3, %v2209_v41, %v2207_v10 }
 0xcbc   :  { %v2211_v44 = vmax.f32 %v2210_v23, 1e-12 }
 0xcbe   :  { %2908 = vrcp.f32 %v2211_v44 }
 0xcc8   :  { %v2909_v63 = vpop.eup %2908 }
 0xcc9   :  { %v2213_v46 = vmul.f32 %v2909_v63, %v3001_v9 }
 0xccb   :  { %v2228_v47 = vrot.slane %v2213_v46, 4 }
 0xccd   :  { %2229 = vrot.lane.b32.xlu1 %v2228_v47, %s2933_s20 }
 0xcce   :  { %2044 = vrot.lane.b32.xlu0 %v3048_v59, %s2933_s20 }
 0xd3f   :  { %v2230_v9 = vpop.permute.xlu1 %2229 }
 0xd45   :  { %v2041_v49 = vpop.xlane.xlu0 %2040 }
 0xd46   :  { %2910 = vrcp.f32 %v2041_v49 }
 0xd49   :  { %v2045_v6 = vpop.permute.xlu0 %2044 }
 0xd4a   :  { %2767 = vmatpush3.msk.msra.mxu1 %vm353_vm15, %v2045_v6 }
 0xd4b   :  { %2776 = vmatprep.subr.mxu1 %v2931_v20 }
 0xd50   :  { %v2911_v50 = vpop.eup %2910 }
 0xd51   :  { %v2043_v51 = vmul.f32 %v2911_v50, %v2905_v58 }
 0xd53   :  { %2769 = vmatmul.mubr.msk.f32.vlgmr.msra.gmra.mrb[24].mxu1 %vm259_vm14, %v2043_v51 }
 0xd54   :  { %2777 = vmatpush3.xpose.msk.msra.mxu1 %vm259_vm14, %v2234_v52  ;;  %2778 = vmatprep.mubr.msk.f32.mxu1 %vm2932_vm5, %v2931_v20 }
 0xd57   :  { %2779 = vmatmul.mubr.msk.f32.vlgmr.msra.gmra.mrb[26].mxu1 %vm259_vm14, %v2230_v9 }
 0xe26   :  { %v2117_v53 = vpop.f32.mrb[24].mxu1 }
 0xe27   :  { %v2770_v12 = vpop.f32.mrb[25].mxu1  ;;  %2771 = vmatprep.subr.msk.mxu0 %vm353_vm15, %v2117_v53 }
 0xe28   :  { %2772 = vmatpush3.msk.msra.mxu0 %vm353_vm15, %v2117_v53 }
 0xe29   :  { %2774 = vmatmul.mubr.msk.f32.vlgmr.msra.gmra.mrb[10].mxu0 %vm259_vm14, %v3182_v15  ;;  %2781 = vmatprep.subr.mxu0 %v2931_v20 }
 0xe2a   :  { %v2305_v60 = vpop.f32.mrb[26].mxu1  ;;  %2783 = vmatprep.mubr.msk.f32.mxu0 %vm2932_vm5, %v2931_v20 }
 0xe2b   :  { %v2311_v57 = vmul.f32 %v2305_v60, %v1179_v45  ;;  %v2780_v0 = vpop.f32.mrb[27].mxu1 }
 0xe2d   :  { %v2312_v1 = vsel %vm231_vm4, %v2311_v57, -inf }
 0xe2e   :  { %2313 = vmax.xlane.f32.xlu1 %v2312_v1 }
 0xebb   :  { %v2314_v54 = vpop.xlane.xlu1 %2313 }
 0xebc   :  { %v2315_v2 = vsub.f32 %v2311_v57, %v2314_v54 }
 0xebe   :  { %v2316_v3 = vmul.f32 1.442695, %v2315_v2 }
 0xec0   :  { %2912 = vpow2.f32 %v2316_v3 }
 0xeca   :  { %v2913_v4 = vpop.eup %2912 }
 0xecb   :  { %v2318_v5 = vsel %vm231_vm4, %v2913_v4, 0.0 }
 0xecc   :  { %2319 = vadd.xlane.f32.xlu0 %v2318_v5 }
 0xee2   :  { %2323 = vrot.lane.b32.xlu0 %v1192_v7, %s2933_s20 }
 0xf59   :  { %v2320_v15 = vpop.xlane.xlu0 %2319 }
 0xf5a   :  { %2914 = vrcp.f32 %v2320_v15 }
 0xf5d   :  { %v2324_v20 = vpop.permute.xlu0 %2323 }
 0xf5e   :  { %2782 = vmatpush3.msk.msra.mxu0 %vm353_vm15, %v2324_v20 }
 0xf64   :  { %v2915_v45 = vpop.eup %2914 }
 0xf65   :  { %v2322_v16 = vmul.f32 %v2915_v45, %v2913_v4 }
 0xf67   :  { %2784 = vmatmul.mubr.msk.f32.vlgmr.msra.gmra.mrb[12].mxu0 %vm259_vm14, %v2322_v16 }
 0xf68   :  { %2788 = vmatprep.mubr.msk.f32.mxu0 %vm259_vm14, %v3216_v11 }
0x103a   :  { %v2396_v13 = vpop.f32.mrb[12].mxu0 }
0x103b   :  { %v2785_v17 = vpop.f32.mrb[13].mxu0  ;;  %2786 = vmatprep.subr.msk.mxu0 %vm353_vm15, %v2396_v13 }
0x103c   :  { %2787 = vmatpush3.msk.msra.mxu0 %vm353_vm15, %v2396_v13 }
0x103d   :  { %2789 = vmatmul.mubr.msk.f32.vlgmr.msra.gmra.mrb[10].mxu0 %vm259_vm14, %v3220_v14 }
0x1110   :  { %v2790_v59 = vpop.f32.mrb[10].mxu0 }
0x1111   :  { %v2469_v7 = vpop.f32.mrb[11].mxu0 }
0x1112   :  { %v2814_v18 = vpack.i.bf16 %v2790_v59, %v2469_v7 }
0x1114   :  { %2815 = vrot.lane.b32.xlu1 %v2814_v18, %s2936_s25 }
0x1186   :  { %v2816_v19 = vpop.permute.xlu1 %2815 }
0x1187   :  { %v2818_v21 = vunpack.i.h.bf16 %v2816_v19  ;;  %v2817_v22 = vunpack.i.l.bf16 %v2816_v19 }
0x1189   :  { %v2489_v11 = vsel %vm259_vm14, %v3236_v24, %v2818_v21  ;;  %v2488_v56 = vsel %vm259_vm14, %v3238_v25, %v2817_v22 }
0x118a   :  { %v2585_v26 = vpack.c.bf16 %v2489_v11, %v2489_v11  ;;  %v2584_v61 = vpack.c.bf16 %v2488_v56, %v2488_v56 }
0x118c   :  { %2506 = vst.msk [vmem:[%s3343_s6 + $0x8] sm:$0xf] %vm2503_vm0, %v2585_v26  ;;  %2505 = vst.msk [vmem:[%s3343_s6 + $0x4] sm:$0xf] %vm2503_vm0, %v2584_v61 }
0x118d   :  { %2511 = vsyncpa [#allocation3], 1 }

// kernel: denoiser_forward.21
= control target key start
LH: loop header
LB: loop body
LE: loop exit
PB: predicated region body
PF: predicated region fallthrough
CT: control target
= control target key end

     0   :  { %v315_v0 = vmov 0   ;;  %vm159_vm0 = vcmask 719872   ;;  %vm166_vm1 = vcmask 1043456   ;;  %vm231_vm2 = vcmask 257024   ;;  %s437_s1 = inlined_call_operand.vmem [shape: bf16[216,32], index: 1, kind: input, shape index: {}]   ;;  %s438_s0 = inlined_call_operand.vmem [shape: bf16[24,216], index: 0, kind: input, shape index: {}]   ;;  %s439_s2 = inlined_call_operand.vmem [shape: f32[24,1], index: 2, kind: input, shape index: {}]   ;;  %s440_s3 = inlined_call_operand.vmem [shape: bf16[24,32], index: 3, kind: output, shape index: {}]  }
   0x1   :  { %170 = vmatprep.subr.bf16.mxu0 %v315_v0  ;;  %265 = vmatprep.subr.bf16.mxu1 %v315_v0  ;;  %v296_v1 = vld [vmem:[%s437_s1] sm:$0xff]   ;;  %v297_v2 = vld [vmem:[%s437_s1 + $0x8] sm:$0xff]   ;;  %v298_v3 = vld [vmem:[%s437_s1 + $0x10] sm:$0xff]  }
   0x2   :  { %294 = vset.pattern.permute.xlu0 %v315_v0  ;;  %295 = vset.pattern.permute.xlu1 %v315_v0  ;;  %v299_v4 = vld [vmem:[%s437_s1 + $0x18] sm:$0xff]   ;;  %v300_v5 = vld [vmem:[%s437_s1 + $0x20] sm:$0xff]   ;;  %v17_v7 = vld [vmem:[%s438_s0 + $0x10] sm:$0xff] }
   0x3   :  { %171 = vmatpush1.bf16.msra.mxu0 %v296_v1  ;;  %279 = vmatpush1.bf16.msra.mxu1 %v296_v1  ;;  %v312_v6 = vld [vmem:[%s438_s0 + $0x4] ss:$8 sps:$4 sm:$0xff]   ;;  %v242_v9 = vcombine.high %v17_v7, %v17_v7  ;;  %v47_v10 = vld [vmem:[%s439_s2 + $0x10] sm:$0xff]  ;;  %v303_v14 = vld [vmem:[%s437_s1 + $0x38] sm:$0xff]   ;;  %v241_v23 = vcombine.low %v17_v7, %v17_v7 }
   0x4   :  { %172 = vmatprep.subr.bf16.mxu0 %v315_v0  ;;  %266 = vmatprep.subr.bf16.mxu1 %v315_v0  ;;  %v45_v8 = vld [vmem:[%s439_s2] sm:$0xff]  ;;  %v46_v11 = vld [vmem:[%s439_s2 + $0x8] sm:$0xff]  ;;  %v302_v13 = vld [vmem:[%s437_s1 + $0x30] sm:$0xff]  }
   0x5   :  { %257 = vmatprep.mubr.msk.bf16.mxu0 %vm159_vm0, %v312_v6  ;;  %50 = vperm.xlu0 %294, %v45_v8   ;;  %v301_v12 = vld [vmem:[%s437_s1 + $0x28] sm:$0xff]   ;;  %v304_v15 = vld [vmem:[%s437_s1 + $0x40] sm:$0xff]   ;;  %v306_v17 = vld [vmem:[%s437_s1 + $0x50] sm:$0xff]  }
   0x6   :  { %60 = vperm.xlu1 %295, %v47_v10   ;;  %258 = vmatprep.mubr.msk.bf16.mxu1 %vm159_vm0, %v242_v9  ;;  %v305_v16 = vld [vmem:[%s437_s1 + $0x48] sm:$0xff]   ;;  %v307_v18 = vld [vmem:[%s437_s1 + $0x58] sm:$0xff]   ;;  %v308_v19 = vld [vmem:[%s437_s1 + $0x60] sm:$0xff]  }
   0x7   :  { %173 = vmatpush1.bf16.msra.mxu0 %v297_v2  ;;  %280 = vmatpush1.bf16.msra.mxu1 %v297_v2  ;;  %v309_v20 = vld [vmem:[%s437_s1 + $0x68] ss:$0 sps:$4 sm:$0xff]  }
   0x8   :  { %174 = vmatprep.subr.bf16.mxu0 %v315_v0  ;;  %267 = vmatprep.subr.bf16.mxu1 %v315_v0  ;;  %v168_v21 = vsel %vm166_vm1, %v309_v20, 0  ;;  %v310_v22 = vld [vmem:[%s438_s0] ss:$8 sps:$4 sm:$0xff]  }
   0x9   :  { %55 = vperm.xlu0 %294, %v46_v11  }
   0xb   :  { %175 = vmatpush1.bf16.msra.mxu0 %v298_v3  ;;  %281 = vmatpush1.bf16.msra.mxu1 %v298_v3 }
   0xc   :  { %176 = vmatprep.subr.bf16.mxu0 %v315_v0  ;;  %268 = vmatprep.subr.bf16.mxu1 %v315_v0 }
   0xf   :  { %177 = vmatpush1.bf16.msra.mxu0 %v299_v4  ;;  %282 = vmatpush1.bf16.msra.mxu1 %v299_v4 }
  0x10   :  { %178 = vmatprep.subr.bf16.mxu0 %v315_v0  ;;  %269 = vmatprep.subr.bf16.mxu1 %v315_v0 }
  0x13   :  { %179 = vmatpush1.bf16.msra.mxu0 %v300_v5  ;;  %283 = vmatpush1.bf16.msra.mxu1 %v300_v5 }
  0x14   :  { %180 = vmatprep.subr.bf16.mxu0 %v315_v0  ;;  %270 = vmatprep.subr.bf16.mxu1 %v315_v0 }
  0x17   :  { %181 = vmatpush1.bf16.msra.mxu0 %v301_v12  ;;  %284 = vmatpush1.bf16.msra.mxu1 %v301_v12 }
  0x18   :  { %182 = vmatprep.subr.bf16.mxu0 %v315_v0  ;;  %271 = vmatprep.subr.bf16.mxu1 %v315_v0 }
  0x1b   :  { %183 = vmatpush1.bf16.msra.mxu0 %v302_v13  ;;  %285 = vmatpush1.bf16.msra.mxu1 %v302_v13 }
  0x1c   :  { %184 = vmatprep.subr.bf16.mxu0 %v315_v0  ;;  %272 = vmatprep.subr.bf16.mxu1 %v315_v0 }
  0x1f   :  { %185 = vmatpush1.bf16.msra.mxu0 %v303_v14  ;;  %286 = vmatpush1.bf16.msra.mxu1 %v303_v14 }
  0x20   :  { %186 = vmatprep.subr.bf16.mxu0 %v315_v0  ;;  %273 = vmatprep.subr.bf16.mxu1 %v315_v0 }
  0x23   :  { %187 = vmatpush1.bf16.msra.mxu0 %v304_v15  ;;  %287 = vmatpush1.bf16.msra.mxu1 %v304_v15 }
  0x24   :  { %188 = vmatprep.subr.bf16.mxu0 %v315_v0  ;;  %274 = vmatprep.subr.bf16.mxu1 %v315_v0 }
  0x27   :  { %189 = vmatpush1.bf16.msra.mxu0 %v305_v16  ;;  %288 = vmatpush1.bf16.msra.mxu1 %v305_v16 }
  0x28   :  { %190 = vmatprep.subr.bf16.mxu0 %v315_v0  ;;  %275 = vmatprep.subr.bf16.mxu1 %v315_v0 }
  0x2b   :  { %191 = vmatpush1.bf16.msra.mxu0 %v306_v17  ;;  %289 = vmatpush1.bf16.msra.mxu1 %v306_v17 }
  0x2c   :  { %192 = vmatprep.subr.bf16.mxu0 %v315_v0  ;;  %276 = vmatprep.subr.bf16.mxu1 %v315_v0 }
  0x2f   :  { %193 = vmatpush1.bf16.msra.mxu0 %v307_v18  ;;  %290 = vmatpush1.bf16.msra.mxu1 %v307_v18 }
  0x30   :  { %194 = vmatprep.subr.bf16.mxu0 %v315_v0  ;;  %277 = vmatprep.subr.bf16.mxu1 %v315_v0 }
  0x33   :  { %195 = vmatpush1.bf16.msra.mxu0 %v308_v19  ;;  %291 = vmatpush1.bf16.msra.mxu1 %v308_v19 }
  0x34   :  { %196 = vmatprep.subr.bf16.mxu0 %v315_v0  ;;  %278 = vmatprep.subr.bf16.mxu1 %v315_v0 }
  0x37   :  { %197 = vmatpush1.bf16.msra.mxu0 %v168_v21  ;;  %292 = vmatpush1.bf16.msra.mxu1 %v168_v21 }
  0x3a   :  { %203 = vmatmul.mubr.bf16.vlgmr.msra.gmra.mrb[0].mxu0 %v310_v22  ;;  %211 = vmatmul.mubr.bf16.vlgmr.msra.gmra.mrb[0].mxu1 %v241_v23 }
  0x84   :  { %v51_v24 = vpop.permute.xlu0 %50 }
  0x85   :  { %v61_v25 = vpop.permute.xlu1 %60 }
  0x88   :  { %v56_v26 = vpop.permute.xlu0 %55 }
 0x10d   :  { %v204_v27 = vpop.f32.mrb[0].mxu0  ;;  %v212_v28 = vpop.f32.mrb[0].mxu1 }
 0x10e   :  { %v205_v29 = vadd.f32 %v204_v27, %v51_v24  ;;  %v206_v30 = vpop.f32.mrb[1].mxu0  ;;  %v214_v31 = vpop.f32.mrb[1].mxu1  ;;  %v213_v32 = vadd.f32 %v212_v28, %v61_v25 }
 0x10f   :  { %v207_v33 = vpop.f32.mrb[2].mxu0  ;;  %v215_v34 = vpop.f32.mrb[2].mxu1 }
 0x110   :  { %v262_v35 = vpack.c.bf16 %v205_v29, %v205_v29  ;;  %v264_v36 = vpack.c.bf16 %v213_v32, %v213_v32  ;;  %v208_v37 = vadd.f32 %v207_v33, %v56_v26  ;;  %v209_v38 = vpop.f32.mrb[3].mxu0  ;;  %v216_v39 = vpop.f32.mrb[3].mxu1 }
 0x112   :  { %232 = vst.msk [vmem:[%s440_s3] sm:$0xf] %vm231_vm2, %v262_v35  ;;  %234 = vst.msk [vmem:[%s440_s3 + $0x8] sm:$0xf] %vm231_vm2, %v264_v36  ;;  %v263_v40 = vpack.c.bf16 %v208_v37, %v208_v37 }
 0x114   :  { %233 = vst.msk [vmem:[%s440_s3 + $0x4] sm:$0xf] %vm231_vm2, %v263_v40 }

// kernel: denoiser_forward.22
= control target key start
LH: loop header
LB: loop body
LE: loop exit
PB: predicated region body
PF: predicated region fallthrough
CT: control target
= control target key end

     0   :  { %v223_v0 = vmov 0.0   ;;  %vm224_vm0 = vmmov 0   ;;  %vm56_vm1 = vcmask 130048   ;;  %vm153_vm2 = vcmask 519168   ;;  %s290_s1 = inlined_call_operand.vmem [shape: bf16[16,64], index: 1, kind: input, shape index: {}]   ;;  %s291_s0 = inlined_call_operand.vmem [shape: bf16[48,16], index: 0, kind: input, shape index: {}]   ;;  %s292_s2 = inlined_call_operand.vmem [shape: bf16[48,64], index: 2, kind: input, shape index: {}]   ;;  %s293_s3 = inlined_call_operand.vmem [shape: bf16[48,64], index: 3, kind: output, shape index: {}]  }
   0x1   :  { %215 = vmatprep.subr.bf16.mxu1 %v223_v0  ;;  %v219_v1 = vld [vmem:[%s290_s1] sm:$0xff]   ;;  %207 = vmatprep.mubr.msk.bf16.mxu1 %vm224_vm0, %v223_v0  ;;  %v220_v2 = vld [vmem:[%s291_s0 + $0x8] sm:$0xff]   ;;  %v222_v4 = vld [vmem:[%s291_s0 + $0x10] sm:$0xff]  }
   0x2   :  { %201 = vmatprep.subr.bf16.mxu0 %v223_v0  ;;  %203 = vmatprep.mubr.msk.bf16.mxu0 %vm224_vm0, %v223_v0  ;;  %v221_v3 = vld [vmem:[%s291_s0] sm:$0xff]   ;;  %v195_v5 = vld [vmem:[%s292_s2 + $0x8] sm:$0xff]   ;;  %v196_v17 = vld [vmem:[%s292_s2 + $0x10] sm:$0xff]  }
   0x3   :  { %216 = vmatpush3.bf16.msra.mxu1 %v219_v1  ;;  %202 = vmatpush3.bf16.msra.mxu0 %v219_v1  ;;  %v184_v6 = vld [vmem:[%s292_s2] sm:$0xff]   ;;  %v189_v7 = vunpack.c.l.bf16 %v195_v5  ;;  %v190_v9 = vunpack.c.h.bf16 %v195_v5  ;;  %v193_v26 = vunpack.c.l.bf16 %v196_v17  ;;  %v194_v33 = vunpack.c.h.bf16 %v196_v17 }
   0x4   :  { %v185_v8 = vunpack.c.l.bf16 %v184_v6  ;;  %v186_v10 = vunpack.c.h.bf16 %v184_v6 }
   0x6   :  { %208 = vmatmul.mubr.msk.bf16.vlgmr.msra.gmra.mrb[0].mxu1 %vm56_vm1, %v220_v2  ;;  %204 = vmatmul.mubr.msk.bf16.vlgmr.msra.gmra.mrb[0].mxu0 %vm56_vm1, %v221_v3 }
   0x7   :  { %211 = vmatprep.mubr.msk.bf16.mxu1 %vm224_vm0, %v223_v0 }
   0xe   :  { %212 = vmatmul.mubr.msk.bf16.gmra.mrb[4].mxu1 %vm56_vm1, %v222_v4 }
  0xd9   :  { %v108_v11 = vpop.f32.mrb[0].mxu1  ;;  %v100_v12 = vpop.f32.mrb[0].mxu0 }
  0xda   :  { %v109_v13 = vadd.f32 %v189_v7, %v108_v11  ;;  %v209_v14 = vpop.f32.mrb[1].mxu1  ;;  %v101_v15 = vadd.f32 %v185_v8, %v100_v12  ;;  %v205_v16 = vpop.f32.mrb[1].mxu0 }
  0xdb   :  { %v111_v18 = vpop.f32.mrb[2].mxu1  ;;  %v103_v19 = vpop.f32.mrb[2].mxu0 }
  0xdc   :  { %v125_v20 = vmax.f32 %v109_v13, 0.0  ;;  %v112_v21 = vadd.f32 %v190_v9, %v111_v18  ;;  %v210_v22 = vpop.f32.mrb[3].mxu1  ;;  %v123_v23 = vmax.f32 %v101_v15, 0.0  ;;  %v104_v24 = vadd.f32 %v186_v10, %v103_v19  ;;  %v206_v25 = vpop.f32.mrb[3].mxu0 }
  0xde   :  { %v179_v27 = vpack.c.bf16 %v125_v20, %v125_v20  ;;  %v126_v28 = vmax.f32 %v112_v21, 0.0  ;;  %v177_v29 = vpack.c.bf16 %v123_v23, %v123_v23  ;;  %v124_v30 = vmax.f32 %v104_v24, 0.0 }
  0xe0   :  { %156 = vst.msk [vmem:[%s293_s3 + $0x8] sm:$0xf] %vm153_vm2, %v179_v27  ;;  %v180_v31 = vpack.c.bf16 %v126_v28, %v126_v28  ;;  %154 = vst.msk [vmem:[%s293_s3] sm:$0xf] %vm153_vm2, %v177_v29  ;;  %v178_v32 = vpack.c.bf16 %v124_v30, %v124_v30 }
  0xe1   :  { %v116_v34 = vpop.f32.mrb[4].mxu1 }
  0xe2   :  { %157 = vst.msk [vmem:[%s293_s3 + $0xc] sm:$0xf] %vm153_vm2, %v180_v31  ;;  %155 = vst.msk [vmem:[%s293_s3 + $0x4] sm:$0xf] %vm153_vm2, %v178_v32  ;;  %v117_v35 = vadd.f32 %v193_v26, %v116_v34  ;;  %v213_v36 = vpop.f32.mrb[5].mxu1 }
  0xe3   :  { %v119_v37 = vpop.f32.mrb[6].mxu1 }
  0xe4   :  { %v127_v38 = vmax.f32 %v117_v35, 0.0  ;;  %v120_v39 = vadd.f32 %v194_v33, %v119_v37  ;;  %v214_v40 = vpop.f32.mrb[7].mxu1 }
  0xe6   :  { %v181_v41 = vpack.c.bf16 %v127_v38, %v127_v38  ;;  %v128_v42 = vmax.f32 %v120_v39, 0.0 }
  0xe8   :  { %158 = vst.msk [vmem:[%s293_s3 + $0x10] sm:$0xf] %vm153_vm2, %v181_v41  ;;  %v182_v43 = vpack.c.bf16 %v128_v42, %v128_v42 }
  0xea   :  { %159 = vst.msk [vmem:[%s293_s3 + $0x14] sm:$0xf] %vm153_vm2, %v182_v43 }

// kernel: denoiser_forward.23
= control target key start
LH: loop header
LB: loop body
LE: loop exit
PB: predicated region body
PF: predicated region fallthrough
CT: control target
= control target key end

     0   :  { %v319_v0 = vmov 0   ;;  %vm159_vm0 = vcmask 719872   ;;  %vm166_vm1 = vcmask 1043456   ;;  %s438_s1 = inlined_call_operand.vmem [shape: bf16[216,128], index: 1, kind: input, shape index: {}]   ;;  %s439_s0 = inlined_call_operand.vmem [shape: bf16[24,216], index: 0, kind: input, shape index: {}]   ;;  %s440_s2 = inlined_call_operand.vmem [shape: f32[24,1], index: 2, kind: input, shape index: {}]   ;;  %s441_s3 = inlined_call_operand.vmem [shape: bf16[24,128], index: 3, kind: output, shape index: {}]  }
   0x1   :  { %170 = vmatprep.subr.bf16.mxu0 %v319_v0  ;;  %269 = vmatprep.subr.bf16.mxu1 %v319_v0  ;;  %v300_v1 = vld [vmem:[%s438_s1] sm:$0xff]   ;;  %v301_v2 = vld [vmem:[%s438_s1 + $0x8] sm:$0xff]   ;;  %v302_v3 = vld [vmem:[%s438_s1 + $0x10] sm:$0xff]  }
   0x2   :  { %298 = vset.pattern.permute.xlu0 %v319_v0  ;;  %299 = vset.pattern.permute.xlu1 %v319_v0  ;;  %v303_v4 = vld [vmem:[%s438_s1 + $0x18] sm:$0xff]   ;;  %v304_v5 = vld [vmem:[%s438_s1 + $0x20] sm:$0xff]   ;;  %v17_v7 = vld [vmem:[%s439_s0 + $0x10] sm:$0xff] }
   0x3   :  { %171 = vmatpush1.bf16.msra.mxu0 %v300_v1  ;;  %283 = vmatpush1.bf16.msra.mxu1 %v300_v1  ;;  %v316_v6 = vld [vmem:[%s439_s0 + $0x4] ss:$8 sps:$4 sm:$0xff]   ;;  %v241_v9 = vcombine.high %v17_v7, %v17_v7  ;;  %v47_v10 = vld [vmem:[%s440_s2 + $0x10] sm:$0xff]  ;;  %v307_v14 = vld [vmem:[%s438_s1 + $0x38] sm:$0xff]   ;;  %v240_v23 = vcombine.low %v17_v7, %v17_v7 }
   0x4   :  { %172 = vmatprep.subr.bf16.mxu0 %v319_v0  ;;  %270 = vmatprep.subr.bf16.mxu1 %v319_v0  ;;  %v45_v8 = vld [vmem:[%s440_s2] sm:$0xff]  ;;  %v46_v11 = vld [vmem:[%s440_s2 + $0x8] sm:$0xff]  ;;  %v306_v13 = vld [vmem:[%s438_s1 + $0x30] sm:$0xff]  }
   0x5   :  { %256 = vmatprep.mubr.msk.bf16.mxu0 %vm159_vm0, %v316_v6  ;;  %50 = vperm.xlu0 %298, %v45_v8   ;;  %v305_v12 = vld [vmem:[%s438_s1 + $0x28] sm:$0xff]   ;;  %v308_v15 = vld [vmem:[%s438_s1 + $0x40] sm:$0xff]   ;;  %v310_v17 = vld [vmem:[%s438_s1 + $0x50] sm:$0xff]  }
   0x6   :  { %60 = vperm.xlu1 %299, %v47_v10   ;;  %257 = vmatprep.mubr.msk.bf16.mxu1 %vm159_vm0, %v241_v9  ;;  %v309_v16 = vld [vmem:[%s438_s1 + $0x48] sm:$0xff]   ;;  %v311_v18 = vld [vmem:[%s438_s1 + $0x58] sm:$0xff]   ;;  %v312_v19 = vld [vmem:[%s438_s1 + $0x60] sm:$0xff]  }
   0x7   :  { %173 = vmatpush1.bf16.msra.mxu0 %v301_v2  ;;  %284 = vmatpush1.bf16.msra.mxu1 %v301_v2  ;;  %v313_v20 = vld [vmem:[%s438_s1 + $0x68] ss:$0 sps:$4 sm:$0xff]  }
   0x8   :  { %174 = vmatprep.subr.bf16.mxu0 %v319_v0  ;;  %271 = vmatprep.subr.bf16.mxu1 %v319_v0  ;;  %v168_v21 = vsel %vm166_vm1, %v313_v20, 0  ;;  %v314_v22 = vld [vmem:[%s439_s0] ss:$8 sps:$4 sm:$0xff]  }
   0x9   :  { %55 = vperm.xlu0 %298, %v46_v11  }
   0xb   :  { %175 = vmatpush1.bf16.msra.mxu0 %v302_v3  ;;  %285 = vmatpush1.bf16.msra.mxu1 %v302_v3 }
   0xc   :  { %176 = vmatprep.subr.bf16.mxu0 %v319_v0  ;;  %272 = vmatprep.subr.bf16.mxu1 %v319_v0 }
   0xf   :  { %177 = vmatpush1.bf16.msra.mxu0 %v303_v4  ;;  %286 = vmatpush1.bf16.msra.mxu1 %v303_v4 }
  0x10   :  { %178 = vmatprep.subr.bf16.mxu0 %v319_v0  ;;  %273 = vmatprep.subr.bf16.mxu1 %v319_v0 }
  0x13   :  { %179 = vmatpush1.bf16.msra.mxu0 %v304_v5  ;;  %287 = vmatpush1.bf16.msra.mxu1 %v304_v5 }
  0x14   :  { %180 = vmatprep.subr.bf16.mxu0 %v319_v0  ;;  %274 = vmatprep.subr.bf16.mxu1 %v319_v0 }
  0x17   :  { %181 = vmatpush1.bf16.msra.mxu0 %v305_v12  ;;  %288 = vmatpush1.bf16.msra.mxu1 %v305_v12 }
  0x18   :  { %182 = vmatprep.subr.bf16.mxu0 %v319_v0  ;;  %275 = vmatprep.subr.bf16.mxu1 %v319_v0 }
  0x1b   :  { %183 = vmatpush1.bf16.msra.mxu0 %v306_v13  ;;  %289 = vmatpush1.bf16.msra.mxu1 %v306_v13 }
  0x1c   :  { %184 = vmatprep.subr.bf16.mxu0 %v319_v0  ;;  %276 = vmatprep.subr.bf16.mxu1 %v319_v0 }
  0x1f   :  { %185 = vmatpush1.bf16.msra.mxu0 %v307_v14  ;;  %290 = vmatpush1.bf16.msra.mxu1 %v307_v14 }
  0x20   :  { %186 = vmatprep.subr.bf16.mxu0 %v319_v0  ;;  %277 = vmatprep.subr.bf16.mxu1 %v319_v0 }
  0x23   :  { %187 = vmatpush1.bf16.msra.mxu0 %v308_v15  ;;  %291 = vmatpush1.bf16.msra.mxu1 %v308_v15 }
  0x24   :  { %188 = vmatprep.subr.bf16.mxu0 %v319_v0  ;;  %278 = vmatprep.subr.bf16.mxu1 %v319_v0 }
  0x27   :  { %189 = vmatpush1.bf16.msra.mxu0 %v309_v16  ;;  %292 = vmatpush1.bf16.msra.mxu1 %v309_v16 }
  0x28   :  { %190 = vmatprep.subr.bf16.mxu0 %v319_v0  ;;  %279 = vmatprep.subr.bf16.mxu1 %v319_v0 }
  0x2b   :  { %191 = vmatpush1.bf16.msra.mxu0 %v310_v17  ;;  %293 = vmatpush1.bf16.msra.mxu1 %v310_v17 }
  0x2c   :  { %192 = vmatprep.subr.bf16.mxu0 %v319_v0  ;;  %280 = vmatprep.subr.bf16.mxu1 %v319_v0 }
  0x2f   :  { %193 = vmatpush1.bf16.msra.mxu0 %v311_v18  ;;  %294 = vmatpush1.bf16.msra.mxu1 %v311_v18 }
  0x30   :  { %194 = vmatprep.subr.bf16.mxu0 %v319_v0  ;;  %281 = vmatprep.subr.bf16.mxu1 %v319_v0 }
  0x33   :  { %195 = vmatpush1.bf16.msra.mxu0 %v312_v19  ;;  %295 = vmatpush1.bf16.msra.mxu1 %v312_v19 }
  0x34   :  { %196 = vmatprep.subr.bf16.mxu0 %v319_v0  ;;  %282 = vmatprep.subr.bf16.mxu1 %v319_v0 }
  0x37   :  { %197 = vmatpush1.bf16.msra.mxu0 %v168_v21  ;;  %296 = vmatpush1.bf16.msra.mxu1 %v168_v21 }
  0x3a   :  { %203 = vmatmul.mubr.bf16.vlgmr.msra.gmra.mrb[0].mxu0 %v314_v22  ;;  %211 = vmatmul.mubr.bf16.vlgmr.msra.gmra.mrb[0].mxu1 %v240_v23 }
  0x84   :  { %v51_v24 = vpop.permute.xlu0 %50 }
  0x85   :  { %v61_v25 = vpop.permute.xlu1 %60 }
  0x88   :  { %v56_v26 = vpop.permute.xlu0 %55 }
 0x10d   :  { %v204_v27 = vpop.f32.mrb[0].mxu0  ;;  %v212_v28 = vpop.f32.mrb[0].mxu1 }
 0x10e   :  { %v206_v29 = vpop.f32.mrb[1].mxu0  ;;  %v214_v30 = vpop.f32.mrb[1].mxu1  ;;  %v213_v31 = vadd.f32 %v212_v28, %v61_v25  ;;  %v205_v34 = vadd.f32 %v204_v27, %v51_v24 }
 0x10f   :  { %v207_v32 = vpop.f32.mrb[2].mxu0  ;;  %v215_v33 = vpop.f32.mrb[2].mxu1 }
 0x110   :  { %v263_v35 = vpack.c.bf16 %v213_v31, %v213_v31  ;;  %v208_v36 = vadd.f32 %v207_v32, %v56_v26  ;;  %v209_v37 = vpop.f32.mrb[3].mxu0  ;;  %v216_v38 = vpop.f32.mrb[3].mxu1 }
 0x112   :  { %233 = vst [vmem:[%s441_s3 + $0x8] sm:$0xf] %v263_v35  ;;  %v267_v39 = vpack.c.bf16 %v208_v36, %v205_v34 }
 0x114   :  { %268 = vst [vmem:[%s441_s3] sm:$0xff] %v267_v39  }

// kernel: denoiser_forward.24
= control target key start
LH: loop header
LB: loop body
LE: loop exit
PB: predicated region body
PF: predicated region fallthrough
CT: control target
= control target key end

     0   :  { %v283_v1 = vmov 0   ;;  %vm102_vm0 = vcmask 523264   ;;  %s373_s1 = inlined_call_operand.vmem [shape: bf16[64,256], index: 1, kind: input, shape index: {}]   ;;  %s374_s0 = inlined_call_operand.vmem [shape: bf16[48,64], index: 0, kind: input, shape index: {}]   ;;  %s375_s2 = inlined_call_operand.vmem [shape: bf16[48,256], index: 2, kind: input, shape index: {}]   ;;  %s376_s3 = inlined_call_operand.vmem [shape: bf16[48,256], index: 3, kind: output, shape index: {}]  }
   0x1   :  { %v268_v0 = vld [vmem:[%s373_s1 + $0x4] ss:$8 sps:$4 sm:$0xff]   ;;  %154 = vmatprep.mubr.bf16.mxu1 %v283_v1  ;;  %144 = vmatprep.mubr.bf16.mxu0 %v283_v1  ;;  %v270_v2 = vld [vmem:[%s373_s1] ss:$8 sps:$4 sm:$0xff]   ;;  %v271_v3 = vld [vmem:[%s373_s1 + $0x14] ss:$8 sps:$4 sm:$0xff]  }
   0x2   :  { %259 = vmatprep.subr.bf16.mxu1 %v268_v0  ;;  %112 = vmatprep.subr.bf16.mxu0 %v268_v0  ;;  %v273_v4 = vld [vmem:[%s373_s1 + $0x10] ss:$8 sps:$4 sm:$0xff]   ;;  %v274_v5 = vld [vmem:[%s373_s1 + $0x24] ss:$8 sps:$4 sm:$0xff]   ;;  %v276_v6 = vld [vmem:[%s373_s1 + $0x20] ss:$8 sps:$4 sm:$0xff]  }
   0x3   :  { %263 = vmatpush1.bf16.msra.mxu1 %v270_v2  ;;  %113 = vmatpush1.bf16.msra.mxu0 %v270_v2  ;;  %v277_v7 = vld [vmem:[%s373_s1 + $0x34] ss:$8 sps:$4 sm:$0xff]   ;;  %v279_v8 = vld [vmem:[%s373_s1 + $0x30] ss:$8 sps:$4 sm:$0xff]   ;;  %v280_v9 = vld [vmem:[%s374_s0 + $0x8] sm:$0xff]  }
   0x4   :  { %260 = vmatprep.subr.bf16.mxu1 %v271_v3  ;;  %114 = vmatprep.subr.bf16.mxu0 %v271_v3  ;;  %v281_v10 = vld [vmem:[%s374_s0] sm:$0xff]   ;;  %v282_v11 = vld [vmem:[%s374_s0 + $0x10] sm:$0xff]   ;;  %v32_v14 = vld [vmem:[%s375_s2 + $0x18] sm:$0xff] }
   0x5   :  { %v31_v12 = vld [vmem:[%s375_s2 + $0x10] sm:$0xff]  ;;  %v29_v13 = vld [vmem:[%s375_s2] sm:$0xff]  ;;  %v30_v15 = vld [vmem:[%s375_s2 + $0x8] sm:$0xff]  ;;  %v41_v20 = vunpack.c.l.bf16 %v32_v14  ;;  %v42_v23 = vunpack.c.h.bf16 %v32_v14 }
   0x6   :  { %v39_v16 = vunpack.c.l.bf16 %v31_v12  ;;  %v35_v17 = vunpack.c.l.bf16 %v29_v13  ;;  %v40_v18 = vunpack.c.h.bf16 %v31_v12  ;;  %v36_v19 = vunpack.c.h.bf16 %v29_v13  ;;  %v33_v34 = vld [vmem:[%s375_s2 + $0x20] sm:$0xff]  ;;  %v34_v45 = vld [vmem:[%s375_s2 + $0x28] sm:$0xff] }
   0x7   :  { %264 = vmatpush1.bf16.msra.mxu1 %v273_v4  ;;  %115 = vmatpush1.bf16.msra.mxu0 %v273_v4  ;;  %v37_v21 = vunpack.c.l.bf16 %v30_v15  ;;  %v38_v25 = vunpack.c.h.bf16 %v30_v15  ;;  %v43_v48 = vunpack.c.l.bf16 %v33_v34  ;;  %v44_v49 = vunpack.c.h.bf16 %v33_v34 }
   0x8   :  { %261 = vmatprep.subr.bf16.mxu1 %v274_v5  ;;  %116 = vmatprep.subr.bf16.mxu0 %v274_v5  ;;  %v45_v54 = vunpack.c.l.bf16 %v34_v45  ;;  %v46_v58 = vunpack.c.h.bf16 %v34_v45 }
   0xb   :  { %265 = vmatpush1.bf16.msra.mxu1 %v276_v6  ;;  %117 = vmatpush1.bf16.msra.mxu0 %v276_v6 }
   0xc   :  { %262 = vmatprep.subr.bf16.mxu1 %v277_v7  ;;  %118 = vmatprep.subr.bf16.mxu0 %v277_v7 }
   0xf   :  { %266 = vmatpush1.bf16.msra.mxu1 %v279_v8  ;;  %119 = vmatpush1.bf16.msra.mxu0 %v279_v8 }
  0x12   :  { %245 = vmatmul.mubr.msk.bf16.vlgmr.msra.gmra.mrb[0].mxu1 %vm102_vm0, %v280_v9  ;;  %244 = vmatmul.mubr.msk.bf16.vlgmr.msra.gmra.mrb[0].mxu0 %vm102_vm0, %v281_v10 }
  0x13   :  { %164 = vmatprep.mubr.bf16.mxu1 %v283_v1 }
  0x1a   :  { %246 = vmatmul.mubr.msk.bf16.gmra.mrb[4].mxu1 %vm102_vm0, %v282_v11 }
  0xe5   :  { %v156_v22 = vpop.f32.mrb[0].mxu1  ;;  %v146_v24 = vpop.f32.mrb[0].mxu0 }
  0xe6   :  { %v157_v26 = vadd.f32 %v156_v22, %v39_v16  ;;  %v158_v27 = vpop.f32.mrb[1].mxu1  ;;  %v147_v28 = vadd.f32 %v146_v24, %v35_v17  ;;  %v148_v29 = vpop.f32.mrb[1].mxu0 }
  0xe7   :  { %v159_v30 = vadd.f32 %v158_v27, %v40_v18  ;;  %v160_v31 = vpop.f32.mrb[2].mxu1  ;;  %v149_v32 = vadd.f32 %v148_v29, %v36_v19  ;;  %v150_v33 = vpop.f32.mrb[2].mxu0 }
  0xe8   :  { %v179_v35 = vmax.f32 %v157_v26, 0.0  ;;  %v161_v36 = vadd.f32 %v160_v31, %v41_v20  ;;  %v162_v37 = vpop.f32.mrb[3].mxu1  ;;  %v175_v38 = vmax.f32 %v147_v28, 0.0  ;;  %v151_v39 = vadd.f32 %v150_v33, %v37_v21  ;;  %v152_v40 = vpop.f32.mrb[3].mxu0 }
  0xe9   :  { %v180_v41 = vmax.f32 %v159_v30, 0.0  ;;  %v163_v42 = vadd.f32 %v162_v37, %v42_v23  ;;  %v176_v43 = vmax.f32 %v149_v32, 0.0  ;;  %v153_v44 = vadd.f32 %v152_v40, %v38_v25 }
  0xea   :  { %v181_v46 = vmax.f32 %v161_v36, 0.0  ;;  %v177_v47 = vmax.f32 %v151_v39, 0.0 }
  0xeb   :  { %v255_v50 = vpack.c.bf16 %v180_v41, %v179_v35  ;;  %v182_v51 = vmax.f32 %v163_v42, 0.0  ;;  %v253_v52 = vpack.c.bf16 %v176_v43, %v175_v38  ;;  %v178_v53 = vmax.f32 %v153_v44, 0.0 }
  0xed   :  { %225 = vst [vmem:[%s376_s3 + $0x10] sm:$0xff] %v255_v50  ;;  %v256_v55 = vpack.c.bf16 %v182_v51, %v181_v46  ;;  %223 = vst [vmem:[%s376_s3] sm:$0xff] %v253_v52  ;;  %v254_v56 = vpack.c.bf16 %v178_v53, %v177_v47  ;;  %v166_v57 = vpop.f32.mrb[4].mxu1 }
  0xee   :  { %v167_v59 = vadd.f32 %v166_v57, %v43_v48  ;;  %v168_v60 = vpop.f32.mrb[5].mxu1 }
  0xef   :  { %226 = vst [vmem:[%s376_s3 + $0x18] sm:$0xff] %v256_v55  ;;  %224 = vst [vmem:[%s376_s3 + $0x8] sm:$0xff] %v254_v56  ;;  %v169_v61 = vadd.f32 %v168_v60, %v44_v49  ;;  %v170_v62 = vpop.f32.mrb[6].mxu1 }
  0xf0   :  { %v183_v63 = vmax.f32 %v167_v59, 0.0  ;;  %v171_v0 = vadd.f32 %v170_v62, %v45_v54  ;;  %v172_v1 = vpop.f32.mrb[7].mxu1 }
  0xf1   :  { %v184_v2 = vmax.f32 %v169_v61, 0.0  ;;  %v173_v3 = vadd.f32 %v172_v1, %v46_v58 }
  0xf2   :  { %v185_v4 = vmax.f32 %v171_v0, 0.0 }
  0xf3   :  { %v257_v5 = vpack.c.bf16 %v184_v2, %v183_v63  ;;  %v186_v6 = vmax.f32 %v173_v3, 0.0 }
  0xf5   :  { %227 = vst [vmem:[%s376_s3 + $0x20] sm:$0xff] %v257_v5  ;;  %v258_v7 = vpack.c.bf16 %v186_v6, %v185_v4 }
  0xf7   :  { %228 = vst [vmem:[%s376_s3 + $0x28] sm:$0xff] %v258_v7 }

// kernel: denoiser_forward.25
= control target key start
LH: loop header
LB: loop body
LE: loop exit
PB: predicated region body
PF: predicated region fallthrough
CT: control target
= control target key end

     0   :  { %s902_s12 = smov 0   ;;  %s904_s13 = smov 0   ;;  %s1077_s0 = inlined_call_operand.vmem [shape: bf16[24,216], index: 0, kind: input, shape index: {}]   ;;  %s1078_s1 = inlined_call_operand.vmem [shape: bf16[216,512], index: 1, kind: input, shape index: {}]   ;;  %s1079_s2 = inlined_call_operand.vmem [shape: f32[24,1], index: 2, kind: input, shape index: {}]   ;;  %s1080_s3 = inlined_call_operand.vmem [shape: bf16[24,512], index: 3, kind: output, shape index: {}]  }
   0x1   :  { %s906_s14 = smov 0  }
   0x2 LB: > { %s699_s15 = sadd.s32 4294967295, %s879_s14   ;;  %s919_s16 = sadd.s32 1, %s879_s14   ;;  %s879_s14 = sphi %s906_s14, %s1084_s14   ;;  %s875_s13 = sphi %s904_s13, %s1083_s13   ;;  %s871_s12 = sphi %s902_s12, %s1082_s12  }
   0x3   : > { %s38_s17 = ssub.s32 %s879_s14, %s919_s16  ;;  %s41_s18 = sadd.s32 1, %s875_s13 }
   0x4   : > { %p39_p0 = scmp.eq.s32.totalorder %s38_s17, 0  ;;  %p48_p1 = scmp.ne.s32.totalorder %s875_s13, %s871_s12 }
   0x5   : > { %p49_p2 = scmp.eq.s32.totalorder %s879_s14, 0  ;;  %p99_p3 = scmp.eq.s32.totalorder %s699_s15, 1 }
   0x6   : > { %s930_s19 = scalar_select %p39_p0, %s875_s13, %s41_s18  }
   0x7   : > { %p50_p4 = por %p49_p2, %p48_p1  ;;  %p932_p5 = por %p99_p3, %p48_p1 }
   0x8   : > { %p702_p6 = scmp.ge.s32.totalorder %s879_s14, 2 }
   0xa   : > { %127 = sbr.rel (%p702_p6) target bundleno = 35 (0x23), region = 24 }
  0x11   : > { %130 = sbr.rel (!%p50_p4) target bundleno = 35 (0x23), region = 28  ;;  %s132_s21 = sand.u32 (%p50_p4), 1, %s875_s13  }
  0x12   : > { %s748_s22 = sshll.u32 (%p50_p4), %s879_s14, 3  ;;  %s781_s23 = smul.u32 (%p50_p4), 216, %s132_s21 }
  0x13   : > { %s942_s26 = scalar_lea.vmem (%p50_p4), %s1078_s1, %s748_s22 }
  0x14   : > { %v217_v0 = vld [vmem:[%s942_s26] sm:$0xff] (%p50_p4)  ;;  %v219_v1 = vld [vmem:[%s942_s26 + $0x10] sm:$0xff] (%p50_p4)  ;;  %s950_s27 = scalar_lea.vmem (%p50_p4), [#allocation2], %s781_s23 }
  0x15   : > { %v221_v2 = vld [vmem:[%s942_s26 + $0x20] sm:$0xff] (%p50_p4)  ;;  %v223_v3 = vld [vmem:[%s942_s26 + $0x30] sm:$0xff] (%p50_p4)  ;;  %218 = vst [vmem:[%s950_s27] sm:$0xff] (%p50_p4), %v217_v0  ;;  %220 = vst [vmem:[%s950_s27 + $0x8] sm:$0xff] (%p50_p4), %v219_v1 }
  0x16   : > { %v225_v4 = vld [vmem:[%s942_s26 + $0x40] sm:$0xff] (%p50_p4)  ;;  %v227_v5 = vld [vmem:[%s942_s26 + $0x50] sm:$0xff] (%p50_p4)  ;;  %222 = vst [vmem:[%s950_s27 + $0x10] sm:$0xff] (%p50_p4), %v221_v2  ;;  %224 = vst [vmem:[%s950_s27 + $0x18] sm:$0xff] (%p50_p4), %v223_v3 }
  0x17   : > { %226 = vst [vmem:[%s950_s27 + $0x20] sm:$0xff] (%p50_p4), %v225_v4  ;;  %228 = vst [vmem:[%s950_s27 + $0x28] sm:$0xff] (%p50_p4), %v227_v5  ;;  %v229_v6 = vld [vmem:[%s942_s26 + $0x60] sm:$0xff] (%p50_p4)  ;;  %v231_v7 = vld [vmem:[%s942_s26 + $0x70] sm:$0xff] (%p50_p4) }
  0x18   : > { %v233_v8 = vld [vmem:[%s942_s26 + $0x80] sm:$0xff]  ;;  %230 = vst [vmem:[%s950_s27 + $0x30] sm:$0xff] %v229_v6  ;;  %232 = vst [vmem:[%s950_s27 + $0x38] sm:$0xff] %v231_v7  ;;  %v235_v9 = vld [vmem:[%s942_s26 + $0x90] sm:$0xff] }
  0x19   : > { %234 = vst [vmem:[%s950_s27 + $0x40] sm:$0xff] %v233_v8  ;;  %v237_v10 = vld [vmem:[%s942_s26 + $0xa0] sm:$0xff]  ;;  %v239_v11 = vld [vmem:[%s942_s26 + $0xb0] sm:$0xff]  ;;  %236 = vst [vmem:[%s950_s27 + $0x48] sm:$0xff] %v235_v9 }
  0x1a   : > { %238 = vst [vmem:[%s950_s27 + $0x50] sm:$0xff] %v237_v10  ;;  %240 = vst [vmem:[%s950_s27 + $0x58] sm:$0xff] %v239_v11  ;;  %v241_v12 = vld [vmem:[%s942_s26 + $0xc0] sm:$0xff]  ;;  %v243_v13 = vld [vmem:[%s942_s26 + $0xd0] sm:$0xff] }
  0x1b   : > { %v245_v14 = vld [vmem:[%s942_s26 + $0xe0] sm:$0xff]  ;;  %242 = vst [vmem:[%s950_s27 + $0x60] sm:$0xff] %v241_v12  ;;  %244 = vst [vmem:[%s950_s27 + $0x68] sm:$0xff] %v243_v13  ;;  %v247_v15 = vld [vmem:[%s942_s26 + $0xf0] sm:$0xff] }
  0x1c   : > { %246 = vst [vmem:[%s950_s27 + $0x70] sm:$0xff] %v245_v14  ;;  %v249_v16 = vld [vmem:[%s942_s26 + $0x100] sm:$0xff]  ;;  %v251_v17 = vld [vmem:[%s942_s26 + $0x110] sm:$0xff]  ;;  %248 = vst [vmem:[%s950_s27 + $0x78] sm:$0xff] %v247_v15 }
  0x1d   : > { %250 = vst [vmem:[%s950_s27 + $0x80] sm:$0xff] %v249_v16  ;;  %252 = vst [vmem:[%s950_s27 + $0x88] sm:$0xff] %v251_v17  ;;  %v253_v18 = vld [vmem:[%s942_s26 + $0x120] sm:$0xff]  ;;  %v255_v19 = vld [vmem:[%s942_s26 + $0x130] sm:$0xff] }
  0x1e   : > { %v257_v20 = vld [vmem:[%s942_s26 + $0x140] sm:$0xff]  ;;  %254 = vst [vmem:[%s950_s27 + $0x90] sm:$0xff] %v253_v18  ;;  %256 = vst [vmem:[%s950_s27 + $0x98] sm:$0xff] %v255_v19  ;;  %v259_v21 = vld [vmem:[%s942_s26 + $0x150] sm:$0xff] }
  0x1f   : > { %258 = vst [vmem:[%s950_s27 + $0xa0] sm:$0xff] %v257_v20  ;;  %v261_v22 = vld [vmem:[%s942_s26 + $0x160] sm:$0xff]  ;;  %v263_v23 = vld [vmem:[%s942_s26 + $0x170] sm:$0xff]  ;;  %260 = vst [vmem:[%s950_s27 + $0xa8] sm:$0xff] %v259_v21 }
  0x20   : > { %262 = vst [vmem:[%s950_s27 + $0xb0] sm:$0xff] %v261_v22  ;;  %264 = vst [vmem:[%s950_s27 + $0xb8] sm:$0xff] %v263_v23  ;;  %v265_v24 = vld [vmem:[%s942_s26 + $0x180] sm:$0xff]  ;;  %v267_v25 = vld [vmem:[%s942_s26 + $0x190] sm:$0xff] }
  0x21   : > { %v269_v26 = vld [vmem:[%s942_s26 + $0x1a0] sm:$0xff]  ;;  %266 = vst [vmem:[%s950_s27 + $0xc0] sm:$0xff] %v265_v24  ;;  %268 = vst [vmem:[%s950_s27 + $0xc8] sm:$0xff] %v267_v25 }
  0x22   : > { %270 = vst [vmem:[%s950_s27 + $0xd0] sm:$0xff] %v269_v26 }
  0x23 PF: > { %p705_p7 = scmp.ge.s32.totalorder %s879_s14, 1  ;;  %p275_p8 = scmp.lt.s32.totalorder %s879_s14, 3 }
  0x25   : > { %p276_p9 = pnand %p705_p7, %p275_p8 }
  0x26   : > { %s282_s28 = sand.u32 (!%p276_p9), 1, %s871_s12   ;;  %v854_v27 = vld [vmem:[%s1077_s0 + $0x4] ss:$8 sps:$4 sm:$0xff] (!%p276_p9)   ;;  %vm505_vm0 = vcmask (!%p276_p9), 719872   ;;  %v1011_v28 = vld [vmem:[%s1077_s0 + $0x10] sm:$0xff] (!%p276_p9)  ;;  %v881_v30 = vmov (!%p276_p9), 0  }
  0x27   : > { %279 = sbr.rel (%p276_p9) target bundleno = 328 (0x148), region = 66  ;;  %v709_v29 = vcombine.high (!%p276_p9), %v1011_v28, %v1011_v28  ;;  %809 = vset.pattern.permute.xlu0 (!%p276_p9), %v881_v30  ;;  %v337_v31 = vld [vmem:[%s1079_s2] sm:$0xff] (!%p276_p9)  ;;  %810 = vset.pattern.permute.xlu1 (!%p276_p9), %v881_v30  ;;  %v339_v32 = vld [vmem:[%s1079_s2 + $0x10] sm:$0xff] (!%p276_p9)  ;;  %v338_v36 = vld [vmem:[%s1079_s2 + $0x8] sm:$0xff] (!%p276_p9)  ;;  %vm512_vm1 = vcmask (!%p276_p9), 1043456   ;;  %v708_v1 = vcombine.low (!%p276_p9), %v1011_v28, %v1011_v28 }
  0x28   : > { %s782_s29 = smul.u32 (!%p276_p9), 216, %s282_s28  ;;  %739 = vmatprep.mubr.msk.bf16.mxu0 (!%p276_p9), %vm505_vm0, %v854_v27  ;;  %342 = vperm.xlu0 (!%p276_p9), %809, %v337_v31   ;;  %v852_v0 = vld [vmem:[%s1077_s0] ss:$8 sps:$4 sm:$0xff] (!%p276_p9)  }
  0x29   : > { %740 = vmatprep.mubr.msk.bf16.mxu1 (!%p276_p9), %vm505_vm0, %v709_v29  ;;  %352 = vperm.xlu1 (!%p276_p9), %810, %v339_v32   ;;  %s783_s23 = smul.u32 (!%p276_p9), 24, %s282_s28 }
  0x2a   : > { %s1021_s11 = scalar_lea.vmem (!%p276_p9), [#allocation2], %s782_s29 }
  0x2b   : > { %v811_v33 = vld [vmem:[%s1021_s11 + $0x4] ss:$8 sps:$4 sm:$0xff] (!%p276_p9)   ;;  %v813_v34 = vld [vmem:[%s1021_s11] ss:$8 sps:$4 sm:$0xff] (!%p276_p9)   ;;  %v814_v35 = vld [vmem:[%s1021_s11 + $0x14] ss:$8 sps:$4 sm:$0xff] (!%p276_p9)  }
  0x2c   : > { %519 = vmatprep.subr.bf16.mxu0 (!%p276_p9), %v811_v33  ;;  %753 = vmatprep.subr.bf16.mxu1 (!%p276_p9), %v811_v33  ;;  %v816_v37 = vld [vmem:[%s1021_s11 + $0x10] ss:$8 sps:$4 sm:$0xff] (!%p276_p9)   ;;  %v817_v38 = vld [vmem:[%s1021_s11 + $0x24] ss:$8 sps:$4 sm:$0xff] (!%p276_p9)   ;;  %v819_v39 = vld [vmem:[%s1021_s11 + $0x20] ss:$8 sps:$4 sm:$0xff] (!%p276_p9)  }
  0x2d   : > { %520 = vmatpush1.bf16.msra.mxu0 (!%p276_p9), %v813_v34  ;;  %767 = vmatpush1.bf16.msra.mxu1 (!%p276_p9), %v813_v34  ;;  %v820_v40 = vld [vmem:[%s1021_s11 + $0x34] ss:$8 sps:$4 sm:$0xff] (!%p276_p9)   ;;  %v822_v41 = vld [vmem:[%s1021_s11 + $0x30] ss:$8 sps:$4 sm:$0xff] (!%p276_p9)   ;;  %v823_v42 = vld [vmem:[%s1021_s11 + $0x44] ss:$8 sps:$4 sm:$0xff] (!%p276_p9)  }
  0x2e   : > { %521 = vmatprep.subr.bf16.mxu0 %v814_v35  ;;  %754 = vmatprep.subr.bf16.mxu1 %v814_v35  ;;  %v825_v43 = vld [vmem:[%s1021_s11 + $0x40] ss:$8 sps:$4 sm:$0xff]   ;;  %v826_v44 = vld [vmem:[%s1021_s11 + $0x54] ss:$8 sps:$4 sm:$0xff]   ;;  %v828_v45 = vld [vmem:[%s1021_s11 + $0x50] ss:$8 sps:$4 sm:$0xff]  }
  0x2f   : > { %347 = vperm.xlu0 %809, %v338_v36   ;;  %v829_v46 = vld [vmem:[%s1021_s11 + $0x64] ss:$8 sps:$4 sm:$0xff]   ;;  %v831_v47 = vld [vmem:[%s1021_s11 + $0x60] ss:$8 sps:$4 sm:$0xff]   ;;  %v832_v48 = vld [vmem:[%s1021_s11 + $0x74] ss:$8 sps:$4 sm:$0xff]  }
  0x30   : > { %v834_v49 = vld [vmem:[%s1021_s11 + $0x70] ss:$8 sps:$4 sm:$0xff]   ;;  %v835_v50 = vld [vmem:[%s1021_s11 + $0x84] ss:$8 sps:$4 sm:$0xff]   ;;  %v837_v51 = vld [vmem:[%s1021_s11 + $0x80] ss:$8 sps:$4 sm:$0xff]  }
  0x31   : > { %522 = vmatpush1.bf16.msra.mxu0 %v816_v37  ;;  %768 = vmatpush1.bf16.msra.mxu1 %v816_v37  ;;  %v838_v52 = vld [vmem:[%s1021_s11 + $0x94] ss:$8 sps:$4 sm:$0xff]   ;;  %v840_v53 = vld [vmem:[%s1021_s11 + $0x90] ss:$8 sps:$4 sm:$0xff]   ;;  %v841_v54 = vld [vmem:[%s1021_s11 + $0xa4] ss:$8 sps:$4 sm:$0xff]  }
  0x32   : > { %523 = vmatprep.subr.bf16.mxu0 %v817_v38  ;;  %755 = vmatprep.subr.bf16.mxu1 %v817_v38  ;;  %v843_v55 = vld [vmem:[%s1021_s11 + $0xa0] ss:$8 sps:$4 sm:$0xff]   ;;  %v844_v56 = vld [vmem:[%s1021_s11 + $0xb4] ss:$8 sps:$4 sm:$0xff]   ;;  %v846_v57 = vld [vmem:[%s1021_s11 + $0xb0] ss:$8 sps:$4 sm:$0xff]  }
  0x33   : > { %v847_v58 = vld [vmem:[%s1021_s11 + $0xc4] ss:$8 sps:$4 sm:$0xff]   ;;  %v336_v59 = vld [vmem:[%s1021_s11 + $0xd0] sm:$0xff]  ;;  %v849_v60 = vld [vmem:[%s1021_s11 + $0xc0] ss:$8 sps:$4 sm:$0xff]   ;;  %s303_s24 = scalar_lea.vmem [#allocation3], %s783_s23 }
  0x34   : > { %v737_v61 = vcombine.high %v336_v59, %v336_v59  ;;  %v736_v62 = vcombine.low %v336_v59, %v336_v59  ;;  %s752_s12 = sshll.u32 (%p932_p5), %s699_s15, 3 }
  0x35   : > { %524 = vmatpush1.bf16.msra.mxu0 %v819_v39  ;;  %769 = vmatpush1.bf16.msra.mxu1 %v819_v39  ;;  %s602_s27 = scalar_lea.vmem (%p932_p5), %s1080_s3, %s752_s12 }
  0x36   : > { %525 = vmatprep.subr.bf16.mxu0 %v820_v40  ;;  %756 = vmatprep.subr.bf16.mxu1 %v820_v40  ;;  %v514_v63 = vsel %vm512_vm1, %v736_v62, 0 }
  0x39   : > { %526 = vmatpush1.bf16.msra.mxu0 %v822_v41  ;;  %770 = vmatpush1.bf16.msra.mxu1 %v822_v41 }
  0x3a   : > { %527 = vmatprep.subr.bf16.mxu0 %v823_v42  ;;  %757 = vmatprep.subr.bf16.mxu1 %v823_v42 }
  0x3d   : > { %528 = vmatpush1.bf16.msra.mxu0 %v825_v43  ;;  %771 = vmatpush1.bf16.msra.mxu1 %v825_v43 }
  0x3e   : > { %529 = vmatprep.subr.bf16.mxu0 %v826_v44  ;;  %758 = vmatprep.subr.bf16.mxu1 %v826_v44 }
  0x41   : > { %530 = vmatpush1.bf16.msra.mxu0 %v828_v45  ;;  %772 = vmatpush1.bf16.msra.mxu1 %v828_v45 }
  0x42   : > { %531 = vmatprep.subr.bf16.mxu0 %v829_v46  ;;  %759 = vmatprep.subr.bf16.mxu1 %v829_v46 }
  0x45   : > { %532 = vmatpush1.bf16.msra.mxu0 %v831_v47  ;;  %773 = vmatpush1.bf16.msra.mxu1 %v831_v47 }
  0x46   : > { %533 = vmatprep.subr.bf16.mxu0 %v832_v48  ;;  %760 = vmatprep.subr.bf16.mxu1 %v832_v48 }
  0x49   : > { %534 = vmatpush1.bf16.msra.mxu0 %v834_v49  ;;  %774 = vmatpush1.bf16.msra.mxu1 %v834_v49 }
  0x4a   : > { %535 = vmatprep.subr.bf16.mxu0 %v835_v50  ;;  %761 = vmatprep.subr.bf16.mxu1 %v835_v50 }
  0x4d   : > { %536 = vmatpush1.bf16.msra.mxu0 %v837_v51  ;;  %775 = vmatpush1.bf16.msra.mxu1 %v837_v51 }
  0x4e   : > { %537 = vmatprep.subr.bf16.mxu0 %v838_v52  ;;  %762 = vmatprep.subr.bf16.mxu1 %v838_v52 }
  0x51   : > { %538 = vmatpush1.bf16.msra.mxu0 %v840_v53  ;;  %776 = vmatpush1.bf16.msra.mxu1 %v840_v53 }
  0x52   : > { %539 = vmatprep.subr.bf16.mxu0 %v841_v54  ;;  %763 = vmatprep.subr.bf16.mxu1 %v841_v54 }
  0x55   : > { %540 = vmatpush1.bf16.msra.mxu0 %v843_v55  ;;  %777 = vmatpush1.bf16.msra.mxu1 %v843_v55 }
  0x56   : > { %541 = vmatprep.subr.bf16.mxu0 %v844_v56  ;;  %764 = vmatprep.subr.bf16.mxu1 %v844_v56 }
  0x59   : > { %542 = vmatpush1.bf16.msra.mxu0 %v846_v57  ;;  %778 = vmatpush1.bf16.msra.mxu1 %v846_v57 }
  0x5a   : > { %543 = vmatprep.subr.bf16.mxu0 %v847_v58  ;;  %765 = vmatprep.subr.bf16.mxu1 %v847_v58 }
  0x5d   : > { %544 = vmatpush1.bf16.msra.mxu0 %v849_v60  ;;  %779 = vmatpush1.bf16.msra.mxu1 %v849_v60 }
  0x5e   : > { %738 = vmatprep.subr.msk.bf16.mxu0 %vm512_vm1, %v737_v61  ;;  %766 = vmatprep.subr.msk.bf16.mxu1 %vm512_vm1, %v737_v61 }
  0x61   : > { %546 = vmatpush1.bf16.msra.mxu0 %v514_v63  ;;  %780 = vmatpush1.bf16.msra.mxu1 %v514_v63 }
  0x64   : > { %552 = vmatmul.mubr.bf16.vlgmr.msra.gmra.mrb[0].mxu0 %v852_v0  ;;  %562 = vmatmul.mubr.bf16.vlgmr.msra.gmra.mrb[0].mxu1 %v708_v1 }
  0xa7   : > { %v343_v2 = vpop.permute.xlu0 %342 }
  0xa8   : > { %v353_v3 = vpop.permute.xlu1 %352 }
  0xae   : > { %v348_v4 = vpop.permute.xlu0 %347 }
 0x137   : > { %v553_v5 = vpop.f32.mrb[0].mxu0  ;;  %v563_v6 = vpop.f32.mrb[0].mxu1 }
 0x138   : > { %v554_v7 = vadd.f32 %v553_v5, %v343_v2  ;;  %v555_v8 = vpop.f32.mrb[1].mxu0  ;;  %v565_v9 = vpop.f32.mrb[1].mxu1  ;;  %v564_v10 = vadd.f32 %v563_v6, %v353_v3 }
 0x139   : > { %v556_v11 = vadd.f32 %v555_v8, %v343_v2  ;;  %v566_v12 = vadd.f32 %v565_v9, %v353_v3  ;;  %v557_v13 = vpop.f32.mrb[2].mxu0  ;;  %v567_v14 = vpop.f32.mrb[2].mxu1  ;;  %599 = sbr.rel (!%p932_p5) target bundleno = 328 (0x148), region = 74 }
 0x13a   : > { %v558_v15 = vadd.f32 %v557_v13, %v348_v4  ;;  %v559_v16 = vpop.f32.mrb[3].mxu0  ;;  %v568_v17 = vpop.f32.mrb[3].mxu1 }
 0x13b   : > { %v749_v18 = vpack.c.bf16 %v556_v11, %v554_v7  ;;  %v751_v19 = vpack.c.bf16 %v566_v12, %v564_v10  ;;  %v560_v20 = vadd.f32 %v559_v16, %v348_v4 }
 0x13d   : > { %590 = vst [vmem:[%s303_s24] sm:$0xff] %v749_v18  ;;  %592 = vst [vmem:[%s303_s24 + $0x10] sm:$0xff] %v751_v19  ;;  %v750_v21 = vpack.c.bf16 %v560_v20, %v558_v15 }
 0x13f   : > { %591 = vst [vmem:[%s303_s24 + $0x8] sm:$0xff] %v750_v21 }
 0x144   : > { %v634_v22 = vld [vmem:[%s303_s24] sm:$0xff]  ;;  %v638_v24 = vld [vmem:[%s303_s24 + $0x10] sm:$0xff] }
 0x145   : > { %635 = vst [vmem:[%s602_s27] sm:$0xff] %v634_v22  ;;  %639 = vst [vmem:[%s602_s27 + $0x20] sm:$0xff] %v638_v24 }
 0x146   : > { %v636_v23 = vld [vmem:[%s303_s24 + $0x8] sm:$0xff] }
 0x147   : > { %637 = vst [vmem:[%s602_s27 + $0x10] sm:$0xff] %v636_v23 }
 0x148 PF: > { %p10_p10 = scmp.ge.s32.totalorder %s919_s16, 4   ;;  %s1082_s12 = smov %s875_s13 }
 0x149   : > { %s1083_s13 = smov %s930_s19  ;;  %s1084_s14 = smov %s919_s16 }
 0x14a   :  { %12 = sbr.rel (!%p10_p10) target bundleno = 2 (0x2), region = 143 }

// kernel: denoiser_forward.27
= control target key start
LH: loop header
LB: loop body
LE: loop exit
PB: predicated region body
PF: predicated region fallthrough
CT: control target
= control target key end

     0   :  { %s884_s12 = smov 0   ;;  %s886_s13 = smov 0   ;;  %s1059_s0 = inlined_call_operand.vmem [shape: bf16[24,216], index: 0, kind: input, shape index: {}]   ;;  %s1060_s1 = inlined_call_operand.vmem [shape: bf16[216,512], index: 1, kind: input, shape index: {}]   ;;  %s1061_s2 = inlined_call_operand.vmem [shape: f32[24,1], index: 2, kind: input, shape index: {}]   ;;  %s1062_s3 = inlined_call_operand.vmem [shape: f32[24,512], index: 3, kind: output, shape index: {}]  }
   0x1   :  { %s888_s14 = smov 0  }
   0x2 LB: > { %s675_s15 = sadd.s32 4294967295, %s861_s14   ;;  %s901_s16 = sadd.s32 1, %s861_s14   ;;  %s861_s14 = sphi %s888_s14, %s1066_s14   ;;  %s857_s13 = sphi %s886_s13, %s1065_s13   ;;  %s853_s12 = sphi %s884_s12, %s1064_s12  }
   0x3   : > { %s38_s17 = ssub.s32 %s861_s14, %s901_s16  ;;  %s41_s18 = sadd.s32 1, %s857_s13 }
   0x4   : > { %p39_p0 = scmp.eq.s32.totalorder %s38_s17, 0  ;;  %p48_p1 = scmp.ne.s32.totalorder %s857_s13, %s853_s12 }
   0x5   : > { %p49_p2 = scmp.eq.s32.totalorder %s861_s14, 0  ;;  %p99_p3 = scmp.eq.s32.totalorder %s675_s15, 1 }
   0x6   : > { %s912_s19 = scalar_select %p39_p0, %s857_s13, %s41_s18  }
   0x7   : > { %p50_p4 = por %p49_p2, %p48_p1  ;;  %p914_p5 = por %p99_p3, %p48_p1 }
   0x8   : > { %p678_p6 = scmp.ge.s32.totalorder %s861_s14, 2 }
   0xa   : > { %127 = sbr.rel (%p678_p6) target bundleno = 35 (0x23), region = 24 }
  0x11   : > { %130 = sbr.rel (!%p50_p4) target bundleno = 35 (0x23), region = 28  ;;  %s132_s21 = sand.u32 (%p50_p4), 1, %s857_s13  }
  0x12   : > { %s721_s22 = sshll.u32 (%p50_p4), %s861_s14, 3  ;;  %s751_s23 = smul.u32 (%p50_p4), 216, %s132_s21 }
  0x13   : > { %s924_s26 = scalar_lea.vmem (%p50_p4), %s1060_s1, %s721_s22 }
  0x14   : > { %v217_v0 = vld [vmem:[%s924_s26] sm:$0xff] (%p50_p4)  ;;  %v219_v1 = vld [vmem:[%s924_s26 + $0x10] sm:$0xff] (%p50_p4)  ;;  %s932_s27 = scalar_lea.vmem (%p50_p4), [#allocation2], %s751_s23 }
  0x15   : > { %v221_v2 = vld [vmem:[%s924_s26 + $0x20] sm:$0xff] (%p50_p4)  ;;  %v223_v3 = vld [vmem:[%s924_s26 + $0x30] sm:$0xff] (%p50_p4)  ;;  %218 = vst [vmem:[%s932_s27] sm:$0xff] (%p50_p4), %v217_v0  ;;  %220 = vst [vmem:[%s932_s27 + $0x8] sm:$0xff] (%p50_p4), %v219_v1 }
  0x16   : > { %v225_v4 = vld [vmem:[%s924_s26 + $0x40] sm:$0xff] (%p50_p4)  ;;  %v227_v5 = vld [vmem:[%s924_s26 + $0x50] sm:$0xff] (%p50_p4)  ;;  %222 = vst [vmem:[%s932_s27 + $0x10] sm:$0xff] (%p50_p4), %v221_v2  ;;  %224 = vst [vmem:[%s932_s27 + $0x18] sm:$0xff] (%p50_p4), %v223_v3 }
  0x17   : > { %226 = vst [vmem:[%s932_s27 + $0x20] sm:$0xff] (%p50_p4), %v225_v4  ;;  %228 = vst [vmem:[%s932_s27 + $0x28] sm:$0xff] (%p50_p4), %v227_v5  ;;  %v229_v6 = vld [vmem:[%s924_s26 + $0x60] sm:$0xff] (%p50_p4)  ;;  %v231_v7 = vld [vmem:[%s924_s26 + $0x70] sm:$0xff] (%p50_p4) }
  0x18   : > { %v233_v8 = vld [vmem:[%s924_s26 + $0x80] sm:$0xff]  ;;  %230 = vst [vmem:[%s932_s27 + $0x30] sm:$0xff] %v229_v6  ;;  %232 = vst [vmem:[%s932_s27 + $0x38] sm:$0xff] %v231_v7  ;;  %v235_v9 = vld [vmem:[%s924_s26 + $0x90] sm:$0xff] }
  0x19   : > { %234 = vst [vmem:[%s932_s27 + $0x40] sm:$0xff] %v233_v8  ;;  %v237_v10 = vld [vmem:[%s924_s26 + $0xa0] sm:$0xff]  ;;  %v239_v11 = vld [vmem:[%s924_s26 + $0xb0] sm:$0xff]  ;;  %236 = vst [vmem:[%s932_s27 + $0x48] sm:$0xff] %v235_v9 }
  0x1a   : > { %238 = vst [vmem:[%s932_s27 + $0x50] sm:$0xff] %v237_v10  ;;  %240 = vst [vmem:[%s932_s27 + $0x58] sm:$0xff] %v239_v11  ;;  %v241_v12 = vld [vmem:[%s924_s26 + $0xc0] sm:$0xff]  ;;  %v243_v13 = vld [vmem:[%s924_s26 + $0xd0] sm:$0xff] }
  0x1b   : > { %v245_v14 = vld [vmem:[%s924_s26 + $0xe0] sm:$0xff]  ;;  %242 = vst [vmem:[%s932_s27 + $0x60] sm:$0xff] %v241_v12  ;;  %244 = vst [vmem:[%s932_s27 + $0x68] sm:$0xff] %v243_v13  ;;  %v247_v15 = vld [vmem:[%s924_s26 + $0xf0] sm:$0xff] }
  0x1c   : > { %246 = vst [vmem:[%s932_s27 + $0x70] sm:$0xff] %v245_v14  ;;  %v249_v16 = vld [vmem:[%s924_s26 + $0x100] sm:$0xff]  ;;  %v251_v17 = vld [vmem:[%s924_s26 + $0x110] sm:$0xff]  ;;  %248 = vst [vmem:[%s932_s27 + $0x78] sm:$0xff] %v247_v15 }
  0x1d   : > { %250 = vst [vmem:[%s932_s27 + $0x80] sm:$0xff] %v249_v16  ;;  %252 = vst [vmem:[%s932_s27 + $0x88] sm:$0xff] %v251_v17  ;;  %v253_v18 = vld [vmem:[%s924_s26 + $0x120] sm:$0xff]  ;;  %v255_v19 = vld [vmem:[%s924_s26 + $0x130] sm:$0xff] }
  0x1e   : > { %v257_v20 = vld [vmem:[%s924_s26 + $0x140] sm:$0xff]  ;;  %254 = vst [vmem:[%s932_s27 + $0x90] sm:$0xff] %v253_v18  ;;  %256 = vst [vmem:[%s932_s27 + $0x98] sm:$0xff] %v255_v19  ;;  %v259_v21 = vld [vmem:[%s924_s26 + $0x150] sm:$0xff] }
  0x1f   : > { %258 = vst [vmem:[%s932_s27 + $0xa0] sm:$0xff] %v257_v20  ;;  %v261_v22 = vld [vmem:[%s924_s26 + $0x160] sm:$0xff]  ;;  %v263_v23 = vld [vmem:[%s924_s26 + $0x170] sm:$0xff]  ;;  %260 = vst [vmem:[%s932_s27 + $0xa8] sm:$0xff] %v259_v21 }
  0x20   : > { %262 = vst [vmem:[%s932_s27 + $0xb0] sm:$0xff] %v261_v22  ;;  %264 = vst [vmem:[%s932_s27 + $0xb8] sm:$0xff] %v263_v23  ;;  %v265_v24 = vld [vmem:[%s924_s26 + $0x180] sm:$0xff]  ;;  %v267_v25 = vld [vmem:[%s924_s26 + $0x190] sm:$0xff] }
  0x21   : > { %v269_v26 = vld [vmem:[%s924_s26 + $0x1a0] sm:$0xff]  ;;  %266 = vst [vmem:[%s932_s27 + $0xc0] sm:$0xff] %v265_v24  ;;  %268 = vst [vmem:[%s932_s27 + $0xc8] sm:$0xff] %v267_v25 }
  0x22   : > { %270 = vst [vmem:[%s932_s27 + $0xd0] sm:$0xff] %v269_v26 }
  0x23 PF: > { %p681_p7 = scmp.ge.s32.totalorder %s861_s14, 1  ;;  %p275_p8 = scmp.lt.s32.totalorder %s861_s14, 3 }
  0x25   : > { %p276_p9 = pnand %p681_p7, %p275_p8 }
  0x26   : > { %s282_s28 = sand.u32 (!%p276_p9), 1, %s853_s12   ;;  %v824_v27 = vld [vmem:[%s1059_s0 + $0x4] ss:$8 sps:$4 sm:$0xff] (!%p276_p9)   ;;  %vm505_vm0 = vcmask (!%p276_p9), 719872   ;;  %v993_v28 = vld [vmem:[%s1059_s0 + $0x10] sm:$0xff] (!%p276_p9)  ;;  %v863_v30 = vmov (!%p276_p9), 0  }
  0x27   : > { %279 = sbr.rel (%p276_p9) target bundleno = 339 (0x153), region = 66  ;;  %v685_v29 = vcombine.high (!%p276_p9), %v993_v28, %v993_v28  ;;  %779 = vset.pattern.permute.xlu0 (!%p276_p9), %v863_v30  ;;  %v337_v31 = vld [vmem:[%s1061_s2] sm:$0xff] (!%p276_p9)  ;;  %780 = vset.pattern.permute.xlu1 (!%p276_p9), %v863_v30  ;;  %v339_v32 = vld [vmem:[%s1061_s2 + $0x10] sm:$0xff] (!%p276_p9)  ;;  %v338_v36 = vld [vmem:[%s1061_s2 + $0x8] sm:$0xff] (!%p276_p9)  ;;  %vm512_vm1 = vcmask (!%p276_p9), 1043456   ;;  %v684_v1 = vcombine.low (!%p276_p9), %v993_v28, %v993_v28 }
  0x28   : > { %s752_s29 = smul.u32 (!%p276_p9), 216, %s282_s28  ;;  %715 = vmatprep.mubr.msk.bf16.mxu0 (!%p276_p9), %vm505_vm0, %v824_v27  ;;  %342 = vperm.xlu0 (!%p276_p9), %779, %v337_v31   ;;  %v822_v0 = vld [vmem:[%s1059_s0] ss:$8 sps:$4 sm:$0xff] (!%p276_p9)  }
  0x29   : > { %716 = vmatprep.mubr.msk.bf16.mxu1 (!%p276_p9), %vm505_vm0, %v685_v29  ;;  %352 = vperm.xlu1 (!%p276_p9), %780, %v339_v32   ;;  %s753_s23 = smul.u32 (!%p276_p9), 48, %s282_s28 }
  0x2a   : > { %s1003_s11 = scalar_lea.vmem (!%p276_p9), [#allocation2], %s752_s29 }
  0x2b   : > { %v781_v33 = vld [vmem:[%s1003_s11 + $0x4] ss:$8 sps:$4 sm:$0xff] (!%p276_p9)   ;;  %v783_v34 = vld [vmem:[%s1003_s11] ss:$8 sps:$4 sm:$0xff] (!%p276_p9)   ;;  %v784_v35 = vld [vmem:[%s1003_s11 + $0x14] ss:$8 sps:$4 sm:$0xff] (!%p276_p9)  }
  0x2c   : > { %519 = vmatprep.subr.bf16.mxu0 (!%p276_p9), %v781_v33  ;;  %723 = vmatprep.subr.bf16.mxu1 (!%p276_p9), %v781_v33  ;;  %v786_v37 = vld [vmem:[%s1003_s11 + $0x10] ss:$8 sps:$4 sm:$0xff] (!%p276_p9)   ;;  %v787_v38 = vld [vmem:[%s1003_s11 + $0x24] ss:$8 sps:$4 sm:$0xff] (!%p276_p9)   ;;  %v789_v39 = vld [vmem:[%s1003_s11 + $0x20] ss:$8 sps:$4 sm:$0xff] (!%p276_p9)  }
  0x2d   : > { %520 = vmatpush1.bf16.msra.mxu0 (!%p276_p9), %v783_v34  ;;  %737 = vmatpush1.bf16.msra.mxu1 (!%p276_p9), %v783_v34  ;;  %v790_v40 = vld [vmem:[%s1003_s11 + $0x34] ss:$8 sps:$4 sm:$0xff] (!%p276_p9)   ;;  %v792_v41 = vld [vmem:[%s1003_s11 + $0x30] ss:$8 sps:$4 sm:$0xff] (!%p276_p9)   ;;  %v793_v42 = vld [vmem:[%s1003_s11 + $0x44] ss:$8 sps:$4 sm:$0xff] (!%p276_p9)  }
  0x2e   : > { %521 = vmatprep.subr.bf16.mxu0 %v784_v35  ;;  %724 = vmatprep.subr.bf16.mxu1 %v784_v35  ;;  %v795_v43 = vld [vmem:[%s1003_s11 + $0x40] ss:$8 sps:$4 sm:$0xff]   ;;  %v796_v44 = vld [vmem:[%s1003_s11 + $0x54] ss:$8 sps:$4 sm:$0xff]   ;;  %v798_v45 = vld [vmem:[%s1003_s11 + $0x50] ss:$8 sps:$4 sm:$0xff]  }
  0x2f   : > { %347 = vperm.xlu0 %779, %v338_v36   ;;  %v799_v46 = vld [vmem:[%s1003_s11 + $0x64] ss:$8 sps:$4 sm:$0xff]   ;;  %v801_v47 = vld [vmem:[%s1003_s11 + $0x60] ss:$8 sps:$4 sm:$0xff]   ;;  %v802_v48 = vld [vmem:[%s1003_s11 + $0x74] ss:$8 sps:$4 sm:$0xff]  }
  0x30   : > { %v804_v49 = vld [vmem:[%s1003_s11 + $0x70] ss:$8 sps:$4 sm:$0xff]   ;;  %v805_v50 = vld [vmem:[%s1003_s11 + $0x84] ss:$8 sps:$4 sm:$0xff]   ;;  %v807_v51 = vld [vmem:[%s1003_s11 + $0x80] ss:$8 sps:$4 sm:$0xff]  }
  0x31   : > { %522 = vmatpush1.bf16.msra.mxu0 %v786_v37  ;;  %738 = vmatpush1.bf16.msra.mxu1 %v786_v37  ;;  %v808_v52 = vld [vmem:[%s1003_s11 + $0x94] ss:$8 sps:$4 sm:$0xff]   ;;  %v810_v53 = vld [vmem:[%s1003_s11 + $0x90] ss:$8 sps:$4 sm:$0xff]   ;;  %v811_v54 = vld [vmem:[%s1003_s11 + $0xa4] ss:$8 sps:$4 sm:$0xff]  }
  0x32   : > { %523 = vmatprep.subr.bf16.mxu0 %v787_v38  ;;  %725 = vmatprep.subr.bf16.mxu1 %v787_v38  ;;  %v813_v55 = vld [vmem:[%s1003_s11 + $0xa0] ss:$8 sps:$4 sm:$0xff]   ;;  %v814_v56 = vld [vmem:[%s1003_s11 + $0xb4] ss:$8 sps:$4 sm:$0xff]   ;;  %v816_v57 = vld [vmem:[%s1003_s11 + $0xb0] ss:$8 sps:$4 sm:$0xff]  }
  0x33   : > { %v817_v58 = vld [vmem:[%s1003_s11 + $0xc4] ss:$8 sps:$4 sm:$0xff]   ;;  %v336_v59 = vld [vmem:[%s1003_s11 + $0xd0] sm:$0xff]  ;;  %v819_v60 = vld [vmem:[%s1003_s11 + $0xc0] ss:$8 sps:$4 sm:$0xff]   ;;  %s303_s24 = scalar_lea.vmem [#allocation3], %s753_s23 }
  0x34   : > { %v713_v61 = vcombine.high %v336_v59, %v336_v59  ;;  %v712_v62 = vcombine.low %v336_v59, %v336_v59  ;;  %s722_s12 = sshll.u32 (%p914_p5), %s675_s15, 4 }
  0x35   : > { %524 = vmatpush1.bf16.msra.mxu0 %v789_v39  ;;  %739 = vmatpush1.bf16.msra.mxu1 %v789_v39  ;;  %s591_s27 = scalar_lea.vmem (%p914_p5), %s1062_s3, %s722_s12 }
  0x36   : > { %525 = vmatprep.subr.bf16.mxu0 %v790_v40  ;;  %726 = vmatprep.subr.bf16.mxu1 %v790_v40  ;;  %v514_v63 = vsel %vm512_vm1, %v712_v62, 0 }
  0x39   : > { %526 = vmatpush1.bf16.msra.mxu0 %v792_v41  ;;  %740 = vmatpush1.bf16.msra.mxu1 %v792_v41 }
  0x3a   : > { %527 = vmatprep.subr.bf16.mxu0 %v793_v42  ;;  %727 = vmatprep.subr.bf16.mxu1 %v793_v42 }
  0x3d   : > { %528 = vmatpush1.bf16.msra.mxu0 %v795_v43  ;;  %741 = vmatpush1.bf16.msra.mxu1 %v795_v43 }
  0x3e   : > { %529 = vmatprep.subr.bf16.mxu0 %v796_v44  ;;  %728 = vmatprep.subr.bf16.mxu1 %v796_v44 }
  0x41   : > { %530 = vmatpush1.bf16.msra.mxu0 %v798_v45  ;;  %742 = vmatpush1.bf16.msra.mxu1 %v798_v45 }
  0x42   : > { %531 = vmatprep.subr.bf16.mxu0 %v799_v46  ;;  %729 = vmatprep.subr.bf16.mxu1 %v799_v46 }
  0x45   : > { %532 = vmatpush1.bf16.msra.mxu0 %v801_v47  ;;  %743 = vmatpush1.bf16.msra.mxu1 %v801_v47 }
  0x46   : > { %533 = vmatprep.subr.bf16.mxu0 %v802_v48  ;;  %730 = vmatprep.subr.bf16.mxu1 %v802_v48 }
  0x49   : > { %534 = vmatpush1.bf16.msra.mxu0 %v804_v49  ;;  %744 = vmatpush1.bf16.msra.mxu1 %v804_v49 }
  0x4a   : > { %535 = vmatprep.subr.bf16.mxu0 %v805_v50  ;;  %731 = vmatprep.subr.bf16.mxu1 %v805_v50 }
  0x4d   : > { %536 = vmatpush1.bf16.msra.mxu0 %v807_v51  ;;  %745 = vmatpush1.bf16.msra.mxu1 %v807_v51 }
  0x4e   : > { %537 = vmatprep.subr.bf16.mxu0 %v808_v52  ;;  %732 = vmatprep.subr.bf16.mxu1 %v808_v52 }
  0x51   : > { %538 = vmatpush1.bf16.msra.mxu0 %v810_v53  ;;  %746 = vmatpush1.bf16.msra.mxu1 %v810_v53 }
  0x52   : > { %539 = vmatprep.subr.bf16.mxu0 %v811_v54  ;;  %733 = vmatprep.subr.bf16.mxu1 %v811_v54 }
  0x55   : > { %540 = vmatpush1.bf16.msra.mxu0 %v813_v55  ;;  %747 = vmatpush1.bf16.msra.mxu1 %v813_v55 }
  0x56   : > { %541 = vmatprep.subr.bf16.mxu0 %v814_v56  ;;  %734 = vmatprep.subr.bf16.mxu1 %v814_v56 }
  0x59   : > { %542 = vmatpush1.bf16.msra.mxu0 %v816_v57  ;;  %748 = vmatpush1.bf16.msra.mxu1 %v816_v57 }
  0x5a   : > { %543 = vmatprep.subr.bf16.mxu0 %v817_v58  ;;  %735 = vmatprep.subr.bf16.mxu1 %v817_v58 }
  0x5d   : > { %544 = vmatpush1.bf16.msra.mxu0 %v819_v60  ;;  %749 = vmatpush1.bf16.msra.mxu1 %v819_v60 }
  0x5e   : > { %714 = vmatprep.subr.msk.bf16.mxu0 %vm512_vm1, %v713_v61  ;;  %736 = vmatprep.subr.msk.bf16.mxu1 %vm512_vm1, %v713_v61 }
  0x61   : > { %546 = vmatpush1.bf16.msra.mxu0 %v514_v63  ;;  %750 = vmatpush1.bf16.msra.mxu1 %v514_v63 }
  0x64   : > { %552 = vmatmul.mubr.bf16.vlgmr.msra.gmra.mrb[0].mxu0 %v822_v0  ;;  %562 = vmatmul.mubr.bf16.vlgmr.msra.gmra.mrb[0].mxu1 %v684_v1 }
  0xa7   : > { %v343_v2 = vpop.permute.xlu0 %342 }
  0xa8   : > { %v353_v3 = vpop.permute.xlu1 %352 }
  0xae   : > { %v348_v4 = vpop.permute.xlu0 %347 }
 0x137   : > { %v553_v5 = vpop.f32.mrb[0].mxu0  ;;  %v563_v6 = vpop.f32.mrb[0].mxu1 }
 0x138   : > { %v554_v7 = vadd.f32 %v553_v5, %v343_v2  ;;  %v555_v8 = vpop.f32.mrb[1].mxu0  ;;  %v565_v9 = vpop.f32.mrb[1].mxu1  ;;  %v564_v10 = vadd.f32 %v563_v6, %v353_v3 }
 0x139   : > { %v556_v11 = vadd.f32 %v555_v8, %v343_v2  ;;  %v566_v12 = vadd.f32 %v565_v9, %v353_v3  ;;  %v557_v13 = vpop.f32.mrb[2].mxu0  ;;  %v567_v14 = vpop.f32.mrb[2].mxu1 }
 0x13a   : > { %827 = vtanh.f32 %v554_v7  ;;  %v558_v15 = vadd.f32 %v557_v13, %v348_v4  ;;  %v559_v16 = vpop.f32.mrb[3].mxu0  ;;  %v568_v17 = vpop.f32.mrb[3].mxu1 }
 0x13b   : > { %829 = vtanh.f32 %v556_v11  ;;  %v560_v18 = vadd.f32 %v559_v16, %v348_v4 }
 0x13c   : > { %831 = vtanh.f32 %v564_v10 }
 0x13d   : > { %833 = vtanh.f32 %v566_v12 }
 0x13e   : > { %835 = vtanh.f32 %v558_v15 }
 0x13f   : > { %837 = vtanh.f32 %v560_v18 }
 0x144   : > { %v828_v19 = vpop.eup %827  ;;  %588 = sbr.rel (!%p914_p5) target bundleno = 339 (0x153), region = 74 }
 0x145   : > { %v830_v20 = vpop.eup %829  ;;  %576 = vst [vmem:[%s303_s24] sm:$0xff] %v828_v19 }
 0x146   : > { %v832_v21 = vpop.eup %831  ;;  %577 = vst [vmem:[%s303_s24 + $0x8] sm:$0xff] %v830_v20 }
 0x147   : > { %v834_v22 = vpop.eup %833  ;;  %580 = vst [vmem:[%s303_s24 + $0x20] sm:$0xff] %v832_v21 }
 0x148   : > { %v836_v23 = vpop.eup %835  ;;  %581 = vst [vmem:[%s303_s24 + $0x28] sm:$0xff] %v834_v22 }
 0x149   : > { %v838_v24 = vpop.eup %837  ;;  %578 = vst [vmem:[%s303_s24 + $0x10] sm:$0xff] %v836_v23 }
 0x14a   : > { %579 = vst [vmem:[%s303_s24 + $0x18] sm:$0xff] %v838_v24 }
 0x14c   : > { %v604_v25 = vld [vmem:[%s303_s24] sm:$0xff] }
 0x14d   : > { %v606_v26 = vld [vmem:[%s303_s24 + $0x8] sm:$0xff]  ;;  %605 = vst [vmem:[%s591_s27] sm:$0xff] %v604_v25 }
 0x14e   : > { %v612_v29 = vld [vmem:[%s303_s24 + $0x20] sm:$0xff]  ;;  %607 = vst [vmem:[%s591_s27 + $0x8] sm:$0xff] %v606_v26 }
 0x14f   : > { %v614_v30 = vld [vmem:[%s303_s24 + $0x28] sm:$0xff]  ;;  %613 = vst [vmem:[%s591_s27 + $0x40] sm:$0xff] %v612_v29 }
 0x150   : > { %v608_v27 = vld [vmem:[%s303_s24 + $0x10] sm:$0xff]  ;;  %615 = vst [vmem:[%s591_s27 + $0x48] sm:$0xff] %v614_v30 }
 0x151   : > { %v610_v28 = vld [vmem:[%s303_s24 + $0x18] sm:$0xff]  ;;  %609 = vst [vmem:[%s591_s27 + $0x20] sm:$0xff] %v608_v27 }
 0x152   : > { %611 = vst [vmem:[%s591_s27 + $0x28] sm:$0xff] %v610_v28 }
 0x153 PF: > { %p10_p10 = scmp.ge.s32.totalorder %s901_s16, 4   ;;  %s1064_s12 = smov %s857_s13 }
 0x154   : > { %s1065_s13 = smov %s912_s19  ;;  %s1066_s14 = smov %s901_s16 }
 0x155   :  { %12 = sbr.rel (!%p10_p10) target bundleno = 2 (0x2), region = 128 }

</bundles_post_ra>
